<compile_context>
chip_gen: v5e
topology: v5e:2x2
jax: 0.10.0
libtpu: 0.0.40
codegen_flags: <defaults>
</compile_context>

<pallas_src>
import functools

import jax
import jax.numpy as jnp
from jax import lax
from jax.experimental import pallas as pl
from jax.experimental.pallas import tpu as pltpu


def _elu(x):
    # ELU(alpha=1): x if x > 0 else exp(x) - 1 (clamped arg so both branches are
    # safe).  exp(x)-1 (not expm1) keeps the transcendental on the universally
    # supported EUP path; the difference is far below the test tolerance.
    return jnp.where(x > 0, x, jnp.exp(jnp.minimum(x, 0.0)) - 1.0)


def _largest_divisor_leq(n, cap):
    cap = max(1, min(n, cap))
    for c in range(cap, 0, -1):
        if n % c == 0:
            return c
    return 1


# ---------------------------------------------------------------------------
# Shared per-sample attention core: all heads batched, one fused MXU push for
# projection + both attention score vectors.
# ---------------------------------------------------------------------------
def _attention_core(f, wq, *, n_heads, n_hidden, neg_slope):
    """f: (N, F_in) bf16;  wq: (H*nh + 2H, F_in) bf16 = [W^T ; W.a_left ; W.a_right].

    Returns the per-head attention output (H, N, n_hidden) in f32.
    """
    n = f.shape[0]
    d_out = n_heads * n_hidden

    # ONE MXU push: rows [0, d_out) are g^T (per-node projections, all heads),
    # rows [d_out, d_out+H) the "left" scores, rows [d_out+H, ..) the "right".
    r = lax.dot_general(wq, f, dimension_numbers=(((1,), (1,)), ((), ())),
                        preferred_element_type=jnp.float32)             # (d_out+2H, N)

    # g^T in head-major layout: leading-dim split only (layout-free), no per-head
    # sub-128-lane slices ever materialize.
    g_t = r[:d_out].astype(jnp.bfloat16).reshape(n_heads, n_hidden, n)   # (H, nh, N)
    sl = r[d_out:d_out + n_heads]                                        # (H, N) score(i)
    sr = r[d_out + n_heads:]                                             # (H, N) score(j)

    # e[h, i, j] = LeakyReLU(sl[h, i] + sr[h, j]); softmax over j — all heads at once.
    e = sl[:, :, None] + sr[:, None, :]                                  # (H, N, N) f32
    e = jnp.where(e >= 0, e, neg_slope * e)                              # LeakyReLU(0.2)
    e = e - jnp.max(e, axis=-1, keepdims=True)
    p = jnp.exp(e)                                                       # f32 exp (v5e-safe)
    inv = pl.reciprocal(jnp.sum(p, axis=-1, keepdims=True), approx=True)
    p = (p * inv).astype(jnp.bfloat16)                                   # (H, N, N) bf16

    # Head-batched P@V, contracting the shared key dim j (flash-attention pattern).
    out = lax.dot_general(p, g_t, dimension_numbers=(((2,), (2,)), ((0,), (0,))),
                          preferred_element_type=jnp.float32)            # (H, N, nh) f32
    return out


# ---------------------------------------------------------------------------
# GAT layer kernels (grid over batch blocks)
# ---------------------------------------------------------------------------
def _gat_features_kernel(f_ref, wq_ref, o_ref, *, n_heads, n_hidden, neg_slope):
    """Full per-node output: writes ELU(GAT(f)) as (block_b, N, H*nh) bf16."""
    wq = wq_ref[...]
    for b in range(f_ref.shape[0]):                      # small static batch block
        out = _attention_core(f_ref[b], wq, n_heads=n_heads,
                              n_hidden=n_hidden, neg_slope=neg_slope)    # (H, N, nh)
        # Per-head copy into the output block (scratch-slab pattern); the HBM
        # writeback stays a single lane-dense (N, H*nh) DMA.
        for h in range(n_heads):
            o_ref[b, :, h * n_hidden:(h + 1) * n_hidden] = (
                _elu(out[h]).astype(o_ref.dtype))


def _gat_pooled_kernel(f_ref, wq_ref, o_ref, *, n_heads, n_hidden, neg_slope):
    """Layer fused with ELU + mean-pool over nodes: writes (block_b, H, nh) f32."""
    wq = wq_ref[...]
    inv_n = 1.0 / f_ref.shape[1]
    for b in range(f_ref.shape[0]):
        out = _attention_core(f_ref[b], wq, n_heads=n_heads,
                              n_hidden=n_hidden, neg_slope=neg_slope)    # (H, N, nh)
        pooled = jnp.sum(_elu(out), axis=1) * inv_n                      # (H, nh)
        o_ref[b] = pooled.astype(o_ref.dtype)


def _prep_gat_weights(w, a_vec, n_heads, n_hidden):
    """Fold the shared attn Linear into the node projection and fuse everything
    into one weight slab wq = [W^T ; W.a_left ; W.a_right]  -> (H*nh + 2H, F_in)."""
    f_in = w.shape[0]
    w3 = w.reshape(f_in, n_heads, n_hidden)
    wl = jnp.einsum('fhk,k->hf', w3, a_vec[:n_hidden])                   # (H, F_in)
    wr = jnp.einsum('fhk,k->hf', w3, a_vec[n_hidden:])                   # (H, F_in)
    return jnp.concatenate([w.T, wl, wr], axis=0).astype(jnp.bfloat16)


def _pick_batch_block(batch, n_nodes, n_heads, vmem_budget=2 << 20):
    # Rough per-sample in-kernel footprint: f32 e + bf16 p tiles (+ slack).
    per_sample = n_heads * n_nodes * n_nodes * 6 + 4096
    cap = max(1, min(8, vmem_budget // per_sample))
    return _largest_divisor_leq(batch, cap)


def gat_layer(f, w, a_vec, *, n_heads, n_hidden, neg_slope=0.2, pooled=False):
    """f: (B, N, F_in); w: (F_in, H*nh) (pre-transposed nn.Linear); a_vec: (2*nh,).

    pooled=False -> bf16 (B, N, H*nh) node features (with ELU applied).
    pooled=True  -> f32 (B, H, nh) node-mean of the ELU'd features (head fused).
    """
    B, N, f_in = f.shape
    d_out = n_heads * n_hidden
    wq = _prep_gat_weights(w, a_vec, n_heads, n_hidden)
    bb = _pick_batch_block(B, N, n_heads)

    if pooled:
        kernel = functools.partial(_gat_pooled_kernel, n_heads=n_heads,
                                   n_hidden=n_hidden, neg_slope=neg_slope)
        out_shape = jax.ShapeDtypeStruct((B, n_heads, n_hidden), jnp.float32)
        out_spec = pl.BlockSpec((bb, n_heads, n_hidden), lambda i: (i, 0, 0))
    else:
        kernel = functools.partial(_gat_features_kernel, n_heads=n_heads,
                                   n_hidden=n_hidden, neg_slope=neg_slope)
        out_shape = jax.ShapeDtypeStruct((B, N, d_out), jnp.bfloat16)
        out_spec = pl.BlockSpec((bb, N, d_out), lambda i: (i, 0, 0))

    # TODO(synk): for N >~ 1.5k the (H, N, N) score tile outgrows VMEM (esp. v7x's
    # 64 MiB): switch to a kv-tiled online-softmax grid axis over key nodes and add
    # a second "parallel" axis (q-tiles / head groups) so both v7x TCs are fed.
    return pl.pallas_call(
        kernel,
        out_shape=out_shape,
        grid=(B // bb,),
        in_specs=[
            pl.BlockSpec((bb, N, f_in), lambda i: (i, 0, 0)),             # node features (bf16)
            pl.BlockSpec((d_out + 2 * n_heads, f_in), lambda i: (0, 0)),  # fused weights (bf16)
        ],
        out_specs=out_spec,
        compiler_params=pltpu.CompilerParams(
            dimension_semantics=("parallel",),
            vmem_limit_bytes=64 * 1024 * 1024),
    )(f.astype(jnp.bfloat16), wq)


# ---------------------------------------------------------------------------
# Classification head: pooled (B, 512) -> Linear -> ReLU -> Linear
# ---------------------------------------------------------------------------
def _head_kernel(x_ref, w1_ref, b1_ref, w2_ref, b2_ref, o_ref):
    h = jnp.dot(x_ref[...], w1_ref[...], preferred_element_type=jnp.float32) + b1_ref[...]
    h = jnp.maximum(h, 0.0)                                              # ReLU
    o_ref[...] = (jnp.dot(h, w2_ref[...], preferred_element_type=jnp.float32)
                  + b2_ref[...]).astype(o_ref.dtype)


def classifier_head(pooled, w_fc1, b_fc1, w_fc2, b_fc2):
    B, d = pooled.shape
    d_mid = w_fc1.shape[1]
    n_class = w_fc2.shape[1]
    bb = B if B <= 512 else _largest_divisor_leq(B, 512)
    if bb != B and bb % 8 != 0:      # batch tile must be 8-aligned unless it is full
        bb = B
    return pl.pallas_call(
        _head_kernel,
        out_shape=jax.ShapeDtypeStruct((B, n_class), jnp.float32),
        grid=(B // bb,),
        in_specs=[
            pl.BlockSpec((bb, d), lambda i: (i, 0)),
            pl.BlockSpec((d, d_mid), lambda i: (0, 0)),
            pl.BlockSpec((1, d_mid), lambda i: (0, 0)),
            pl.BlockSpec((d_mid, n_class), lambda i: (0, 0)),
            pl.BlockSpec((1, n_class), lambda i: (0, 0)),
        ],
        out_specs=pl.BlockSpec((bb, n_class), lambda i: (i, 0)),
        compiler_params=pltpu.CompilerParams(dimension_semantics=("parallel",)),
    )(pooled, w_fc1, b_fc1.reshape(1, -1), w_fc2, b_fc2.reshape(1, -1))


# ---------------------------------------------------------------------------
# Full Module.forward
# ---------------------------------------------------------------------------
def gat_module_forward(x, params):
    xyz = x[..., :3]
    # nn.Dropout layers are identity at inference.
    p1 = gat_layer(xyz, params["w1"], params["a1"], n_heads=8, n_hidden=16)     # (B, N, 128) bf16
    pooled = gat_layer(p1, params["w4"], params["a4"], n_heads=8, n_hidden=64,
                       pooled=True)                                             # (B, 8, 64) f32
    pooled = pooled.reshape(pooled.shape[0], -1)                                # == AdaptiveAvgPool1d(1)
    return classifier_head(pooled, params["w_fc1"], params["b_fc1"],
                           params["w_fc2"], params["b_fc2"])


# ---------------------------------------------------------------------------
# Pure-JAX reference (mirrors the PyTorch forward, full f32)
# ---------------------------------------------------------------------------
def gat_layer_ref(f, w, a_vec, n_heads, n_hidden, neg_slope=0.2):
    B, N, _ = f.shape
    g = (f @ w).reshape(B, N, n_heads, n_hidden)
    sl = jnp.einsum('bnhf,f->bnh', g, a_vec[:n_hidden])
    sr = jnp.einsum('bnhf,f->bnh', g, a_vec[n_hidden:])
    e = sl[:, :, None, :] + sr[:, None, :, :]                            # (B, i, j, H)
    e = jnp.where(e >= 0, e, neg_slope * e)
    attn = jax.nn.softmax(e, axis=-2)                                    # softmax over j (dim=-2)
    out = jnp.einsum('bijh,bjhf->bihf', attn, g)
    return out.reshape(B, N, n_heads * n_hidden)                         # is_concat=True


def module_ref(x, params):
    xyz = x[..., :3]
    p = jax.nn.elu(gat_layer_ref(xyz, params["w1"], params["a1"], 8, 16))
    p = jax.nn.elu(gat_layer_ref(p, params["w4"], params["a4"], 8, 64))
    pooled = jnp.mean(p, axis=1)
    h = jax.nn.relu(pooled @ params["w_fc1"] + params["b_fc1"])
    return h @ params["w_fc2"] + params["b_fc2"]


if __name__ == "__main__":
    B, N, C = 2, 8, 3          # batch, nodes (points), input channels (xyz)
    n_class = 10

    ks = jax.random.split(jax.random.PRNGKey(0), 9)
    s = 0.1
    params = {
        # layer1: GraphAttentionLayer(3, 128, 8)  -> n_hidden = 16
        "w1": s * jax.random.normal(ks[0], (3, 128), jnp.float32),       # linear (in, H*nh)
        "a1": s * jax.random.normal(ks[1], (32,), jnp.float32),          # attn weight (2*16,)
        # layer4: GraphAttentionLayer(128, 512, 8) -> n_hidden = 64
        "w4": s * jax.random.normal(ks[2], (128, 512), jnp.float32),
        "a4": s * jax.random.normal(ks[3], (128,), jnp.float32),         # attn weight (2*64,)
        # head MLP
        "w_fc1": s * jax.random.normal(ks[4], (512, 256), jnp.float32),
        "b_fc1": s * jax.random.normal(ks[5], (256,), jnp.float32),
        "w_fc2": s * jax.random.normal(ks[6], (256, n_class), jnp.float32),
        "b_fc2": s * jax.random.normal(ks[7], (n_class,), jnp.float32),
    }
    x = jax.random.normal(ks[8], (B, N, C), jnp.float32)

    out = jax.block_until_ready(jax.jit(gat_module_forward)(x, params))
    ref = jax.block_until_ready(module_ref(x, params))

    assert out.shape == (B, n_class)
    err = float(jnp.max(jnp.abs(out - ref)))
    # Kernel runs in bf16/f32 mixed precision vs the f32 reference.
    assert jnp.allclose(out, ref, atol=1e-2, rtol=1e-2), \
        f"mismatch vs reference: max abs err {err}"

    print("KERNEL_OK")
</pallas_src>

<mosaic_0001>
module attributes {stable_mosaic.version = 11 : i64} {
  func.func @_gat_features_kernel(%arg0: i32, %arg1: memref<2x8x3xbf16, #tpu.memory_space<vmem>>, %arg2: memref<144x3xbf16, #tpu.memory_space<vmem>>, %arg3: memref<2x8x128xbf16, #tpu.memory_space<vmem>>) attributes {dimension_semantics = [#tpu.dimension_semantics<parallel>], iteration_bounds = array<i64: 1>, scalar_prefetch = 0 : i64, scratch_operands = 0 : i64, tpu.core_type = #tpu.core_type<tc>, window_params = [{transform_indices = @transform_0, window_bounds = array<i64: 2, 8, 3>}, {pipeline_mode = #tpu.pipeline_mode<synchronous>, transform_indices = @transform_1, window_bounds = array<i64: 144, 3>}, {transform_indices = @transform_2, window_bounds = array<i64: 2, 8, 128>}]} {
    %c0 = arith.constant 0 : index
    %c0_0 = arith.constant 0 : index
    %0 = vector.load %arg2[%c0, %c0_0] : memref<144x3xbf16, #tpu.memory_space<vmem>>, vector<144x3xbf16>
    %c0_1 = arith.constant 0 : index
    %c0_2 = arith.constant 0 : index
    %c0_3 = arith.constant 0 : index
    %1 = vector.load %arg1[%c0_1, %c0_2, %c0_3] : memref<2x8x3xbf16, #tpu.memory_space<vmem>>, vector<1x8x3xbf16>
    %2 = vector.shape_cast %1 : vector<1x8x3xbf16> to vector<8x3xbf16>
    %cst = arith.constant dense<0.000000e+00> : vector<144x8xf32>
    %3 = tpu.matmul %0, %2, %cst {dimension_numbers = #tpu.dot_dimension_numbers<[1], [1], [0], [0], [0, 0, 1, 0], [], []>} : vector<144x3xbf16>, vector<8x3xbf16>, vector<144x8xf32> -> vector<144x8xf32>
    %4 = vector.extract_strided_slice %3 {offsets = [0, 0], sizes = [128, 8], strides = [1, 1]} : vector<144x8xf32> to vector<128x8xf32>
    %5 = arith.truncf %4 : vector<128x8xf32> to vector<128x8xbf16>
    %6 = vector.shape_cast %5 : vector<128x8xbf16> to vector<8x16x8xbf16>
    %7 = vector.extract_strided_slice %3 {offsets = [128, 0], sizes = [8, 8], strides = [1, 1]} : vector<144x8xf32> to vector<8x8xf32>
    %8 = vector.extract_strided_slice %3 {offsets = [136, 0], sizes = [8, 8], strides = [1, 1]} : vector<144x8xf32> to vector<8x8xf32>
    %9 = vector.shape_cast %7 : vector<8x8xf32> to vector<8x8x1xf32>
    %10 = vector.shape_cast %8 : vector<8x8xf32> to vector<8x1x8xf32>
    %11 = vector.broadcast %9 : vector<8x8x1xf32> to vector<8x8x8xf32>
    %12 = vector.broadcast %10 : vector<8x1x8xf32> to vector<8x8x8xf32>
    %13 = arith.addf %11, %12 : vector<8x8x8xf32>
    %cst_4 = arith.constant 0.000000e+00 : f32
    %14 = vector.broadcast %cst_4 : f32 to vector<8x8x8xf32>
    %15 = arith.cmpf oge, %13, %14 : vector<8x8x8xf32>
    %cst_5 = arith.constant 2.000000e-01 : f32
    %16 = vector.broadcast %cst_5 : f32 to vector<8x8x8xf32>
    %17 = arith.mulf %16, %13 : vector<8x8x8xf32>
    %18 = arith.select %15, %13, %17 : vector<8x8x8xi1>, vector<8x8x8xf32>
    %cst_6 = arith.constant dense<0xFF800000> : vector<8x8xf32>
    %19 = vector.multi_reduction <maximumf>, %18, %cst_6 [2] : vector<8x8x8xf32> to vector<8x8xf32>
    %20 = vector.shape_cast %19 : vector<8x8xf32> to vector<8x8x1xf32>
    %21 = vector.broadcast %20 : vector<8x8x1xf32> to vector<8x8x8xf32>
    %22 = arith.subf %18, %21 : vector<8x8x8xf32>
    %23 = math.exp %22 : vector<8x8x8xf32>
    %cst_7 = arith.constant dense<0.000000e+00> : vector<8x8xf32>
    %24 = vector.multi_reduction <add>, %23, %cst_7 [2] : vector<8x8x8xf32> to vector<8x8xf32>
    %25 = vector.shape_cast %24 : vector<8x8xf32> to vector<8x8x1xf32>
    %26 = tpu.reciprocal %25 {approx = true} : vector<8x8x1xf32> -> vector<8x8x1xf32>
    %27 = vector.broadcast %26 : vector<8x8x1xf32> to vector<8x8x8xf32>
    %28 = arith.mulf %23, %27 : vector<8x8x8xf32>
    %29 = arith.truncf %28 : vector<8x8x8xf32> to vector<8x8x8xbf16>
    %cst_8 = arith.constant dense<0.000000e+00> : vector<8x8x16xf32>
    %30 = tpu.matmul %29, %6, %cst_8 {dimension_numbers = #tpu.dot_dimension_numbers<[2], [2], [1], [1], [0, 0, 0, 1, 1, 1], [0], [0]>} : vector<8x8x8xbf16>, vector<8x16x8xbf16>, vector<8x8x16xf32> -> vector<8x8x16xf32>
    %31 = vector.extract_strided_slice %30 {offsets = [0, 0, 0], sizes = [1, 8, 16], strides = [1, 1, 1]} : vector<8x8x16xf32> to vector<1x8x16xf32>
    %32 = vector.shape_cast %31 : vector<1x8x16xf32> to vector<8x16xf32>
    %cst_9 = arith.constant 0.000000e+00 : f32
    %33 = vector.broadcast %cst_9 : f32 to vector<8x16xf32>
    %34 = arith.cmpf ogt, %32, %33 : vector<8x16xf32>
    %cst_10 = arith.constant 0.000000e+00 : f32
    %35 = vector.broadcast %cst_10 : f32 to vector<8x16xf32>
    %36 = arith.minimumf %32, %35 : vector<8x16xf32>
    %37 = math.exp %36 : vector<8x16xf32>
    %cst_11 = arith.constant 1.000000e+00 : f32
    %38 = vector.broadcast %cst_11 : f32 to vector<8x16xf32>
    %39 = arith.subf %37, %38 : vector<8x16xf32>
    %40 = arith.select %34, %32, %39 : vector<8x16xi1>, vector<8x16xf32>
    %41 = arith.truncf %40 : vector<8x16xf32> to vector<8x16xbf16>
    %c0_12 = arith.constant 0 : index
    %c0_13 = arith.constant 0 : index
    %c0_14 = arith.constant 0 : index
    %42 = vector.load %arg3[%c0_12, %c0_13, %c0_14] : memref<2x8x128xbf16, #tpu.memory_space<vmem>>, vector<1x8x16xbf16>
    %43 = vector.shape_cast %42 : vector<1x8x16xbf16> to vector<8x16xbf16>
    %44 = vector.shape_cast %41 : vector<8x16xbf16> to vector<1x8x16xbf16>
    tpu.vector_store %arg3[%c0_12, %c0_13, %c0_14], %44 {strides = array<i32>} : memref<2x8x128xbf16, #tpu.memory_space<vmem>>, vector<1x8x16xbf16>,
    %45 = vector.extract_strided_slice %30 {offsets = [1, 0, 0], sizes = [1, 8, 16], strides = [1, 1, 1]} : vector<8x8x16xf32> to vector<1x8x16xf32>
    %46 = vector.shape_cast %45 : vector<1x8x16xf32> to vector<8x16xf32>
    %cst_15 = arith.constant 0.000000e+00 : f32
    %47 = vector.broadcast %cst_15 : f32 to vector<8x16xf32>
    %48 = arith.cmpf ogt, %46, %47 : vector<8x16xf32>
    %cst_16 = arith.constant 0.000000e+00 : f32
    %49 = vector.broadcast %cst_16 : f32 to vector<8x16xf32>
    %50 = arith.minimumf %46, %49 : vector<8x16xf32>
    %51 = math.exp %50 : vector<8x16xf32>
    %cst_17 = arith.constant 1.000000e+00 : f32
    %52 = vector.broadcast %cst_17 : f32 to vector<8x16xf32>
    %53 = arith.subf %51, %52 : vector<8x16xf32>
    %54 = arith.select %48, %46, %53 : vector<8x16xi1>, vector<8x16xf32>
    %55 = arith.truncf %54 : vector<8x16xf32> to vector<8x16xbf16>
    %c0_18 = arith.constant 0 : index
    %c0_19 = arith.constant 0 : index
    %c16 = arith.constant 16 : index
    %56 = vector.load %arg3[%c0_18, %c0_19, %c16] : memref<2x8x128xbf16, #tpu.memory_space<vmem>>, vector<1x8x16xbf16>
    %57 = vector.shape_cast %56 : vector<1x8x16xbf16> to vector<8x16xbf16>
    %58 = vector.shape_cast %55 : vector<8x16xbf16> to vector<1x8x16xbf16>
    tpu.vector_store %arg3[%c0_18, %c0_19, %c16], %58 {strides = array<i32>} : memref<2x8x128xbf16, #tpu.memory_space<vmem>>, vector<1x8x16xbf16>,
    %59 = vector.extract_strided_slice %30 {offsets = [2, 0, 0], sizes = [1, 8, 16], strides = [1, 1, 1]} : vector<8x8x16xf32> to vector<1x8x16xf32>
    %60 = vector.shape_cast %59 : vector<1x8x16xf32> to vector<8x16xf32>
    %cst_20 = arith.constant 0.000000e+00 : f32
    %61 = vector.broadcast %cst_20 : f32 to vector<8x16xf32>
    %62 = arith.cmpf ogt, %60, %61 : vector<8x16xf32>
    %cst_21 = arith.constant 0.000000e+00 : f32
    %63 = vector.broadcast %cst_21 : f32 to vector<8x16xf32>
    %64 = arith.minimumf %60, %63 : vector<8x16xf32>
    %65 = math.exp %64 : vector<8x16xf32>
    %cst_22 = arith.constant 1.000000e+00 : f32
    %66 = vector.broadcast %cst_22 : f32 to vector<8x16xf32>
    %67 = arith.subf %65, %66 : vector<8x16xf32>
    %68 = arith.select %62, %60, %67 : vector<8x16xi1>, vector<8x16xf32>
    %69 = arith.truncf %68 : vector<8x16xf32> to vector<8x16xbf16>
    %c0_23 = arith.constant 0 : index
    %c0_24 = arith.constant 0 : index
    %c32 = arith.constant 32 : index
    %70 = vector.load %arg3[%c0_23, %c0_24, %c32] : memref<2x8x128xbf16, #tpu.memory_space<vmem>>, vector<1x8x16xbf16>
    %71 = vector.shape_cast %70 : vector<1x8x16xbf16> to vector<8x16xbf16>
    %72 = vector.shape_cast %69 : vector<8x16xbf16> to vector<1x8x16xbf16>
    tpu.vector_store %arg3[%c0_23, %c0_24, %c32], %72 {strides = array<i32>} : memref<2x8x128xbf16, #tpu.memory_space<vmem>>, vector<1x8x16xbf16>,
    %73 = vector.extract_strided_slice %30 {offsets = [3, 0, 0], sizes = [1, 8, 16], strides = [1, 1, 1]} : vector<8x8x16xf32> to vector<1x8x16xf32>
    %74 = vector.shape_cast %73 : vector<1x8x16xf32> to vector<8x16xf32>
    %cst_25 = arith.constant 0.000000e+00 : f32
    %75 = vector.broadcast %cst_25 : f32 to vector<8x16xf32>
    %76 = arith.cmpf ogt, %74, %75 : vector<8x16xf32>
    %cst_26 = arith.constant 0.000000e+00 : f32
    %77 = vector.broadcast %cst_26 : f32 to vector<8x16xf32>
    %78 = arith.minimumf %74, %77 : vector<8x16xf32>
    %79 = math.exp %78 : vector<8x16xf32>
    %cst_27 = arith.constant 1.000000e+00 : f32
    %80 = vector.broadcast %cst_27 : f32 to vector<8x16xf32>
    %81 = arith.subf %79, %80 : vector<8x16xf32>
    %82 = arith.select %76, %74, %81 : vector<8x16xi1>, vector<8x16xf32>
    %83 = arith.truncf %82 : vector<8x16xf32> to vector<8x16xbf16>
    %c0_28 = arith.constant 0 : index
    %c0_29 = arith.constant 0 : index
    %c48 = arith.constant 48 : index
    %84 = vector.load %arg3[%c0_28, %c0_29, %c48] : memref<2x8x128xbf16, #tpu.memory_space<vmem>>, vector<1x8x16xbf16>
    %85 = vector.shape_cast %84 : vector<1x8x16xbf16> to vector<8x16xbf16>
    %86 = vector.shape_cast %83 : vector<8x16xbf16> to vector<1x8x16xbf16>
    tpu.vector_store %arg3[%c0_28, %c0_29, %c48], %86 {strides = array<i32>} : memref<2x8x128xbf16, #tpu.memory_space<vmem>>, vector<1x8x16xbf16>,
    %87 = vector.extract_strided_slice %30 {offsets = [4, 0, 0], sizes = [1, 8, 16], strides = [1, 1, 1]} : vector<8x8x16xf32> to vector<1x8x16xf32>
    %88 = vector.shape_cast %87 : vector<1x8x16xf32> to vector<8x16xf32>
    %cst_30 = arith.constant 0.000000e+00 : f32
    %89 = vector.broadcast %cst_30 : f32 to vector<8x16xf32>
    %90 = arith.cmpf ogt, %88, %89 : vector<8x16xf32>
    %cst_31 = arith.constant 0.000000e+00 : f32
    %91 = vector.broadcast %cst_31 : f32 to vector<8x16xf32>
    %92 = arith.minimumf %88, %91 : vector<8x16xf32>
    %93 = math.exp %92 : vector<8x16xf32>
    %cst_32 = arith.constant 1.000000e+00 : f32
    %94 = vector.broadcast %cst_32 : f32 to vector<8x16xf32>
    %95 = arith.subf %93, %94 : vector<8x16xf32>
    %96 = arith.select %90, %88, %95 : vector<8x16xi1>, vector<8x16xf32>
    %97 = arith.truncf %96 : vector<8x16xf32> to vector<8x16xbf16>
    %c0_33 = arith.constant 0 : index
    %c0_34 = arith.constant 0 : index
    %c64 = arith.constant 64 : index
    %98 = vector.load %arg3[%c0_33, %c0_34, %c64] : memref<2x8x128xbf16, #tpu.memory_space<vmem>>, vector<1x8x16xbf16>
    %99 = vector.shape_cast %98 : vector<1x8x16xbf16> to vector<8x16xbf16>
    %100 = vector.shape_cast %97 : vector<8x16xbf16> to vector<1x8x16xbf16>
    tpu.vector_store %arg3[%c0_33, %c0_34, %c64], %100 {strides = array<i32>} : memref<2x8x128xbf16, #tpu.memory_space<vmem>>, vector<1x8x16xbf16>,
    %101 = vector.extract_strided_slice %30 {offsets = [5, 0, 0], sizes = [1, 8, 16], strides = [1, 1, 1]} : vector<8x8x16xf32> to vector<1x8x16xf32>
    %102 = vector.shape_cast %101 : vector<1x8x16xf32> to vector<8x16xf32>
    %cst_35 = arith.constant 0.000000e+00 : f32
    %103 = vector.broadcast %cst_35 : f32 to vector<8x16xf32>
    %104 = arith.cmpf ogt, %102, %103 : vector<8x16xf32>
    %cst_36 = arith.constant 0.000000e+00 : f32
    %105 = vector.broadcast %cst_36 : f32 to vector<8x16xf32>
    %106 = arith.minimumf %102, %105 : vector<8x16xf32>
    %107 = math.exp %106 : vector<8x16xf32>
    %cst_37 = arith.constant 1.000000e+00 : f32
    %108 = vector.broadcast %cst_37 : f32 to vector<8x16xf32>
    %109 = arith.subf %107, %108 : vector<8x16xf32>
    %110 = arith.select %104, %102, %109 : vector<8x16xi1>, vector<8x16xf32>
    %111 = arith.truncf %110 : vector<8x16xf32> to vector<8x16xbf16>
    %c0_38 = arith.constant 0 : index
    %c0_39 = arith.constant 0 : index
    %c80 = arith.constant 80 : index
    %112 = vector.load %arg3[%c0_38, %c0_39, %c80] : memref<2x8x128xbf16, #tpu.memory_space<vmem>>, vector<1x8x16xbf16>
    %113 = vector.shape_cast %112 : vector<1x8x16xbf16> to vector<8x16xbf16>
    %114 = vector.shape_cast %111 : vector<8x16xbf16> to vector<1x8x16xbf16>
    tpu.vector_store %arg3[%c0_38, %c0_39, %c80], %114 {strides = array<i32>} : memref<2x8x128xbf16, #tpu.memory_space<vmem>>, vector<1x8x16xbf16>,
    %115 = vector.extract_strided_slice %30 {offsets = [6, 0, 0], sizes = [1, 8, 16], strides = [1, 1, 1]} : vector<8x8x16xf32> to vector<1x8x16xf32>
    %116 = vector.shape_cast %115 : vector<1x8x16xf32> to vector<8x16xf32>
    %cst_40 = arith.constant 0.000000e+00 : f32
    %117 = vector.broadcast %cst_40 : f32 to vector<8x16xf32>
    %118 = arith.cmpf ogt, %116, %117 : vector<8x16xf32>
    %cst_41 = arith.constant 0.000000e+00 : f32
    %119 = vector.broadcast %cst_41 : f32 to vector<8x16xf32>
    %120 = arith.minimumf %116, %119 : vector<8x16xf32>
    %121 = math.exp %120 : vector<8x16xf32>
    %cst_42 = arith.constant 1.000000e+00 : f32
    %122 = vector.broadcast %cst_42 : f32 to vector<8x16xf32>
    %123 = arith.subf %121, %122 : vector<8x16xf32>
    %124 = arith.select %118, %116, %123 : vector<8x16xi1>, vector<8x16xf32>
    %125 = arith.truncf %124 : vector<8x16xf32> to vector<8x16xbf16>
    %c0_43 = arith.constant 0 : index
    %c0_44 = arith.constant 0 : index
    %c96 = arith.constant 96 : index
    %126 = vector.load %arg3[%c0_43, %c0_44, %c96] : memref<2x8x128xbf16, #tpu.memory_space<vmem>>, vector<1x8x16xbf16>
    %127 = vector.shape_cast %126 : vector<1x8x16xbf16> to vector<8x16xbf16>
    %128 = vector.shape_cast %125 : vector<8x16xbf16> to vector<1x8x16xbf16>
    tpu.vector_store %arg3[%c0_43, %c0_44, %c96], %128 {strides = array<i32>} : memref<2x8x128xbf16, #tpu.memory_space<vmem>>, vector<1x8x16xbf16>,
    %129 = vector.extract_strided_slice %30 {offsets = [7, 0, 0], sizes = [1, 8, 16], strides = [1, 1, 1]} : vector<8x8x16xf32> to vector<1x8x16xf32>
    %130 = vector.shape_cast %129 : vector<1x8x16xf32> to vector<8x16xf32>
    %cst_45 = arith.constant 0.000000e+00 : f32
    %131 = vector.broadcast %cst_45 : f32 to vector<8x16xf32>
    %132 = arith.cmpf ogt, %130, %131 : vector<8x16xf32>
    %cst_46 = arith.constant 0.000000e+00 : f32
    %133 = vector.broadcast %cst_46 : f32 to vector<8x16xf32>
    %134 = arith.minimumf %130, %133 : vector<8x16xf32>
    %135 = math.exp %134 : vector<8x16xf32>
    %cst_47 = arith.constant 1.000000e+00 : f32
    %136 = vector.broadcast %cst_47 : f32 to vector<8x16xf32>
    %137 = arith.subf %135, %136 : vector<8x16xf32>
    %138 = arith.select %132, %130, %137 : vector<8x16xi1>, vector<8x16xf32>
    %139 = arith.truncf %138 : vector<8x16xf32> to vector<8x16xbf16>
    %c0_48 = arith.constant 0 : index
    %c0_49 = arith.constant 0 : index
    %c112 = arith.constant 112 : index
    %140 = vector.load %arg3[%c0_48, %c0_49, %c112] : memref<2x8x128xbf16, #tpu.memory_space<vmem>>, vector<1x8x16xbf16>
    %141 = vector.shape_cast %140 : vector<1x8x16xbf16> to vector<8x16xbf16>
    %142 = vector.shape_cast %139 : vector<8x16xbf16> to vector<1x8x16xbf16>
    tpu.vector_store %arg3[%c0_48, %c0_49, %c112], %142 {strides = array<i32>} : memref<2x8x128xbf16, #tpu.memory_space<vmem>>, vector<1x8x16xbf16>,
    %c1 = arith.constant 1 : index
    %c0_50 = arith.constant 0 : index
    %c0_51 = arith.constant 0 : index
    %143 = vector.load %arg1[%c1, %c0_50, %c0_51] : memref<2x8x3xbf16, #tpu.memory_space<vmem>>, vector<1x8x3xbf16>
    %144 = vector.shape_cast %143 : vector<1x8x3xbf16> to vector<8x3xbf16>
    %cst_52 = arith.constant dense<0.000000e+00> : vector<144x8xf32>
    %145 = tpu.matmul %0, %144, %cst_52 {dimension_numbers = #tpu.dot_dimension_numbers<[1], [1], [0], [0], [0, 0, 1, 0], [], []>} : vector<144x3xbf16>, vector<8x3xbf16>, vector<144x8xf32> -> vector<144x8xf32>
    %146 = vector.extract_strided_slice %145 {offsets = [0, 0], sizes = [128, 8], strides = [1, 1]} : vector<144x8xf32> to vector<128x8xf32>
    %147 = arith.truncf %146 : vector<128x8xf32> to vector<128x8xbf16>
    %148 = vector.shape_cast %147 : vector<128x8xbf16> to vector<8x16x8xbf16>
    %149 = vector.extract_strided_slice %145 {offsets = [128, 0], sizes = [8, 8], strides = [1, 1]} : vector<144x8xf32> to vector<8x8xf32>
    %150 = vector.extract_strided_slice %145 {offsets = [136, 0], sizes = [8, 8], strides = [1, 1]} : vector<144x8xf32> to vector<8x8xf32>
    %151 = vector.shape_cast %149 : vector<8x8xf32> to vector<8x8x1xf32>
    %152 = vector.shape_cast %150 : vector<8x8xf32> to vector<8x1x8xf32>
    %153 = vector.broadcast %151 : vector<8x8x1xf32> to vector<8x8x8xf32>
    %154 = vector.broadcast %152 : vector<8x1x8xf32> to vector<8x8x8xf32>
    %155 = arith.addf %153, %154 : vector<8x8x8xf32>
    %cst_53 = arith.constant 0.000000e+00 : f32
    %156 = vector.broadcast %cst_53 : f32 to vector<8x8x8xf32>
    %157 = arith.cmpf oge, %155, %156 : vector<8x8x8xf32>
    %cst_54 = arith.constant 2.000000e-01 : f32
    %158 = vector.broadcast %cst_54 : f32 to vector<8x8x8xf32>
    %159 = arith.mulf %158, %155 : vector<8x8x8xf32>
    %160 = arith.select %157, %155, %159 : vector<8x8x8xi1>, vector<8x8x8xf32>
    %cst_55 = arith.constant dense<0xFF800000> : vector<8x8xf32>
    %161 = vector.multi_reduction <maximumf>, %160, %cst_55 [2] : vector<8x8x8xf32> to vector<8x8xf32>
    %162 = vector.shape_cast %161 : vector<8x8xf32> to vector<8x8x1xf32>
    %163 = vector.broadcast %162 : vector<8x8x1xf32> to vector<8x8x8xf32>
    %164 = arith.subf %160, %163 : vector<8x8x8xf32>
    %165 = math.exp %164 : vector<8x8x8xf32>
    %cst_56 = arith.constant dense<0.000000e+00> : vector<8x8xf32>
    %166 = vector.multi_reduction <add>, %165, %cst_56 [2] : vector<8x8x8xf32> to vector<8x8xf32>
    %167 = vector.shape_cast %166 : vector<8x8xf32> to vector<8x8x1xf32>
    %168 = tpu.reciprocal %167 {approx = true} : vector<8x8x1xf32> -> vector<8x8x1xf32>
    %169 = vector.broadcast %168 : vector<8x8x1xf32> to vector<8x8x8xf32>
    %170 = arith.mulf %165, %169 : vector<8x8x8xf32>
    %171 = arith.truncf %170 : vector<8x8x8xf32> to vector<8x8x8xbf16>
    %cst_57 = arith.constant dense<0.000000e+00> : vector<8x8x16xf32>
    %172 = tpu.matmul %171, %148, %cst_57 {dimension_numbers = #tpu.dot_dimension_numbers<[2], [2], [1], [1], [0, 0, 0, 1, 1, 1], [0], [0]>} : vector<8x8x8xbf16>, vector<8x16x8xbf16>, vector<8x8x16xf32> -> vector<8x8x16xf32>
    %173 = vector.extract_strided_slice %172 {offsets = [0, 0, 0], sizes = [1, 8, 16], strides = [1, 1, 1]} : vector<8x8x16xf32> to vector<1x8x16xf32>
    %174 = vector.shape_cast %173 : vector<1x8x16xf32> to vector<8x16xf32>
    %cst_58 = arith.constant 0.000000e+00 : f32
    %175 = vector.broadcast %cst_58 : f32 to vector<8x16xf32>
    %176 = arith.cmpf ogt, %174, %175 : vector<8x16xf32>
    %cst_59 = arith.constant 0.000000e+00 : f32
    %177 = vector.broadcast %cst_59 : f32 to vector<8x16xf32>
    %178 = arith.minimumf %174, %177 : vector<8x16xf32>
    %179 = math.exp %178 : vector<8x16xf32>
    %cst_60 = arith.constant 1.000000e+00 : f32
    %180 = vector.broadcast %cst_60 : f32 to vector<8x16xf32>
    %181 = arith.subf %179, %180 : vector<8x16xf32>
    %182 = arith.select %176, %174, %181 : vector<8x16xi1>, vector<8x16xf32>
    %183 = arith.truncf %182 : vector<8x16xf32> to vector<8x16xbf16>
    %c1_61 = arith.constant 1 : index
    %c0_62 = arith.constant 0 : index
    %c0_63 = arith.constant 0 : index
    %184 = vector.load %arg3[%c1_61, %c0_62, %c0_63] : memref<2x8x128xbf16, #tpu.memory_space<vmem>>, vector<1x8x16xbf16>
    %185 = vector.shape_cast %184 : vector<1x8x16xbf16> to vector<8x16xbf16>
    %186 = vector.shape_cast %183 : vector<8x16xbf16> to vector<1x8x16xbf16>
    tpu.vector_store %arg3[%c1_61, %c0_62, %c0_63], %186 {strides = array<i32>} : memref<2x8x128xbf16, #tpu.memory_space<vmem>>, vector<1x8x16xbf16>,
    %187 = vector.extract_strided_slice %172 {offsets = [1, 0, 0], sizes = [1, 8, 16], strides = [1, 1, 1]} : vector<8x8x16xf32> to vector<1x8x16xf32>
    %188 = vector.shape_cast %187 : vector<1x8x16xf32> to vector<8x16xf32>
    %cst_64 = arith.constant 0.000000e+00 : f32
    %189 = vector.broadcast %cst_64 : f32 to vector<8x16xf32>
    %190 = arith.cmpf ogt, %188, %189 : vector<8x16xf32>
    %cst_65 = arith.constant 0.000000e+00 : f32
    %191 = vector.broadcast %cst_65 : f32 to vector<8x16xf32>
    %192 = arith.minimumf %188, %191 : vector<8x16xf32>
    %193 = math.exp %192 : vector<8x16xf32>
    %cst_66 = arith.constant 1.000000e+00 : f32
    %194 = vector.broadcast %cst_66 : f32 to vector<8x16xf32>
    %195 = arith.subf %193, %194 : vector<8x16xf32>
    %196 = arith.select %190, %188, %195 : vector<8x16xi1>, vector<8x16xf32>
    %197 = arith.truncf %196 : vector<8x16xf32> to vector<8x16xbf16>
    %c1_67 = arith.constant 1 : index
    %c0_68 = arith.constant 0 : index
    %c16_69 = arith.constant 16 : index
    %198 = vector.load %arg3[%c1_67, %c0_68, %c16_69] : memref<2x8x128xbf16, #tpu.memory_space<vmem>>, vector<1x8x16xbf16>
    %199 = vector.shape_cast %198 : vector<1x8x16xbf16> to vector<8x16xbf16>
    %200 = vector.shape_cast %197 : vector<8x16xbf16> to vector<1x8x16xbf16>
    tpu.vector_store %arg3[%c1_67, %c0_68, %c16_69], %200 {strides = array<i32>} : memref<2x8x128xbf16, #tpu.memory_space<vmem>>, vector<1x8x16xbf16>,
    %201 = vector.extract_strided_slice %172 {offsets = [2, 0, 0], sizes = [1, 8, 16], strides = [1, 1, 1]} : vector<8x8x16xf32> to vector<1x8x16xf32>
    %202 = vector.shape_cast %201 : vector<1x8x16xf32> to vector<8x16xf32>
    %cst_70 = arith.constant 0.000000e+00 : f32
    %203 = vector.broadcast %cst_70 : f32 to vector<8x16xf32>
    %204 = arith.cmpf ogt, %202, %203 : vector<8x16xf32>
    %cst_71 = arith.constant 0.000000e+00 : f32
    %205 = vector.broadcast %cst_71 : f32 to vector<8x16xf32>
    %206 = arith.minimumf %202, %205 : vector<8x16xf32>
    %207 = math.exp %206 : vector<8x16xf32>
    %cst_72 = arith.constant 1.000000e+00 : f32
    %208 = vector.broadcast %cst_72 : f32 to vector<8x16xf32>
    %209 = arith.subf %207, %208 : vector<8x16xf32>
    %210 = arith.select %204, %202, %209 : vector<8x16xi1>, vector<8x16xf32>
    %211 = arith.truncf %210 : vector<8x16xf32> to vector<8x16xbf16>
    %c1_73 = arith.constant 1 : index
    %c0_74 = arith.constant 0 : index
    %c32_75 = arith.constant 32 : index
    %212 = vector.load %arg3[%c1_73, %c0_74, %c32_75] : memref<2x8x128xbf16, #tpu.memory_space<vmem>>, vector<1x8x16xbf16>
    %213 = vector.shape_cast %212 : vector<1x8x16xbf16> to vector<8x16xbf16>
    %214 = vector.shape_cast %211 : vector<8x16xbf16> to vector<1x8x16xbf16>
    tpu.vector_store %arg3[%c1_73, %c0_74, %c32_75], %214 {strides = array<i32>} : memref<2x8x128xbf16, #tpu.memory_space<vmem>>, vector<1x8x16xbf16>,
    %215 = vector.extract_strided_slice %172 {offsets = [3, 0, 0], sizes = [1, 8, 16], strides = [1, 1, 1]} : vector<8x8x16xf32> to vector<1x8x16xf32>
    %216 = vector.shape_cast %215 : vector<1x8x16xf32> to vector<8x16xf32>
    %cst_76 = arith.constant 0.000000e+00 : f32
    %217 = vector.broadcast %cst_76 : f32 to vector<8x16xf32>
    %218 = arith.cmpf ogt, %216, %217 : vector<8x16xf32>
    %cst_77 = arith.constant 0.000000e+00 : f32
    %219 = vector.broadcast %cst_77 : f32 to vector<8x16xf32>
    %220 = arith.minimumf %216, %219 : vector<8x16xf32>
    %221 = math.exp %220 : vector<8x16xf32>
    %cst_78 = arith.constant 1.000000e+00 : f32
    %222 = vector.broadcast %cst_78 : f32 to vector<8x16xf32>
    %223 = arith.subf %221, %222 : vector<8x16xf32>
    %224 = arith.select %218, %216, %223 : vector<8x16xi1>, vector<8x16xf32>
    %225 = arith.truncf %224 : vector<8x16xf32> to vector<8x16xbf16>
    %c1_79 = arith.constant 1 : index
    %c0_80 = arith.constant 0 : index
    %c48_81 = arith.constant 48 : index
    %226 = vector.load %arg3[%c1_79, %c0_80, %c48_81] : memref<2x8x128xbf16, #tpu.memory_space<vmem>>, vector<1x8x16xbf16>
    %227 = vector.shape_cast %226 : vector<1x8x16xbf16> to vector<8x16xbf16>
    %228 = vector.shape_cast %225 : vector<8x16xbf16> to vector<1x8x16xbf16>
    tpu.vector_store %arg3[%c1_79, %c0_80, %c48_81], %228 {strides = array<i32>} : memref<2x8x128xbf16, #tpu.memory_space<vmem>>, vector<1x8x16xbf16>,
    %229 = vector.extract_strided_slice %172 {offsets = [4, 0, 0], sizes = [1, 8, 16], strides = [1, 1, 1]} : vector<8x8x16xf32> to vector<1x8x16xf32>
    %230 = vector.shape_cast %229 : vector<1x8x16xf32> to vector<8x16xf32>
    %cst_82 = arith.constant 0.000000e+00 : f32
    %231 = vector.broadcast %cst_82 : f32 to vector<8x16xf32>
    %232 = arith.cmpf ogt, %230, %231 : vector<8x16xf32>
    %cst_83 = arith.constant 0.000000e+00 : f32
    %233 = vector.broadcast %cst_83 : f32 to vector<8x16xf32>
    %234 = arith.minimumf %230, %233 : vector<8x16xf32>
    %235 = math.exp %234 : vector<8x16xf32>
    %cst_84 = arith.constant 1.000000e+00 : f32
    %236 = vector.broadcast %cst_84 : f32 to vector<8x16xf32>
    %237 = arith.subf %235, %236 : vector<8x16xf32>
    %238 = arith.select %232, %230, %237 : vector<8x16xi1>, vector<8x16xf32>
    %239 = arith.truncf %238 : vector<8x16xf32> to vector<8x16xbf16>
    %c1_85 = arith.constant 1 : index
    %c0_86 = arith.constant 0 : index
    %c64_87 = arith.constant 64 : index
    %240 = vector.load %arg3[%c1_85, %c0_86, %c64_87] : memref<2x8x128xbf16, #tpu.memory_space<vmem>>, vector<1x8x16xbf16>
    %241 = vector.shape_cast %240 : vector<1x8x16xbf16> to vector<8x16xbf16>
    %242 = vector.shape_cast %239 : vector<8x16xbf16> to vector<1x8x16xbf16>
    tpu.vector_store %arg3[%c1_85, %c0_86, %c64_87], %242 {strides = array<i32>} : memref<2x8x128xbf16, #tpu.memory_space<vmem>>, vector<1x8x16xbf16>,
    %243 = vector.extract_strided_slice %172 {offsets = [5, 0, 0], sizes = [1, 8, 16], strides = [1, 1, 1]} : vector<8x8x16xf32> to vector<1x8x16xf32>
    %244 = vector.shape_cast %243 : vector<1x8x16xf32> to vector<8x16xf32>
    %cst_88 = arith.constant 0.000000e+00 : f32
    %245 = vector.broadcast %cst_88 : f32 to vector<8x16xf32>
    %246 = arith.cmpf ogt, %244, %245 : vector<8x16xf32>
    %cst_89 = arith.constant 0.000000e+00 : f32
    %247 = vector.broadcast %cst_89 : f32 to vector<8x16xf32>
    %248 = arith.minimumf %244, %247 : vector<8x16xf32>
    %249 = math.exp %248 : vector<8x16xf32>
    %cst_90 = arith.constant 1.000000e+00 : f32
    %250 = vector.broadcast %cst_90 : f32 to vector<8x16xf32>
    %251 = arith.subf %249, %250 : vector<8x16xf32>
    %252 = arith.select %246, %244, %251 : vector<8x16xi1>, vector<8x16xf32>
    %253 = arith.truncf %252 : vector<8x16xf32> to vector<8x16xbf16>
    %c1_91 = arith.constant 1 : index
    %c0_92 = arith.constant 0 : index
    %c80_93 = arith.constant 80 : index
    %254 = vector.load %arg3[%c1_91, %c0_92, %c80_93] : memref<2x8x128xbf16, #tpu.memory_space<vmem>>, vector<1x8x16xbf16>
    %255 = vector.shape_cast %254 : vector<1x8x16xbf16> to vector<8x16xbf16>
    %256 = vector.shape_cast %253 : vector<8x16xbf16> to vector<1x8x16xbf16>
    tpu.vector_store %arg3[%c1_91, %c0_92, %c80_93], %256 {strides = array<i32>} : memref<2x8x128xbf16, #tpu.memory_space<vmem>>, vector<1x8x16xbf16>,
    %257 = vector.extract_strided_slice %172 {offsets = [6, 0, 0], sizes = [1, 8, 16], strides = [1, 1, 1]} : vector<8x8x16xf32> to vector<1x8x16xf32>
    %258 = vector.shape_cast %257 : vector<1x8x16xf32> to vector<8x16xf32>
    %cst_94 = arith.constant 0.000000e+00 : f32
    %259 = vector.broadcast %cst_94 : f32 to vector<8x16xf32>
    %260 = arith.cmpf ogt, %258, %259 : vector<8x16xf32>
    %cst_95 = arith.constant 0.000000e+00 : f32
    %261 = vector.broadcast %cst_95 : f32 to vector<8x16xf32>
    %262 = arith.minimumf %258, %261 : vector<8x16xf32>
    %263 = math.exp %262 : vector<8x16xf32>
    %cst_96 = arith.constant 1.000000e+00 : f32
    %264 = vector.broadcast %cst_96 : f32 to vector<8x16xf32>
    %265 = arith.subf %263, %264 : vector<8x16xf32>
    %266 = arith.select %260, %258, %265 : vector<8x16xi1>, vector<8x16xf32>
    %267 = arith.truncf %266 : vector<8x16xf32> to vector<8x16xbf16>
    %c1_97 = arith.constant 1 : index
    %c0_98 = arith.constant 0 : index
    %c96_99 = arith.constant 96 : index
    %268 = vector.load %arg3[%c1_97, %c0_98, %c96_99] : memref<2x8x128xbf16, #tpu.memory_space<vmem>>, vector<1x8x16xbf16>
    %269 = vector.shape_cast %268 : vector<1x8x16xbf16> to vector<8x16xbf16>
    %270 = vector.shape_cast %267 : vector<8x16xbf16> to vector<1x8x16xbf16>
    tpu.vector_store %arg3[%c1_97, %c0_98, %c96_99], %270 {strides = array<i32>} : memref<2x8x128xbf16, #tpu.memory_space<vmem>>, vector<1x8x16xbf16>,
    %271 = vector.extract_strided_slice %172 {offsets = [7, 0, 0], sizes = [1, 8, 16], strides = [1, 1, 1]} : vector<8x8x16xf32> to vector<1x8x16xf32>
    %272 = vector.shape_cast %271 : vector<1x8x16xf32> to vector<8x16xf32>
    %cst_100 = arith.constant 0.000000e+00 : f32
    %273 = vector.broadcast %cst_100 : f32 to vector<8x16xf32>
    %274 = arith.cmpf ogt, %272, %273 : vector<8x16xf32>
    %cst_101 = arith.constant 0.000000e+00 : f32
    %275 = vector.broadcast %cst_101 : f32 to vector<8x16xf32>
    %276 = arith.minimumf %272, %275 : vector<8x16xf32>
    %277 = math.exp %276 : vector<8x16xf32>
    %cst_102 = arith.constant 1.000000e+00 : f32
    %278 = vector.broadcast %cst_102 : f32 to vector<8x16xf32>
    %279 = arith.subf %277, %278 : vector<8x16xf32>
    %280 = arith.select %274, %272, %279 : vector<8x16xi1>, vector<8x16xf32>
    %281 = arith.truncf %280 : vector<8x16xf32> to vector<8x16xbf16>
    %c1_103 = arith.constant 1 : index
    %c0_104 = arith.constant 0 : index
    %c112_105 = arith.constant 112 : index
    %282 = vector.load %arg3[%c1_103, %c0_104, %c112_105] : memref<2x8x128xbf16, #tpu.memory_space<vmem>>, vector<1x8x16xbf16>
    %283 = vector.shape_cast %282 : vector<1x8x16xbf16> to vector<8x16xbf16>
    %284 = vector.shape_cast %281 : vector<8x16xbf16> to vector<1x8x16xbf16>
    tpu.vector_store %arg3[%c1_103, %c0_104, %c112_105], %284 {strides = array<i32>} : memref<2x8x128xbf16, #tpu.memory_space<vmem>>, vector<1x8x16xbf16>,
    return
  }
  func.func @transform_0(%arg0: i32) -> (i32, i32, i32) {
    %c0_i32 = arith.constant 0 : i32
    %c0_i32_0 = arith.constant 0 : i32
    %c0_i32_1 = arith.constant 0 : i32
    return %arg0, %c0_i32, %c0_i32_0 : i32, i32, i32
  }
  func.func @transform_1(%arg0: i32) -> (i32, i32) {
    %c0_i32 = arith.constant 0 : i32
    %c0_i32_0 = arith.constant 0 : i32
    %c0_i32_1 = arith.constant 0 : i32
    return %c0_i32, %c0_i32_0 : i32, i32
  }
  func.func @transform_2(%arg0: i32) -> (i32, i32, i32) {
    %c0_i32 = arith.constant 0 : i32
    %c0_i32_0 = arith.constant 0 : i32
    %c0_i32_1 = arith.constant 0 : i32
    return %arg0, %c0_i32, %c0_i32_0 : i32, i32, i32
  }
}

module attributes {stable_mosaic.version = 11 : i64} {
  func.func @_gat_pooled_kernel(%arg0: i32, %arg1: memref<2x8x128xbf16, #tpu.memory_space<vmem>>, %arg2: memref<528x128xbf16, #tpu.memory_space<vmem>>, %arg3: memref<2x8x64xf32, #tpu.memory_space<vmem>>) attributes {dimension_semantics = [#tpu.dimension_semantics<parallel>], iteration_bounds = array<i64: 1>, scalar_prefetch = 0 : i64, scratch_operands = 0 : i64, tpu.core_type = #tpu.core_type<tc>, window_params = [{transform_indices = @transform_0, window_bounds = array<i64: 2, 8, 128>}, {pipeline_mode = #tpu.pipeline_mode<synchronous>, transform_indices = @transform_1, window_bounds = array<i64: 528, 128>}, {transform_indices = @transform_2, window_bounds = array<i64: 2, 8, 64>}]} {
    %c0 = arith.constant 0 : index
    %c0_0 = arith.constant 0 : index
    %0 = vector.load %arg2[%c0, %c0_0] : memref<528x128xbf16, #tpu.memory_space<vmem>>, vector<528x128xbf16>
    %c0_1 = arith.constant 0 : index
    %c0_2 = arith.constant 0 : index
    %c0_3 = arith.constant 0 : index
    %1 = vector.load %arg1[%c0_1, %c0_2, %c0_3] : memref<2x8x128xbf16, #tpu.memory_space<vmem>>, vector<1x8x128xbf16>
    %2 = vector.shape_cast %1 : vector<1x8x128xbf16> to vector<8x128xbf16>
    %cst = arith.constant dense<0.000000e+00> : vector<528x8xf32>
    %3 = tpu.matmul %0, %2, %cst {dimension_numbers = #tpu.dot_dimension_numbers<[1], [1], [0], [0], [0, 0, 1, 0], [], []>} : vector<528x128xbf16>, vector<8x128xbf16>, vector<528x8xf32> -> vector<528x8xf32>
    %4 = vector.extract_strided_slice %3 {offsets = [0, 0], sizes = [512, 8], strides = [1, 1]} : vector<528x8xf32> to vector<512x8xf32>
    %5 = arith.truncf %4 : vector<512x8xf32> to vector<512x8xbf16>
    %6 = vector.shape_cast %5 : vector<512x8xbf16> to vector<8x64x8xbf16>
    %7 = vector.extract_strided_slice %3 {offsets = [512, 0], sizes = [8, 8], strides = [1, 1]} : vector<528x8xf32> to vector<8x8xf32>
    %8 = vector.extract_strided_slice %3 {offsets = [520, 0], sizes = [8, 8], strides = [1, 1]} : vector<528x8xf32> to vector<8x8xf32>
    %9 = vector.shape_cast %7 : vector<8x8xf32> to vector<8x8x1xf32>
    %10 = vector.shape_cast %8 : vector<8x8xf32> to vector<8x1x8xf32>
    %11 = vector.broadcast %9 : vector<8x8x1xf32> to vector<8x8x8xf32>
    %12 = vector.broadcast %10 : vector<8x1x8xf32> to vector<8x8x8xf32>
    %13 = arith.addf %11, %12 : vector<8x8x8xf32>
    %cst_4 = arith.constant 0.000000e+00 : f32
    %14 = vector.broadcast %cst_4 : f32 to vector<8x8x8xf32>
    %15 = arith.cmpf oge, %13, %14 : vector<8x8x8xf32>
    %cst_5 = arith.constant 2.000000e-01 : f32
    %16 = vector.broadcast %cst_5 : f32 to vector<8x8x8xf32>
    %17 = arith.mulf %16, %13 : vector<8x8x8xf32>
    %18 = arith.select %15, %13, %17 : vector<8x8x8xi1>, vector<8x8x8xf32>
    %cst_6 = arith.constant dense<0xFF800000> : vector<8x8xf32>
    %19 = vector.multi_reduction <maximumf>, %18, %cst_6 [2] : vector<8x8x8xf32> to vector<8x8xf32>
    %20 = vector.shape_cast %19 : vector<8x8xf32> to vector<8x8x1xf32>
    %21 = vector.broadcast %20 : vector<8x8x1xf32> to vector<8x8x8xf32>
    %22 = arith.subf %18, %21 : vector<8x8x8xf32>
    %23 = math.exp %22 : vector<8x8x8xf32>
    %cst_7 = arith.constant dense<0.000000e+00> : vector<8x8xf32>
    %24 = vector.multi_reduction <add>, %23, %cst_7 [2] : vector<8x8x8xf32> to vector<8x8xf32>
    %25 = vector.shape_cast %24 : vector<8x8xf32> to vector<8x8x1xf32>
    %26 = tpu.reciprocal %25 {approx = true} : vector<8x8x1xf32> -> vector<8x8x1xf32>
    %27 = vector.broadcast %26 : vector<8x8x1xf32> to vector<8x8x8xf32>
    %28 = arith.mulf %23, %27 : vector<8x8x8xf32>
    %29 = arith.truncf %28 : vector<8x8x8xf32> to vector<8x8x8xbf16>
    %cst_8 = arith.constant dense<0.000000e+00> : vector<8x8x64xf32>
    %30 = tpu.matmul %29, %6, %cst_8 {dimension_numbers = #tpu.dot_dimension_numbers<[2], [2], [1], [1], [0, 0, 0, 1, 1, 1], [0], [0]>} : vector<8x8x8xbf16>, vector<8x64x8xbf16>, vector<8x8x64xf32> -> vector<8x8x64xf32>
    %cst_9 = arith.constant 0.000000e+00 : f32
    %31 = vector.broadcast %cst_9 : f32 to vector<8x8x64xf32>
    %32 = arith.cmpf ogt, %30, %31 : vector<8x8x64xf32>
    %cst_10 = arith.constant 0.000000e+00 : f32
    %33 = vector.broadcast %cst_10 : f32 to vector<8x8x64xf32>
    %34 = arith.minimumf %30, %33 : vector<8x8x64xf32>
    %35 = math.exp %34 : vector<8x8x64xf32>
    %cst_11 = arith.constant 1.000000e+00 : f32
    %36 = vector.broadcast %cst_11 : f32 to vector<8x8x64xf32>
    %37 = arith.subf %35, %36 : vector<8x8x64xf32>
    %38 = arith.select %32, %30, %37 : vector<8x8x64xi1>, vector<8x8x64xf32>
    %cst_12 = arith.constant dense<0.000000e+00> : vector<8x64xf32>
    %39 = vector.multi_reduction <add>, %38, %cst_12 [1] : vector<8x8x64xf32> to vector<8x64xf32>
    %cst_13 = arith.constant 1.250000e-01 : f32
    %40 = vector.broadcast %cst_13 : f32 to vector<8x64xf32>
    %41 = arith.mulf %39, %40 : vector<8x64xf32>
    %c0_14 = arith.constant 0 : index
    %c0_15 = arith.constant 0 : index
    %c0_16 = arith.constant 0 : index
    %42 = vector.load %arg3[%c0_14, %c0_15, %c0_16] : memref<2x8x64xf32, #tpu.memory_space<vmem>>, vector<1x8x64xf32>
    %43 = vector.shape_cast %42 : vector<1x8x64xf32> to vector<8x64xf32>
    %44 = vector.shape_cast %41 : vector<8x64xf32> to vector<1x8x64xf32>
    tpu.vector_store %arg3[%c0_14, %c0_15, %c0_16], %44 {strides = array<i32>} : memref<2x8x64xf32, #tpu.memory_space<vmem>>, vector<1x8x64xf32>,
    %c1 = arith.constant 1 : index
    %c0_17 = arith.constant 0 : index
    %c0_18 = arith.constant 0 : index
    %45 = vector.load %arg1[%c1, %c0_17, %c0_18] : memref<2x8x128xbf16, #tpu.memory_space<vmem>>, vector<1x8x128xbf16>
    %46 = vector.shape_cast %45 : vector<1x8x128xbf16> to vector<8x128xbf16>
    %cst_19 = arith.constant dense<0.000000e+00> : vector<528x8xf32>
    %47 = tpu.matmul %0, %46, %cst_19 {dimension_numbers = #tpu.dot_dimension_numbers<[1], [1], [0], [0], [0, 0, 1, 0], [], []>} : vector<528x128xbf16>, vector<8x128xbf16>, vector<528x8xf32> -> vector<528x8xf32>
    %48 = vector.extract_strided_slice %47 {offsets = [0, 0], sizes = [512, 8], strides = [1, 1]} : vector<528x8xf32> to vector<512x8xf32>
    %49 = arith.truncf %48 : vector<512x8xf32> to vector<512x8xbf16>
    %50 = vector.shape_cast %49 : vector<512x8xbf16> to vector<8x64x8xbf16>
    %51 = vector.extract_strided_slice %47 {offsets = [512, 0], sizes = [8, 8], strides = [1, 1]} : vector<528x8xf32> to vector<8x8xf32>
    %52 = vector.extract_strided_slice %47 {offsets = [520, 0], sizes = [8, 8], strides = [1, 1]} : vector<528x8xf32> to vector<8x8xf32>
    %53 = vector.shape_cast %51 : vector<8x8xf32> to vector<8x8x1xf32>
    %54 = vector.shape_cast %52 : vector<8x8xf32> to vector<8x1x8xf32>
    %55 = vector.broadcast %53 : vector<8x8x1xf32> to vector<8x8x8xf32>
    %56 = vector.broadcast %54 : vector<8x1x8xf32> to vector<8x8x8xf32>
    %57 = arith.addf %55, %56 : vector<8x8x8xf32>
    %cst_20 = arith.constant 0.000000e+00 : f32
    %58 = vector.broadcast %cst_20 : f32 to vector<8x8x8xf32>
    %59 = arith.cmpf oge, %57, %58 : vector<8x8x8xf32>
    %cst_21 = arith.constant 2.000000e-01 : f32
    %60 = vector.broadcast %cst_21 : f32 to vector<8x8x8xf32>
    %61 = arith.mulf %60, %57 : vector<8x8x8xf32>
    %62 = arith.select %59, %57, %61 : vector<8x8x8xi1>, vector<8x8x8xf32>
    %cst_22 = arith.constant dense<0xFF800000> : vector<8x8xf32>
    %63 = vector.multi_reduction <maximumf>, %62, %cst_22 [2] : vector<8x8x8xf32> to vector<8x8xf32>
    %64 = vector.shape_cast %63 : vector<8x8xf32> to vector<8x8x1xf32>
    %65 = vector.broadcast %64 : vector<8x8x1xf32> to vector<8x8x8xf32>
    %66 = arith.subf %62, %65 : vector<8x8x8xf32>
    %67 = math.exp %66 : vector<8x8x8xf32>
    %cst_23 = arith.constant dense<0.000000e+00> : vector<8x8xf32>
    %68 = vector.multi_reduction <add>, %67, %cst_23 [2] : vector<8x8x8xf32> to vector<8x8xf32>
    %69 = vector.shape_cast %68 : vector<8x8xf32> to vector<8x8x1xf32>
    %70 = tpu.reciprocal %69 {approx = true} : vector<8x8x1xf32> -> vector<8x8x1xf32>
    %71 = vector.broadcast %70 : vector<8x8x1xf32> to vector<8x8x8xf32>
    %72 = arith.mulf %67, %71 : vector<8x8x8xf32>
    %73 = arith.truncf %72 : vector<8x8x8xf32> to vector<8x8x8xbf16>
    %cst_24 = arith.constant dense<0.000000e+00> : vector<8x8x64xf32>
    %74 = tpu.matmul %73, %50, %cst_24 {dimension_numbers = #tpu.dot_dimension_numbers<[2], [2], [1], [1], [0, 0, 0, 1, 1, 1], [0], [0]>} : vector<8x8x8xbf16>, vector<8x64x8xbf16>, vector<8x8x64xf32> -> vector<8x8x64xf32>
    %cst_25 = arith.constant 0.000000e+00 : f32
    %75 = vector.broadcast %cst_25 : f32 to vector<8x8x64xf32>
    %76 = arith.cmpf ogt, %74, %75 : vector<8x8x64xf32>
    %cst_26 = arith.constant 0.000000e+00 : f32
    %77 = vector.broadcast %cst_26 : f32 to vector<8x8x64xf32>
    %78 = arith.minimumf %74, %77 : vector<8x8x64xf32>
    %79 = math.exp %78 : vector<8x8x64xf32>
    %cst_27 = arith.constant 1.000000e+00 : f32
    %80 = vector.broadcast %cst_27 : f32 to vector<8x8x64xf32>
    %81 = arith.subf %79, %80 : vector<8x8x64xf32>
    %82 = arith.select %76, %74, %81 : vector<8x8x64xi1>, vector<8x8x64xf32>
    %cst_28 = arith.constant dense<0.000000e+00> : vector<8x64xf32>
    %83 = vector.multi_reduction <add>, %82, %cst_28 [1] : vector<8x8x64xf32> to vector<8x64xf32>
    %cst_29 = arith.constant 1.250000e-01 : f32
    %84 = vector.broadcast %cst_29 : f32 to vector<8x64xf32>
    %85 = arith.mulf %83, %84 : vector<8x64xf32>
    %c1_30 = arith.constant 1 : index
    %c0_31 = arith.constant 0 : index
    %c0_32 = arith.constant 0 : index
    %86 = vector.load %arg3[%c1_30, %c0_31, %c0_32] : memref<2x8x64xf32, #tpu.memory_space<vmem>>, vector<1x8x64xf32>
    %87 = vector.shape_cast %86 : vector<1x8x64xf32> to vector<8x64xf32>
    %88 = vector.shape_cast %85 : vector<8x64xf32> to vector<1x8x64xf32>
    tpu.vector_store %arg3[%c1_30, %c0_31, %c0_32], %88 {strides = array<i32>} : memref<2x8x64xf32, #tpu.memory_space<vmem>>, vector<1x8x64xf32>,
    return
  }
  func.func @transform_0(%arg0: i32) -> (i32, i32, i32) {
    %c0_i32 = arith.constant 0 : i32
    %c0_i32_0 = arith.constant 0 : i32
    %c0_i32_1 = arith.constant 0 : i32
    return %arg0, %c0_i32, %c0_i32_0 : i32, i32, i32
  }
  func.func @transform_1(%arg0: i32) -> (i32, i32) {
    %c0_i32 = arith.constant 0 : i32
    %c0_i32_0 = arith.constant 0 : i32
    %c0_i32_1 = arith.constant 0 : i32
    return %c0_i32, %c0_i32_0 : i32, i32
  }
  func.func @transform_2(%arg0: i32) -> (i32, i32, i32) {
    %c0_i32 = arith.constant 0 : i32
    %c0_i32_0 = arith.constant 0 : i32
    %c0_i32_1 = arith.constant 0 : i32
    return %arg0, %c0_i32, %c0_i32_0 : i32, i32, i32
  }
}

module attributes {stable_mosaic.version = 11 : i64} {
  func.func @_head_kernel(%arg0: i32, %arg1: memref<2x512xf32, #tpu.memory_space<vmem>>, %arg2: memref<512x256xf32, #tpu.memory_space<vmem>>, %arg3: memref<1x256xf32, #tpu.memory_space<vmem>>, %arg4: memref<256x10xf32, #tpu.memory_space<vmem>>, %arg5: memref<1x10xf32, #tpu.memory_space<vmem>>, %arg6: memref<2x10xf32, #tpu.memory_space<vmem>>) attributes {dimension_semantics = [#tpu.dimension_semantics<parallel>], iteration_bounds = array<i64: 1>, scalar_prefetch = 0 : i64, scratch_operands = 0 : i64, tpu.core_type = #tpu.core_type<tc>, window_params = [{transform_indices = @transform_0, window_bounds = array<i64: 2, 512>}, {pipeline_mode = #tpu.pipeline_mode<synchronous>, transform_indices = @transform_1, window_bounds = array<i64: 512, 256>}, {pipeline_mode = #tpu.pipeline_mode<synchronous>, transform_indices = @transform_2, window_bounds = array<i64: 1, 256>}, {pipeline_mode = #tpu.pipeline_mode<synchronous>, transform_indices = @transform_3, window_bounds = array<i64: 256, 10>}, {pipeline_mode = #tpu.pipeline_mode<synchronous>, transform_indices = @transform_4, window_bounds = array<i64: 1, 10>}, {transform_indices = @transform_5, window_bounds = array<i64: 2, 10>}]} {
    %c0 = arith.constant 0 : index
    %c0_0 = arith.constant 0 : index
    %0 = vector.load %arg1[%c0, %c0_0] : memref<2x512xf32, #tpu.memory_space<vmem>>, vector<2x512xf32>
    %c0_1 = arith.constant 0 : index
    %c0_2 = arith.constant 0 : index
    %1 = vector.load %arg2[%c0_1, %c0_2] : memref<512x256xf32, #tpu.memory_space<vmem>>, vector<512x256xf32>
    %cst = arith.constant dense<0.000000e+00> : vector<2x256xf32>
    %2 = tpu.matmul %0, %1, %cst {dimension_numbers = #tpu.dot_dimension_numbers<[1], [0], [0], [1], [0, 0, 1, 1], [], []>} : vector<2x512xf32>, vector<512x256xf32>, vector<2x256xf32> -> vector<2x256xf32>
    %c0_3 = arith.constant 0 : index
    %c0_4 = arith.constant 0 : index
    %3 = vector.load %arg3[%c0_3, %c0_4] : memref<1x256xf32, #tpu.memory_space<vmem>>, vector<1x256xf32>
    %4 = vector.broadcast %3 : vector<1x256xf32> to vector<2x256xf32>
    %5 = arith.addf %2, %4 : vector<2x256xf32>
    %cst_5 = arith.constant 0.000000e+00 : f32
    %6 = vector.broadcast %cst_5 : f32 to vector<2x256xf32>
    %7 = arith.maximumf %5, %6 : vector<2x256xf32>
    %c0_6 = arith.constant 0 : index
    %c0_7 = arith.constant 0 : index
    %8 = vector.load %arg4[%c0_6, %c0_7] : memref<256x10xf32, #tpu.memory_space<vmem>>, vector<256x10xf32>
    %cst_8 = arith.constant dense<0.000000e+00> : vector<2x10xf32>
    %9 = tpu.matmul %7, %8, %cst_8 {dimension_numbers = #tpu.dot_dimension_numbers<[1], [0], [0], [1], [0, 0, 1, 1], [], []>} : vector<2x256xf32>, vector<256x10xf32>, vector<2x10xf32> -> vector<2x10xf32>
    %c0_9 = arith.constant 0 : index
    %c0_10 = arith.constant 0 : index
    %10 = vector.load %arg5[%c0_9, %c0_10] : memref<1x10xf32, #tpu.memory_space<vmem>>, vector<1x10xf32>
    %11 = vector.broadcast %10 : vector<1x10xf32> to vector<2x10xf32>
    %12 = arith.addf %9, %11 : vector<2x10xf32>
    %c0_11 = arith.constant 0 : index
    %c0_12 = arith.constant 0 : index
    %13 = vector.load %arg6[%c0_11, %c0_12] : memref<2x10xf32, #tpu.memory_space<vmem>>, vector<2x10xf32>
    tpu.vector_store %arg6[%c0_11, %c0_12], %12 {strides = array<i32>} : memref<2x10xf32, #tpu.memory_space<vmem>>, vector<2x10xf32>,
    return
  }
  func.func @transform_0(%arg0: i32) -> (i32, i32) {
    %c0_i32 = arith.constant 0 : i32
    %c0_i32_0 = arith.constant 0 : i32
    return %arg0, %c0_i32 : i32, i32
  }
  func.func @transform_1(%arg0: i32) -> (i32, i32) {
    %c0_i32 = arith.constant 0 : i32
    %c0_i32_0 = arith.constant 0 : i32
    %c0_i32_1 = arith.constant 0 : i32
    return %c0_i32, %c0_i32_0 : i32, i32
  }
  func.func @transform_2(%arg0: i32) -> (i32, i32) {
    %c0_i32 = arith.constant 0 : i32
    %c0_i32_0 = arith.constant 0 : i32
    %c0_i32_1 = arith.constant 0 : i32
    return %c0_i32, %c0_i32_0 : i32, i32
  }
  func.func @transform_3(%arg0: i32) -> (i32, i32) {
    %c0_i32 = arith.constant 0 : i32
    %c0_i32_0 = arith.constant 0 : i32
    %c0_i32_1 = arith.constant 0 : i32
    return %c0_i32, %c0_i32_0 : i32, i32
  }
  func.func @transform_4(%arg0: i32) -> (i32, i32) {
    %c0_i32 = arith.constant 0 : i32
    %c0_i32_0 = arith.constant 0 : i32
    %c0_i32_1 = arith.constant 0 : i32
    return %c0_i32, %c0_i32_0 : i32, i32
  }
  func.func @transform_5(%arg0: i32) -> (i32, i32) {
    %c0_i32 = arith.constant 0 : i32
    %c0_i32_0 = arith.constant 0 : i32
    return %arg0, %c0_i32 : i32, i32
  }
}

</mosaic_0001>

<bundles_post_ra>
// kernel: gat_module_forward.3
= control target key start
LH: loop header
LB: loop body
LE: loop exit
PB: predicated region body
PF: predicated region fallthrough
CT: control target
= control target key end

     0   :  { %vm76_vm0 = vcmask 23552   ;;  %vm289_vm1 = vcmask 64512   ;;  %v178_v53 = vlaneseq  ;;  %vm585_vm9 = vcmask 125952   ;;  %s1461_s3 = smov 80   ;;  %s1462_s4 = smov 16   ;;  %s1938_s0 = inlined_call_operand.vmem [shape: bf16[2,8,3], index: 0, kind: input, shape index: {}]   ;;  %s1939_s1 = inlined_call_operand.vmem [shape: bf16[144,3], index: 1, kind: input, shape index: {}]   ;;  %s1940_s2 = inlined_call_operand.vmem [shape: bf16[2,8,128], index: 2, kind: output, shape index: {}]  }
   0x1   :  { %v30_v0 = vld [vmem:[%s1938_s0] sm:$0xf]  ;;  %v1497_v3 = vld [vmem:[%s1939_s1 + $0x8] sm:$0xff]  ;;  %v1504_v4 = vld [vmem:[%s1939_s1 + $0x10] sm:$0xff]  ;;  %s1463_s5 = smov 48   ;;  %s1464_s6 = smov 96  }
   0x2   :  { %v105_v1 = vsel %vm76_vm0, %v30_v0, 0  ;;  %v1490_v2 = vld [vmem:[%s1939_s1] sm:$0xff]  ;;  %v1511_v5 = vld [vmem:[%s1939_s1 + $0x18] sm:$0xff]  ;;  %v1525_v7 = vld [vmem:[%s1939_s1 + $0x28] sm:$0xff]  ;;  %v179_v56 = vshrl.u32 %v178_v53, 7  ;;  %s1465_s7 = smov 32  }
   0x3   :  { %114 = vmatpush.bf16.xpose.msra.mxu0 %v105_v1  ;;  %v1518_v6 = vld [vmem:[%s1939_s1 + $0x20] sm:$0xff]  ;;  %v1532_v8 = vld [vmem:[%s1939_s1 + $0x30] sm:$0xff]  ;;  %v1539_v9 = vld [vmem:[%s1939_s1 + $0x38] sm:$0xff]  ;;  %s1466_s8 = smov 64   ;;  %s1467_s21 = smov 112  }
   0x4   :  { %v1546_v10 = vld [vmem:[%s1939_s1 + $0x40] sm:$0xff]  ;;  %1362 = vset.pattern.permute.xlu0 %v179_v56  ;;  %1363 = vset.pattern.permute.xlu1 %v179_v56 }
   0x5   :  { %1364 = vset.pattern.permute.xlu2 %v179_v56 }
   0xa   :  { %1286 = vmatmul.msk.bf16.vlgmr.msra.gmra.mxu0 %vm76_vm0, %v1490_v2 }
  0x1a   :  { %1287 = vmatmul.msk.bf16.gmra.mxu0 %vm76_vm0, %v1497_v3 }
  0x2a   :  { %1288 = vmatmul.msk.bf16.gmra.mxu0 %vm76_vm0, %v1504_v4 }
  0x3a   :  { %1289 = vmatmul.msk.bf16.gmra.mxu0 %vm76_vm0, %v1511_v5 }
  0x4a   :  { %1290 = vmatmul.msk.bf16.gmra.mxu0 %vm76_vm0, %v1518_v6 }
  0x5a   :  { %1291 = vmatmul.msk.bf16.gmra.mxu0 %vm76_vm0, %v1525_v7 }
  0x6a   :  { %1292 = vmatmul.msk.bf16.gmra.mxu0 %vm76_vm0, %v1532_v8 }
  0x7a   :  { %1293 = vmatmul.msk.bf16.gmra.mxu0 %vm76_vm0, %v1539_v9 }
  0x87   :  { %v116_v11 = vpop.f32.mrf.mxu0 }
  0x88   :  { %v161_v12 = vpack.c.bf16 %v116_v11, %v116_v11 }
  0x8a   :  { %1294 = vmatmul.msk.bf16.gmra.mxu0 %vm76_vm0, %v1546_v10  ;;  %v388_v15 = vunpack.c.l.b16 %v161_v12 }
  0x8f   :  { %v118_v13 = vpop.f32.mrf.mxu0 }
  0x90   :  { %v162_v14 = vpack.c.bf16 %v118_v13, %v118_v13 }
  0x92   :  { %v389_v16 = vunpack.c.l.b16 %v162_v14 }
  0x94   :  { %v390_v17 = vpack.c.b16 %v389_v16, %v388_v15 }
  0x96   :  { %v395_v18 = vsel %vm289_vm1, %v390_v17, 0 }
  0x97   :  { %v121_v19 = vpop.f32.mrf.mxu0  ;;  %404 = vmatpush.bf16.xpose.msra.mxu1 %v395_v18 }
  0x98   :  { %v163_v20 = vpack.c.bf16 %v121_v19, %v121_v19 }
  0x9a   :  { %v412_v23 = vunpack.c.l.b16 %v163_v20 }
  0x9f   :  { %v123_v21 = vpop.f32.mrf.mxu0 }
  0xa0   :  { %v164_v22 = vpack.c.bf16 %v123_v21, %v123_v21 }
  0xa2   :  { %v413_v24 = vunpack.c.l.b16 %v164_v22 }
  0xa4   :  { %v414_v25 = vpack.c.b16 %v413_v24, %v412_v23 }
  0xa6   :  { %v419_v26 = vsel %vm289_vm1, %v414_v25, 0 }
  0xa7   :  { %v126_v27 = vpop.f32.mrf.mxu0  ;;  %428 = vmatpush.bf16.xpose.msra.mxu2 %v419_v26 }
  0xa8   :  { %v165_v28 = vpack.c.bf16 %v126_v27, %v126_v27 }
  0xaa   :  { %v436_v31 = vunpack.c.l.b16 %v165_v28 }
  0xaf   :  { %v128_v29 = vpop.f32.mrf.mxu0 }
  0xb0   :  { %v166_v30 = vpack.c.bf16 %v128_v29, %v128_v29 }
  0xb2   :  { %v437_v32 = vunpack.c.l.b16 %v166_v30 }
  0xb4   :  { %v438_v33 = vpack.c.b16 %v437_v32, %v436_v31 }
  0xb6   :  { %v443_v34 = vsel %vm289_vm1, %v438_v33, 0 }
  0xb7   :  { %v131_v35 = vpop.f32.mrf.mxu0  ;;  %452 = vmatpush.bf16.xpose.msra.mxu3 %v443_v34 }
  0xb8   :  { %v167_v36 = vpack.c.bf16 %v131_v35, %v131_v35 }
  0xba   :  { %v460_v39 = vunpack.c.l.b16 %v167_v36 }
  0xbf   :  { %v133_v37 = vpop.f32.mrf.mxu0 }
  0xc0   :  { %v168_v38 = vpack.c.bf16 %v133_v37, %v133_v37 }
  0xc2   :  { %v461_v40 = vunpack.c.l.b16 %v168_v38 }
  0xc4   :  { %v462_v41 = vpack.c.b16 %v461_v40, %v460_v39 }
  0xc6   :  { %v467_v42 = vsel %vm289_vm1, %v462_v41, 0 }
  0xc7   :  { %v136_v43 = vpop.f32.mrf.mxu0  ;;  %476 = vmatpush.bf16.xpose.msrb.mxu1 %v467_v42 }
  0xc8   :  { %v169_v44 = vpack.c.bf16 %v136_v43, %v136_v43 }
  0xca   :  { %v484_v47 = vunpack.c.l.b16 %v169_v44 }
  0xcf   :  { %v138_v45 = vpop.f32.mrf.mxu0 }
  0xd0   :  { %v170_v46 = vpack.c.bf16 %v138_v45, %v138_v45 }
  0xd2   :  { %v485_v48 = vunpack.c.l.b16 %v170_v46 }
  0xd4   :  { %v486_v49 = vpack.c.b16 %v485_v48, %v484_v47 }
  0xd6   :  { %v491_v50 = vsel %vm289_vm1, %v486_v49, 0 }
  0xd7   :  { %v141_v51 = vpop.f32.mrf.mxu0  ;;  %500 = vmatpush.bf16.xpose.msrb.mxu2 %v491_v50 }
  0xd8   :  { %v171_v52 = vpack.c.bf16 %v141_v51, %v141_v51 }
  0xda   :  { %v508_v57 = vunpack.c.l.b16 %v171_v52 }
  0xdf   :  { %v143_v54 = vpop.f32.mrf.mxu0 }
  0xe0   :  { %v172_v55 = vpack.c.bf16 %v143_v54, %v143_v54 }
  0xe2   :  { %v509_v58 = vunpack.c.l.b16 %v172_v55 }
  0xe4   :  { %v510_v59 = vpack.c.b16 %v509_v58, %v508_v57 }
  0xe6   :  { %v515_v60 = vsel %vm289_vm1, %v510_v59, 0 }
  0xe7   :  { %v146_v61 = vpop.f32.mrf.mxu0  ;;  %524 = vmatpush.bf16.xpose.msrb.mxu3 %v515_v60 }
  0xe8   :  { %v173_v62 = vpack.c.bf16 %v146_v61, %v146_v61 }
  0xea   :  { %v1556_v1 = vunpack.c.l.b16 %v173_v62 }
  0xef   :  { %v148_v63 = vpop.f32.mrf.mxu0 }
  0xf0   :  { %v174_v0 = vpack.c.bf16 %v148_v63, %v148_v63 }
  0xf2   :  { %v1558_v11 = vunpack.c.l.b16 %v174_v0 }
  0xf4   :  { %v534_v12 = vpack.c.b16 %v1558_v11, %v1556_v1 }
  0xf7   :  { %v151_v13 = vpop.f32.mrf.mxu0 }
  0xf8   :  { %v175_v14 = vpack.c.bf16 %v151_v13, %v151_v13 }
  0xfa   :  { %v1562_v17 = vunpack.c.l.b16 %v175_v14 }
  0xff   :  { %v153_v15 = vpop.f32.mrf.mxu0 }
 0x100   :  { %v176_v16 = vpack.c.bf16 %v153_v15, %v153_v15 }
 0x102   :  { %v1564_v18 = vunpack.c.l.b16 %v176_v16 }
 0x104   :  { %v558_v19 = vpack.c.b16 %v1564_v18, %v1562_v17 }
 0x107   :  { %v1568_v20 = vpop.f32.mrf.mxu0 }
 0x108   :  { %v191_v21 = vperm.slane %v1568_v20, 2  ;;  %v212_v22 = vperm.slane %v1568_v20, 5  ;;  %v177_v23 = vperm.slane %v1568_v20, 0  ;;  %v198_v45 = vperm.slane %v1568_v20, 3 }
 0x109   :  { %v219_v61 = vperm.slane %v1568_v20, 6 }
 0x10a   :  { %196 = vperm.xlu0 %1362, %v191_v21  }
 0x10f   :  { %v1573_v24 = vpop.f32.mrf.mxu0 }
 0x110   :  { %v235_v25 = vrot.slane %v1573_v24, 2  ;;  %v238_v30 = vrot.slane %v1573_v24, 5  ;;  %v241_v39 = vperm.slane %v1573_v24, 0  ;;  %v236_v62 = vrot.slane %v1573_v24, 3 }
 0x112   :  { %217 = vperm.xlu0 %1362, %v212_v22   ;;  %v243_v26 = vperm.slane %v235_v25, 0  ;;  %v246_v33 = vperm.slane %v238_v30, 0  ;;  %v244_v0 = vperm.slane %v236_v62, 0 }
 0x11a   :  { %182 = vperm.xlu0 %1362, %v177_v23   ;;  %v1311_v23 = vld [vmem:[%s1938_s0 + $0x4] sm:$0xf] }
 0x17c   :  { %v197_v27 = vpop.permute.xlu0 %196 }
 0x17d   :  { %v259_v28 = vadd.f32 %v243_v26, %v197_v27 }
 0x17f   :  { %v275_v29 = vmul.f32 0.2, %v259_v28  ;;  %vm267_vm2 = vcmp.ge.f32.partialorder %v259_v28, 0.0 }
 0x181   :  { %v283_v31 = vsel %vm267_vm2, %v259_v28, %v275_v29  ;;  %v1592_v28 = vsel %vm76_vm0, %v1311_v23, 0  ;;  %v239_v29 = vrot.slane %v1573_v24, 6 }
 0x182   :  { %v296_v32 = vsel %vm289_vm1, %v283_v31, -inf }
 0x183   :  { %297 = vmax.xlane.f32.xlu1 %v296_v32  ;;  %v247_v30 = vperm.slane %v239_v29, 0 }
 0x184   :  { %v218_v34 = vpop.permute.xlu0 %217 }
 0x185   :  { %v262_v35 = vadd.f32 %v246_v33, %v218_v34 }
 0x187   :  { %v278_v36 = vmul.f32 0.2, %v262_v35  ;;  %vm270_vm3 = vcmp.ge.f32.partialorder %v262_v35, 0.0 }
 0x189   :  { %v286_v37 = vsel %vm270_vm3, %v262_v35, %v278_v36 }
 0x18a   :  { %v305_v38 = vsel %vm289_vm1, %v286_v37, -inf }
 0x18b   :  { %306 = vmax.xlane.f32.xlu1 %v305_v38 }
 0x18c   :  { %v183_v40 = vpop.permute.xlu0 %182 }
 0x18d   :  { %v257_v41 = vadd.f32 %v241_v39, %v183_v40 }
 0x18f   :  { %v273_v42 = vmul.f32 0.2, %v257_v41  ;;  %vm265_vm4 = vcmp.ge.f32.partialorder %v257_v41, 0.0 }
 0x191   :  { %v281_v43 = vsel %vm265_vm4, %v257_v41, %v273_v42 }
 0x192   :  { %v290_v44 = vsel %vm289_vm1, %v281_v43, -inf }
 0x193   :  { %291 = vmax.xlane.f32.xlu0 %v290_v44  ;;  %v205_v44 = vperm.slane %v1568_v20, 4 }
 0x1a4   :  { %203 = vperm.xlu1 %1363, %v198_v45  }
 0x1f6   :  { %v298_v46 = vpop.xlane.xlu1 %297 }
 0x1f7   :  { %v316_v47 = vsub.f32 %v283_v31, %v298_v46 }
 0x1f9   :  { %v326_v48 = vmul.f32 1.442695, %v316_v47 }
 0x1fb   :  { %1365 = vpow2.f32 %v326_v48 }
 0x1fe   :  { %v307_v49 = vpop.xlane.xlu1 %306 }
 0x1ff   :  { %v319_v50 = vsub.f32 %v286_v37, %v307_v49 }
 0x201   :  { %v1366_v51 = vpop.eup %1365  ;;  %v332_v52 = vmul.f32 1.442695, %v319_v50 }
 0x202   :  { %v344_v53 = vsel %vm289_vm1, %v1366_v51, 0.0 }
 0x203   :  { %1367 = vpow2.f32 %v332_v52  ;;  %345 = vadd.xlane.f32.xlu2 %v344_v53 }
 0x206   :  { %v292_v54 = vpop.xlane.xlu0 %291 }
 0x207   :  { %v314_v55 = vsub.f32 %v281_v43, %v292_v54  ;;  %v539_v43 = vsel %vm289_vm1, %v534_v12, 0 }
 0x209   :  { %v1368_v56 = vpop.eup %1367  ;;  %v322_v57 = vmul.f32 1.442695, %v314_v55 }
 0x20a   :  { %v353_v58 = vsel %vm289_vm1, %v1368_v56, 0.0 }
 0x20b   :  { %1369 = vpow2.f32 %v322_v57  ;;  %354 = vadd.xlane.f32.xlu2 %v353_v58 }
 0x211   :  { %v1370_v59 = vpop.eup %1369 }
 0x212   :  { %v338_v60 = vsel %vm289_vm1, %v1370_v59, 0.0 }
 0x213   :  { %339 = vadd.xlane.f32.xlu0 %v338_v60 }
 0x216   :  { %v204_v63 = vpop.permute.xlu1 %203 }
 0x217   :  { %v260_v13 = vadd.f32 %v244_v0, %v204_v63 }
 0x219   :  { %v276_v14 = vmul.f32 0.2, %v260_v13  ;;  %vm268_vm5 = vcmp.ge.f32.partialorder %v260_v13, 0.0 }
 0x21b   :  { %v284_v15 = vsel %vm268_vm5, %v260_v13, %v276_v14  ;;  %v226_v13 = vperm.slane %v1568_v20, 7 }
 0x21c   :  { %v299_v16 = vsel %vm289_vm1, %v284_v15, -inf }
 0x223   :  { %224 = vperm.xlu2 %1364, %v219_v61  }
 0x24c   :  { %300 = vmax.xlane.f32.xlu2 %v299_v16 }
 0x276   :  { %v346_v21 = vpop.xlane.xlu2 %345 }
 0x277   :  { %1371 = vrcp.f32 %v346_v21 }
 0x27d   :  { %v1372_v22 = vpop.eup %1371 }
 0x27e   :  { %v355_v25 = vpop.xlane.xlu2 %354  ;;  %v372_v26 = vmul.f32 %v1372_v22, %v1366_v51 }
 0x27f   :  { %1373 = vrcp.f32 %v355_v25 }
 0x280   :  { %v380_v27 = vpack.c.bf16 %v372_v26, %v372_v26 }
 0x282   :  { %1297 = vmatmul.msk.bf16.vlgmr.msra.gmra.mxu3 %vm289_vm1, %v380_v27 }
 0x283   :  { %1354 = vmatpush.bf16.xpose.msra.mxu3 %v1592_v28 }
 0x285   :  { %v1374_v34 = vpop.eup %1373 }
 0x286   :  { %v340_v31 = vpop.xlane.xlu0 %339  ;;  %v225_v32 = vpop.permute.xlu2 %224  ;;  %v375_v37 = vmul.f32 %v1374_v34, %v1368_v56 }
 0x287   :  { %1375 = vrcp.f32 %v340_v31  ;;  %v263_v33 = vadd.f32 %v247_v30, %v225_v32 }
 0x288   :  { %v383_v42 = vpack.c.bf16 %v375_v37, %v375_v37 }
 0x289   :  { %v279_v35 = vmul.f32 0.2, %v263_v33  ;;  %vm271_vm6 = vcmp.ge.f32.partialorder %v263_v33, 0.0 }
 0x28b   :  { %v287_v36 = vsel %vm271_vm6, %v263_v33, %v279_v35 }
 0x28c   :  { %v308_v38 = vsel %vm289_vm1, %v287_v36, -inf }
 0x28d   :  { %v1376_v39 = vpop.eup %1375  ;;  %309 = vmax.xlane.f32.xlu1 %v308_v38 }
 0x28e   :  { %v370_v40 = vmul.f32 %v1376_v39, %v1370_v59 }
 0x290   :  { %v378_v41 = vpack.c.bf16 %v370_v40, %v370_v40  ;;  %v234_v40 = vrot.slane %v1573_v24, 1 }
 0x292   :  { %1295 = vmatmul.msk.bf16.vlgmr.msra.gmra.mxu1 %vm289_vm1, %v378_v41  ;;  %1300 = vmatmul.msk.bf16.vlgmr.msrb.gmra.mxu3 %vm289_vm1, %v383_v42 }
 0x293   :  { %548 = vmatpush.bf16.xpose.msra.mxu1 %v539_v43 }
 0x2a2   :  { %1314 = vmatmul.msk.bf16.vlgmr.msra.gmra.mxu3 %vm76_vm0, %v1504_v4  ;;  %v184_v4 = vperm.slane %v1568_v20, 1 }
 0x2a6   :  { %210 = vperm.xlu1 %1363, %v205_v44   ;;  %v242_v44 = vperm.slane %v234_v40, 0 }
 0x2b2   :  { %1315 = vmatmul.msk.bf16.gmra.mxu3 %vm76_vm0, %v1511_v5 }
 0x2bf   :  { %v301_v45 = vpop.xlane.xlu2 %300 }
 0x2c0   :  { %v317_v46 = vsub.f32 %v284_v15, %v301_v45 }
 0x2c2   :  { %v328_v47 = vmul.f32 1.442695, %v317_v46  ;;  %1316 = vmatmul.msk.bf16.gmra.mxu3 %vm76_vm0, %v1518_v6 }
 0x2c4   :  { %1377 = vpow2.f32 %v328_v47 }
 0x2ca   :  { %v1378_v1 = vpop.eup %1377 }
 0x2cb   :  { %v347_v11 = vsel %vm289_vm1, %v1378_v1, 0.0 }
 0x2cc   :  { %348 = vadd.xlane.f32.xlu0 %v347_v11 }
 0x2d2   :  { %1317 = vmatmul.msk.bf16.gmra.mxu3 %vm76_vm0, %v1525_v7 }
 0x2e0   :  { %189 = vperm.xlu0 %1362, %v184_v4  }
 0x2e2   :  { %1318 = vmatmul.msk.bf16.gmra.mxu3 %vm76_vm0, %v1532_v8 }
 0x2f2   :  { %1319 = vmatmul.msk.bf16.gmra.mxu3 %vm76_vm0, %v1539_v9  ;;  %v237_v9 = vrot.slane %v1573_v24, 4 }
 0x2f4   :  { %v245_v54 = vperm.slane %v237_v9, 0 }
 0x300   :  { %v310_v5 = vpop.xlane.xlu1 %309 }
 0x301   :  { %v320_v12 = vsub.f32 %v287_v36, %v310_v5 }
 0x302   :  { %1320 = vmatmul.msk.bf16.gmra.mxu3 %vm76_vm0, %v1546_v10 }
 0x303   :  { %v334_v6 = vmul.f32 1.442695, %v320_v12 }
 0x305   :  { %1379 = vpow2.f32 %v334_v6  ;;  %v1621_v48 = vpop.f32.mrf.mxu3 }
 0x30b   :  { %v1623_v49 = vpop.eup %1379 }
 0x30c   :  { %v356_v7 = vsel %vm289_vm1, %v1623_v49, 0.0 }
 0x30d   :  { %v456_v50 = vpop.f32.mrf.mxu3  ;;  %357 = vadd.xlane.f32.xlu2 %v356_v7 }
 0x30f   :  { %v406_v8 = vpop.f32.mrf.mxu1 }
 0x310   :  { %v579_v51 = vmin.f32 %v406_v8, 0.0  ;;  %vm578_vm8 = vcmp.gt.f32.partialorder %v406_v8, 0.0 }
 0x312   :  { %v580_v52 = vmul.f32 1.442695, %v579_v51 }
 0x314   :  { %1381 = vpow2.f32 %v580_v52 }
 0x315   :  { %v1628_v53 = vpop.f32.mrf.mxu3 }
 0x316   :  { %vm639_vm5 = vcmp.gt.f32.partialorder %v1628_v53, 0.0 }
 0x317   :  { %v408_v10 = vpop.f32.mrf.mxu1 }
 0x318   :  { %v211_v55 = vpop.permute.xlu1 %210 }
 0x319   :  { %v261_v56 = vadd.f32 %v245_v54, %v211_v55 }
 0x31a   :  { %v1382_v57 = vpop.eup %1381 }
 0x31b   :  { %v1303_v58 = vadd.f32 -1.0, %v1382_v57  ;;  %v277_v59 = vmul.f32 0.2, %v261_v56  ;;  %vm269_vm7 = vcmp.ge.f32.partialorder %v261_v56, 0.0 }
 0x31d   :  { %v583_v60 = vsel %vm578_vm8, %v406_v8, %v1303_v58  ;;  %v528_v61 = vpop.f32.mrf.mxu3  ;;  %v1630_v62 = vsel %vm269_vm7, %v261_v56, %v277_v59 }
 0x31e   :  { %v584_v63 = vpack.c.bf16 %v583_v60, %v583_v60  ;;  %v302_v0 = vsel %vm289_vm1, %v1630_v62, -inf }
 0x31f   :  { %303 = vmax.xlane.f32.xlu1 %v302_v0 }
 0x320   :  { %586 = vst.msk [vmem:[%s1940_s2] sm:$0xf] %vm585_vm9, %v584_v63 }
 0x325   :  { %v702_v14 = vpop.f32.mrf.mxu3  ;;  %231 = vperm.xlu2 %1364, %v226_v13  }
 0x326   :  { %v741_v15 = vpack.c.bf16 %v702_v14, %v702_v14  ;;  %v240_v14 = vrot.slane %v1573_v24, 7 }
 0x328   :  { %v1639_v22 = vunpack.c.l.b16 %v741_v15 }
 0x32d   :  { %v704_v16 = vpop.f32.mrf.mxu3 }
 0x32e   :  { %v742_v21 = vpack.c.bf16 %v704_v16, %v704_v16 }
 0x330   :  { %v1641_v23 = vunpack.c.l.b16 %v742_v21 }
 0x332   :  { %v1013_v25 = vpack.c.b16 %v1641_v23, %v1639_v22 }
 0x335   :  { %v707_v26 = vpop.f32.mrf.mxu3 }
 0x336   :  { %v743_v27 = vpack.c.bf16 %v707_v26, %v707_v26 }
 0x338   :  { %v1645_v32 = vunpack.c.l.b16 %v743_v27  ;;  %v248_v27 = vperm.slane %v240_v14, 0 }
 0x33d   :  { %v709_v29 = vpop.f32.mrf.mxu3 }
 0x33e   :  { %v744_v30 = vpack.c.bf16 %v709_v29, %v709_v29 }
 0x33f   :  { %v349_v31 = vpop.xlane.xlu0 %348 }
 0x340   :  { %v1647_v20 = vunpack.c.l.b16 %v744_v30  ;;  %1383 = vrcp.f32 %v349_v31 }
 0x342   :  { %v1037_v33 = vpack.c.b16 %v1647_v20, %v1645_v32 }
 0x345   :  { %v712_v34 = vpop.f32.mrf.mxu3 }
 0x346   :  { %v1384_v35 = vpop.eup %1383  ;;  %v745_v38 = vpack.c.bf16 %v712_v34, %v712_v34 }
 0x347   :  { %v373_v36 = vmul.f32 %v1384_v35, %v1378_v1 }
 0x348   :  { %v1654_v42 = vunpack.c.l.b16 %v745_v38 }
 0x349   :  { %v381_v37 = vpack.c.bf16 %v373_v36, %v373_v36 }
 0x34b   :  { %1298 = vmatmul.msk.bf16.vlgmr.msrb.gmra.mxu1 %vm289_vm1, %v381_v37 }
 0x34c   :  { %690 = vmatpush.bf16.xpose.msrb.mxu1 %v1592_v28 }
 0x34d   :  { %v714_v39 = vpop.f32.mrf.mxu3 }
 0x34e   :  { %v746_v41 = vpack.c.bf16 %v714_v39, %v714_v39 }
 0x350   :  { %v1656_v43 = vunpack.c.l.b16 %v746_v41 }
 0x352   :  { %v1061_v45 = vpack.c.b16 %v1656_v43, %v1654_v42  ;;  %v190_v46 = vpop.permute.xlu0 %189 }
 0x353   :  { %v258_v47 = vadd.f32 %v242_v44, %v190_v46 }
 0x355   :  { %v274_v1 = vmul.f32 0.2, %v258_v47  ;;  %v717_v11 = vpop.f32.mrf.mxu3  ;;  %vm266_vm10 = vcmp.ge.f32.partialorder %v258_v47, 0.0 }
 0x356   :  { %v747_v5 = vpack.c.bf16 %v717_v11, %v717_v11 }
 0x357   :  { %v282_v4 = vsel %vm266_vm10, %v258_v47, %v274_v1  ;;  %vm600_vm10 = vcmp.gt.f32.partialorder %v1621_v48, 0.0 }
 0x358   :  { %v293_v28 = vsel %vm289_vm1, %v282_v4, -inf  ;;  %v1661_v7 = vunpack.c.l.b16 %v747_v5 }
 0x359   :  { %294 = vmax.xlane.f32.xlu0 %v293_v28 }
 0x35d   :  { %v719_v12 = vpop.f32.mrf.mxu3 }
 0x35e   :  { %v748_v6 = vpack.c.bf16 %v719_v12, %v719_v12 }
 0x360   :  { %v1663_v50 = vunpack.c.l.b16 %v748_v6 }
 0x362   :  { %v1085_v8 = vpack.c.b16 %v1663_v50, %v1661_v7 }
 0x365   :  { %v722_v51 = vpop.f32.mrf.mxu3 }
 0x366   :  { %v749_v52 = vpack.c.bf16 %v722_v51, %v722_v51 }
 0x368   :  { %v1667_v54 = vunpack.c.l.b16 %v749_v52 }
 0x36d   :  { %v724_v9 = vpop.f32.mrf.mxu3 }
 0x36e   :  { %v750_v10 = vpack.c.bf16 %v724_v9, %v724_v9 }
 0x370   :  { %v1669_v55 = vunpack.c.l.b16 %v750_v10 }
 0x372   :  { %v1109_v56 = vpack.c.b16 %v1669_v55, %v1667_v54 }
 0x375   :  { %v727_v57 = vpop.f32.mrf.mxu3 }
 0x376   :  { %v751_v58 = vpack.c.bf16 %v727_v57, %v727_v57 }
 0x378   :  { %v1673_v61 = vunpack.c.l.b16 %v751_v58 }
 0x37d   :  { %v729_v59 = vpop.f32.mrf.mxu3 }
 0x37e   :  { %v752_v60 = vpack.c.bf16 %v729_v59, %v729_v59 }
 0x380   :  { %v1675_v63 = vunpack.c.l.b16 %v752_v60  ;;  %v358_v0 = vpop.xlane.xlu2 %357 }
 0x381   :  { %1385 = vrcp.f32 %v358_v0 }
 0x382   :  { %v1133_v13 = vpack.c.b16 %v1675_v63, %v1673_v61  ;;  %v1114_v61 = vsel %vm289_vm1, %v1109_v56, 0 }
 0x384   :  { %v1138_v42 = vsel %vm289_vm1, %v1133_v13, 0 }
 0x385   :  { %v1680_v15 = vpop.f32.mrf.mxu3 }
 0x386   :  { %v760_v16 = vperm.slane %v1680_v15, 1  ;;  %v788_v21 = vperm.slane %v1680_v15, 5  ;;  %v753_v37 = vperm.slane %v1680_v15, 0  ;;  %v767_v38 = vperm.slane %v1680_v15, 2 }
 0x387   :  { %v1386_v26 = vpop.eup %1385  ;;  %v802_v39 = vperm.slane %v1680_v15, 7  ;;  %v781_v1 = vperm.slane %v1680_v15, 4 }
 0x388   :  { %v376_v29 = vmul.f32 %v1386_v26, %v1623_v49  ;;  %v232_v30 = vpop.permute.xlu2 %231  ;;  %765 = vperm.xlu1 %1363, %v760_v16   ;;  %793 = vperm.xlu0 %1362, %v788_v21   ;;  %v774_v49 = vperm.slane %v1680_v15, 3 }
 0x389   :  { %v264_v31 = vadd.f32 %v248_v27, %v232_v30 }
 0x38a   :  { %v384_v34 = vpack.c.bf16 %v376_v29, %v376_v29 }
 0x38b   :  { %v280_v35 = vmul.f32 0.2, %v264_v31  ;;  %vm272_vm11 = vcmp.ge.f32.partialorder %v264_v31, 0.0 }
 0x38c   :  { %1301 = vmatmul.msk.bf16.vlgmr.msra.gmra.mxu1 %vm289_vm1, %v384_v34 }
 0x38d   :  { %v288_v24 = vsel %vm272_vm11, %v264_v31, %v280_v35  ;;  %v1702_v11 = vpop.f32.mrf.mxu3  ;;  %v795_v35 = vperm.slane %v1680_v15, 6 }
 0x38e   :  { %v311_v36 = vsel %vm289_vm1, %v288_v24, -inf  ;;  %v810_v5 = vrot.slane %v1702_v11, 1  ;;  %v817_v59 = vperm.slane %v1702_v11, 0  ;;  %v812_v21 = vrot.slane %v1702_v11, 3 }
 0x38f   :  { %312 = vmax.xlane.f32.xlu2 %v311_v36 }
 0x390   :  { %v818_v12 = vperm.slane %v810_v5, 0  ;;  %v820_v30 = vperm.slane %v812_v21, 0  ;;  %v816_v5 = vrot.slane %v1702_v11, 7 }
 0x392   :  { %v1704_v28 = vpop.xlane.xlu1 %303 }
 0x39c   :  { %1312 = vmatmul.msk.bf16.vlgmr.msrb.gmra.mxu1 %vm76_vm0, %v1490_v2 }
 0x3a7   :  { %758 = vperm.xlu2 %1364, %v753_v37   ;;  %v811_v37 = vrot.slane %v1702_v11, 2 }
 0x3ac   :  { %1313 = vmatmul.msk.bf16.gmra.mxu1 %vm76_vm0, %v1497_v3 }
 0x3af   :  { %779 = vperm.xlu2 %1364, %v774_v49  }
 0x3b7   :  { %772 = vperm.xlu2 %1364, %v767_v38  }
 0x3bf   :  { %807 = vperm.xlu2 %1364, %v802_v39  }
 0x3c8   :  { %v1695_v40 = vpop.f32.mrf.mxu1 }
 0x3c9   :  { %v614_v32 = vmin.f32 %v1695_v40, 0.0  ;;  %vm613_vm7 = vcmp.gt.f32.partialorder %v1695_v40, 0.0 }
 0x3cc   :  { %v295_v41 = vpop.xlane.xlu0 %294 }
 0x3cd   :  { %v315_v44 = vsub.f32 %v282_v4, %v295_v41  ;;  %v819_v41 = vperm.slane %v811_v37, 0 }
 0x3cf   :  { %v324_v2 = vmul.f32 1.442695, %v315_v44  ;;  %v814_v44 = vrot.slane %v1702_v11, 5 }
 0x3d0   :  { %v480_v46 = vpop.f32.mrf.mxu1 }
 0x3d1   :  { %1387 = vpow2.f32 %v324_v2 }
 0x3d7   :  { %v1697_v47 = vpop.eup %1387 }
 0x3d8   :  { %v341_v3 = vsel %vm289_vm1, %v1697_v47, 0.0 }
 0x3d9   :  { %342 = vadd.xlane.f32.xlu1 %v341_v3 }
 0x3f2   :  { %786 = vperm.xlu1 %1363, %v781_v1  }
 0x3fa   :  { %v766_v4 = vpop.permute.xlu1 %765  ;;  %v794_v3 = vpop.permute.xlu0 %793 }
 0x3fb   :  { %v834_v6 = vadd.f32 %v818_v12, %v766_v4  ;;  %v822_v12 = vperm.slane %v814_v44, 0 }
 0x3fd   :  { %v850_v51 = vmul.f32 0.2, %v834_v6  ;;  %vm842_vm12 = vcmp.ge.f32.partialorder %v834_v6, 0.0 }
 0x3ff   :  { %v1707_v52 = vsel %vm842_vm12, %v834_v6, %v850_v51  ;;  %v838_v6 = vadd.f32 %v822_v12, %v794_v3  ;;  %vm598_vm12 = vcmask 257152  }
 0x400   :  { %v868_v9 = vsel %vm289_vm1, %v1707_v52, -inf }
 0x401   :  { %869 = vmax.xlane.f32.xlu0 %v868_v9  ;;  %vm846_vm2 = vcmp.ge.f32.partialorder %v838_v6, 0.0 }
 0x402   :  { %v313_v10 = vpop.xlane.xlu2 %312 }
 0x403   :  { %v321_v57 = vsub.f32 %v288_v24, %v313_v10  ;;  %v824_v10 = vperm.slane %v816_v5, 0 }
 0x405   :  { %v336_v0 = vmul.f32 1.442695, %v321_v57 }
 0x407   :  { %1389 = vpow2.f32 %v336_v0 }
 0x409   :  { %v1711_v58 = vpop.f32.mrf.mxu1 }
 0x40a   :  { %v759_v60 = vpop.permute.xlu2 %758  ;;  %vm652_vm8 = vcmp.gt.f32.partialorder %v1711_v58, 0.0 }
 0x40b   :  { %v833_v14 = vadd.f32 %v817_v59, %v759_v60 }
 0x40d   :  { %v849_v16 = vmul.f32 0.2, %v833_v14  ;;  %vm841_vm13 = vcmp.ge.f32.partialorder %v833_v14, 0.0  ;;  %v1720_v24 = vpop.eup %1389 }
 0x40e   :  { %v359_v49 = vsel %vm289_vm1, %v1720_v24, 0.0 }
 0x40f   :  { %v1715_v26 = vsel %vm841_vm13, %v833_v14, %v849_v16  ;;  %v854_v16 = vmul.f32 0.2, %v838_v6 }
 0x410   :  { %v865_v27 = vsel %vm289_vm1, %v1715_v26, -inf }
 0x411   :  { %v552_v29 = vpop.f32.mrf.mxu1  ;;  %866 = vmax.xlane.f32.xlu2 %v865_v27 }
 0x412   :  { %v780_v31 = vpop.permute.xlu2 %779 }
 0x413   :  { %v836_v34 = vadd.f32 %v820_v30, %v780_v31 }
 0x415   :  { %v852_v36 = vmul.f32 0.2, %v836_v34  ;;  %800 = vperm.xlu0 %1362, %v795_v35   ;;  %vm844_vm14 = vcmp.ge.f32.partialorder %v836_v34, 0.0  ;;  %v1740_v35 = vsel %vm846_vm2, %v838_v6, %v854_v16  ;;  %v815_v6 = vrot.slane %v1702_v11, 6 }
 0x416   :  { %v880_v37 = vsel %vm289_vm1, %v1740_v35, -inf }
 0x417   :  { %v1725_v38 = vsel %vm844_vm14, %v836_v34, %v852_v36  ;;  %v1018_v36 = vsel %vm289_vm1, %v1013_v25, 0  ;;  %vm611_vm14 = vcmask 388352  }
 0x418   :  { %v874_v15 = vsel %vm289_vm1, %v1725_v38, -inf }
 0x419   :  { %v692_v39 = vpop.f32.mrf.mxu1  ;;  %360 = vadd.xlane.f32.xlu2 %v359_v49  ;;  %v318_v49 = vsub.f32 %v1630_v62, %v1704_v28  ;;  %v563_v62 = vsel %vm289_vm1, %v558_v19, 0  ;;  %v813_v28 = vrot.slane %v1702_v11, 4 }
 0x41a   :  { %v773_v2 = vpop.permute.xlu2 %772  ;;  %v737_v4 = vpack.c.bf16 %v692_v39, %v692_v39 }
 0x41b   :  { %v835_v46 = vadd.f32 %v819_v41, %v773_v2  ;;  %v330_v39 = vmul.f32 1.442695, %v318_v49 }
 0x41c   :  { %875 = vmax.xlane.f32.xlu1 %v874_v15  ;;  %v963_v57 = vunpack.c.l.b16 %v737_v4 }
 0x41d   :  { %v851_v1 = vmul.f32 0.2, %v835_v46  ;;  %vm843_vm15 = vcmp.ge.f32.partialorder %v835_v46, 0.0  ;;  %1391 = vpow2.f32 %v330_v39 }
 0x41f   :  { %v1731_v51 = vsel %vm843_vm15, %v835_v46, %v851_v1  ;;  %v821_v46 = vperm.slane %v813_v28, 0  ;;  %vm624_vm15 = vcmask 519552  }
 0x420   :  { %v871_v14 = vsel %vm289_vm1, %v1731_v51, -inf }
 0x421   :  { %v694_v9 = vpop.f32.mrf.mxu1 }
 0x422   :  { %v738_v59 = vpack.c.bf16 %v694_v9, %v694_v9  ;;  %v808_v60 = vpop.permute.xlu2 %807 }
 0x423   :  { %v840_v0 = vadd.f32 %v824_v10, %v808_v60  ;;  %v1750_v41 = vpop.eup %1391 }
 0x424   :  { %v964_v21 = vunpack.c.l.b16 %v738_v59  ;;  %872 = vmax.xlane.f32.xlu1 %v871_v14  ;;  %v350_v44 = vsel %vm289_vm1, %v1750_v41, 0.0 }
 0x425   :  { %v856_v27 = vmul.f32 0.2, %v840_v0  ;;  %vm848_vm0 = vcmp.ge.f32.partialorder %v840_v0, 0.0 }
 0x426   :  { %v965_v29 = vpack.c.b16 %v964_v21, %v963_v57  ;;  %v823_v57 = vperm.slane %v815_v6, 0 }
 0x427   :  { %v1735_v30 = vsel %vm848_vm0, %v840_v0, %v856_v27 }
 0x428   :  { %v970_v31 = vsel %vm289_vm1, %v965_v29, 0  ;;  %v886_v34 = vsel %vm289_vm1, %v1735_v30, -inf }
 0x429   :  { %979 = vmatpush.bf16.xpose.msra.mxu1 %v970_v31  ;;  %887 = vmax.xlane.f32.xlu2 %v886_v34  ;;  %v697_v28 = vpop.f32.mrf.mxu1 }
 0x42c   :  { %881 = vmax.xlane.f32.xlu1 %v880_v37 }
 0x431   :  { %1027 = vmatpush.bf16.xpose.msrb.mxu1 %v1018_v36 }
 0x43f   :  { %351 = vadd.xlane.f32.xlu0 %v350_v44 }
 0x44c   :  { %v343_v2 = vpop.xlane.xlu1 %342 }
 0x44d   :  { %1393 = vrcp.f32 %v343_v2 }
 0x453   :  { %v1394_v22 = vpop.eup %1393 }
 0x454   :  { %v371_v23 = vmul.f32 %v1394_v22, %v1697_v47 }
 0x456   :  { %v379_v25 = vpack.c.bf16 %v371_v23, %v371_v23 }
 0x458   :  { %1296 = vmatmul.msk.bf16.vlgmr.msra.gmra.mxu2 %vm289_vm1, %v379_v25 }
 0x459   :  { %572 = vmatpush.bf16.xpose.msra.mxu2 %v563_v62 }
 0x464   :  { %v787_v15 = vpop.permute.xlu1 %786 }
 0x465   :  { %v837_v3 = vadd.f32 %v821_v46, %v787_v15  ;;  %v640_v46 = vmin.f32 %v1628_v53, 0.0 }
 0x467   :  { %v853_v1 = vmul.f32 0.2, %v837_v3  ;;  %vm845_vm3 = vcmp.ge.f32.partialorder %v837_v3, 0.0 }
 0x469   :  { %v1761_v5 = vsel %vm845_vm3, %v837_v3, %v853_v1 }
 0x46a   :  { %v877_v47 = vsel %vm289_vm1, %v1761_v5, -inf }
 0x46b   :  { %878 = vmax.xlane.f32.xlu1 %v877_v47  ;;  %v699_v47 = vpop.f32.mrf.mxu1 }
 0x474   :  { %v870_v12 = vpop.xlane.xlu0 %869 }
 0x475   :  { %v890_v4 = vsub.f32 %v1707_v52, %v870_v12  ;;  %v739_v12 = vpack.c.bf16 %v697_v28, %v697_v28 }
 0x477   :  { %v899_v17 = vmul.f32 1.442695, %v890_v4  ;;  %v740_v4 = vpack.c.bf16 %v699_v47, %v699_v47  ;;  %v987_v6 = vunpack.c.l.b16 %v739_v12 }
 0x479   :  { %1395 = vpow2.f32 %v899_v17 }
 0x47f   :  { %v1766_v18 = vpop.eup %1395 }
 0x480   :  { %v916_v19 = vsel %vm289_vm1, %v1766_v18, 0.0 }
 0x481   :  { %917 = vadd.xlane.f32.xlu1 %v916_v19 }
 0x484   :  { %v867_v9 = vpop.xlane.xlu2 %866 }
 0x485   :  { %v889_v10 = vsub.f32 %v1715_v26, %v867_v9  ;;  %v988_v9 = vunpack.c.l.b16 %v740_v4 }
 0x487   :  { %v897_v59 = vmul.f32 1.442695, %v889_v10  ;;  %v801_v60 = vpop.permute.xlu0 %800 }
 0x488   :  { %v839_v0 = vadd.f32 %v823_v57, %v801_v60  ;;  %v989_v57 = vpack.c.b16 %v988_v9, %v987_v6 }
 0x489   :  { %1397 = vpow2.f32 %v897_v59 }
 0x48a   :  { %v855_v14 = vmul.f32 0.2, %v839_v0  ;;  %vm847_vm4 = vcmp.ge.f32.partialorder %v839_v0, 0.0 }
 0x48c   :  { %v1772_v52 = vsel %vm847_vm4, %v839_v0, %v855_v14  ;;  %v361_v31 = vpop.xlane.xlu2 %360  ;;  %vm637_vm4 = vcmask 650752  }
 0x48d   :  { %v883_v16 = vsel %vm289_vm1, %v1772_v52, -inf }
 0x48e   :  { %884 = vmax.xlane.f32.xlu2 %v883_v16  ;;  %v994_v16 = vsel %vm289_vm1, %v989_v57, 0 }
 0x48f   :  { %v1776_v21 = vpop.eup %1397  ;;  %v876_v27 = vpop.xlane.xlu1 %875 }
 0x490   :  { %v892_v11 = vsub.f32 %v1725_v38, %v876_v27  ;;  %v913_v26 = vsel %vm289_vm1, %v1776_v21, 0.0 }
 0x491   :  { %914 = vadd.xlane.f32.xlu1 %v913_v26 }
 0x492   :  { %v903_v29 = vmul.f32 1.442695, %v892_v11 }
 0x494   :  { %1399 = vpow2.f32 %v903_v29 }
 0x497   :  { %v873_v34 = vpop.xlane.xlu1 %872 }
 0x498   :  { %v891_v36 = vsub.f32 %v1731_v51, %v873_v34 }
 0x49a   :  { %v1782_v37 = vpop.eup %1399  ;;  %v901_v49 = vmul.f32 1.442695, %v891_v36 }
 0x49b   :  { %v922_v39 = vsel %vm289_vm1, %v1782_v37, 0.0 }
 0x49c   :  { %1401 = vpow2.f32 %v901_v49  ;;  %v888_v44 = vpop.xlane.xlu2 %887  ;;  %923 = vadd.xlane.f32.xlu2 %v922_v39 }
 0x49d   :  { %v896_v38 = vsub.f32 %v1735_v30, %v888_v44  ;;  %v641_v30 = vmul.f32 1.442695, %v640_v46 }
 0x49f   :  { %v911_v2 = vmul.f32 1.442695, %v896_v38  ;;  %v882_v22 = vpop.xlane.xlu1 %881 }
 0x4a0   :  { %v894_v23 = vsub.f32 %v1740_v35, %v882_v22 }
 0x4a1   :  { %1403 = vpow2.f32 %v911_v2 }
 0x4a2   :  { %v1788_v25 = vpop.eup %1401  ;;  %v907_v62 = vmul.f32 1.442695, %v894_v23 }
 0x4a3   :  { %v919_v51 = vsel %vm289_vm1, %v1788_v25, 0.0 }
 0x4a4   :  { %1405 = vpow2.f32 %v907_v62  ;;  %920 = vadd.xlane.f32.xlu0 %v919_v51 }
 0x4a5   :  { %1407 = vpow2.f32 %v641_v30 }
 0x4a7   :  { %v1793_v15 = vpop.eup %1403 }
 0x4a8   :  { %v934_v35 = vsel %vm289_vm1, %v1793_v15, 0.0 }
 0x4aa   :  { %v1795_v3 = vpop.eup %1405 }
 0x4ab   :  { %v928_v1 = vsel %vm289_vm1, %v1795_v3, 0.0  ;;  %v1408_v19 = vpop.eup %1407 }
 0x4ac   :  { %935 = vadd.xlane.f32.xlu0 %v934_v35  ;;  %929 = vadd.xlane.f32.xlu1 %v928_v1  ;;  %v1308_v10 = vadd.f32 -1.0, %v1408_v19  ;;  %v1090_v35 = vsel %vm289_vm1, %v1085_v8, 0 }
 0x4ae   :  { %v644_v0 = vsel %vm639_vm5, %v1628_v53, %v1308_v10  ;;  %v1042_v53 = vsel %vm289_vm1, %v1037_v33, 0  ;;  %v615_v33 = vmul.f32 1.442695, %v614_v32  ;;  %v601_v10 = vmin.f32 %v1621_v48, 0.0 }
 0x4af   :  { %v645_v27 = vpack.c.bf16 %v644_v0, %v644_v0  ;;  %vm650_vm5 = vcmask 781952  }
 0x4b0   :  { %v602_v0 = vmul.f32 1.442695, %v601_v10 }
 0x4b2   :  { %v352_v17 = vpop.xlane.xlu0 %351 }
 0x4b3   :  { %1409 = vrcp.f32 %v352_v17 }
 0x4b4   :  { %1411 = vrcp.f32 %v361_v31 }
 0x4b9   :  { %v1410_v59 = vpop.eup %1409 }
 0x4ba   :  { %v374_v60 = vmul.f32 %v1410_v59, %v1750_v41  ;;  %v1412_v11 = vpop.eup %1411 }
 0x4bb   :  { %v377_v26 = vmul.f32 %v1412_v11, %v1720_v24 }
 0x4bc   :  { %v382_v14 = vpack.c.bf16 %v374_v60, %v374_v60 }
 0x4bd   :  { %v385_v29 = vpack.c.bf16 %v377_v26, %v377_v26 }
 0x4be   :  { %1299 = vmatmul.msk.bf16.vlgmr.msrb.gmra.mxu2 %vm289_vm1, %v382_v14 }
 0x4bf   :  { %1003 = vmatpush.bf16.xpose.msrb.mxu2 %v994_v16 }
 0x4c0   :  { %647 = vrot.lane.b32.xlu0 %v645_v27, %s1461_s3 }
 0x4ce   :  { %1302 = vmatmul.msk.bf16.vlgmr.msra.gmra.mxu2 %vm289_vm1, %v385_v29 }
 0x4cf   :  { %1051 = vmatpush.bf16.xpose.msra.mxu2 %v1042_v53 }
 0x4db   :  { %v430_v41 = vpop.f32.mrf.mxu2 }
 0x4dc   :  { %v588_v44 = vmin.f32 %v430_v41, 0.0  ;;  %vm587_vm6 = vcmp.gt.f32.partialorder %v430_v41, 0.0 }
 0x4de   :  { %v879_v34 = vpop.xlane.xlu1 %878  ;;  %v589_v38 = vmul.f32 1.442695, %v588_v44 }
 0x4df   :  { %v893_v31 = vsub.f32 %v1761_v5, %v879_v34  ;;  %v653_v5 = vmin.f32 %v1711_v58, 0.0 }
 0x4e1   :  { %v905_v36 = vmul.f32 1.442695, %v893_v31  ;;  %v654_v51 = vmul.f32 1.442695, %v653_v5 }
 0x4e3   :  { %1413 = vpow2.f32 %v905_v36  ;;  %v432_v49 = vpop.f32.mrf.mxu2 }
 0x4e4   :  { %1415 = vpow2.f32 %v589_v38 }
 0x4e9   :  { %v1814_v39 = vpop.eup %1413 }
 0x4ea   :  { %v925_v24 = vsel %vm289_vm1, %v1814_v39, 0.0  ;;  %v1416_v2 = vpop.eup %1415 }
 0x4eb   :  { %926 = vadd.xlane.f32.xlu2 %v925_v24  ;;  %v1304_v22 = vadd.f32 -1.0, %v1416_v2 }
 0x4ed   :  { %v592_v28 = vsel %vm587_vm6, %v430_v41, %v1304_v22  ;;  %vm663_vm6 = vcmask 913152  }
 0x4ee   :  { %v593_v1 = vpack.c.bf16 %v592_v28, %v592_v28 }
 0x4f4   :  { %v918_v20 = vpop.xlane.xlu1 %917 }
 0x4f5   :  { %1417 = vrcp.f32 %v918_v20 }
 0x4f6   :  { %1419 = vpow2.f32 %v615_v33 }
 0x4f7   :  { %1421 = vpow2.f32 %v654_v51 }
 0x4fb   :  { %v1418_v23 = vpop.eup %1417 }
 0x4fc   :  { %v946_v62 = vmul.f32 %v1418_v23, %v1766_v18  ;;  %v1420_v30 = vpop.eup %1419 }
 0x4fd   :  { %v1306_v12 = vadd.f32 -1.0, %v1420_v30  ;;  %v1422_v7 = vpop.eup %1421 }
 0x4fe   :  { %v954_v46 = vpack.c.bf16 %v946_v62, %v946_v62  ;;  %v1309_v8 = vadd.f32 -1.0, %v1422_v7 }
 0x4ff   :  { %v618_v19 = vsel %vm613_vm7, %v1695_v40, %v1306_v12 }
 0x500   :  { %1322 = vmatmul.msk.bf16.vlgmr.msrb.gmra.mxu2 %vm289_vm1, %v954_v46  ;;  %v619_v50 = vpack.c.bf16 %v618_v19, %v618_v19  ;;  %v657_v40 = vsel %vm652_vm8, %v1711_v58, %v1309_v8 }
 0x501   :  { %1099 = vmatpush.bf16.xpose.msrb.mxu2 %v1090_v35  ;;  %v885_v47 = vpop.xlane.xlu2 %884  ;;  %v658_v14 = vpack.c.bf16 %v657_v40, %v657_v40 }
 0x502   :  { %v895_v4 = vsub.f32 %v1772_v52, %v885_v47 }
 0x503   :  { %595 = vrot.lane.b32.xlu2 %v593_v1, %s1462_s4 }
 0x504   :  { %v909_v18 = vmul.f32 1.442695, %v895_v4  ;;  %v915_v17 = vpop.xlane.xlu1 %914 }
 0x505   :  { %1423 = vrcp.f32 %v915_v17 }
 0x506   :  { %1425 = vpow2.f32 %v909_v18 }
 0x50b   :  { %v1424_v6 = vpop.eup %1423  ;;  %621 = vrot.lane.b32.xlu2 %v619_v50, %s1463_s5 }
 0x50c   :  { %v1831_v9 = vpop.eup %1425  ;;  %v945_v52 = vmul.f32 %v1424_v6, %v1776_v21  ;;  %v1066_v21 = vsel %vm289_vm1, %v1061_v45, 0 }
 0x50d   :  { %v931_v57 = vsel %vm289_vm1, %v1831_v9, 0.0 }
 0x50e   :  { %v953_v59 = vpack.c.bf16 %v945_v52, %v945_v52  ;;  %932 = vadd.xlane.f32.xlu1 %v931_v57 }
 0x50f   :  { %v924_v60 = vpop.xlane.xlu2 %923 }
 0x510   :  { %1427 = vrcp.f32 %v924_v60  ;;  %1321 = vmatmul.msk.bf16.vlgmr.msra.gmra.mxu1 %vm289_vm1, %v953_v59 }
 0x511   :  { %1075 = vmatpush.bf16.xpose.msra.mxu1 %v1066_v21  ;;  %1429 = vpow2.f32 %v602_v0 }
 0x513   :  { %660 = vrot.lane.b32.xlu2 %v658_v14, %s1464_s6 }
 0x516   :  { %v1428_v16 = vpop.eup %1427 }
 0x517   :  { %v948_v58 = vmul.f32 %v1428_v16, %v1782_v37  ;;  %v921_v27 = vpop.xlane.xlu0 %920  ;;  %v1430_v26 = vpop.eup %1429 }
 0x518   :  { %1431 = vrcp.f32 %v921_v27  ;;  %v1305_v45 = vadd.f32 -1.0, %v1430_v26 }
 0x519   :  { %v956_v11 = vpack.c.bf16 %v948_v58, %v948_v58 }
 0x51a   :  { %v605_v41 = vsel %vm600_vm10, %v1621_v48, %v1305_v45 }
 0x51b   :  { %1324 = vmatmul.msk.bf16.vlgmr.msra.gmra.mxu2 %vm289_vm1, %v956_v11  ;;  %v606_v63 = vpack.c.bf16 %v605_v41, %v605_v41 }
 0x51c   :  { %1147 = vmatpush.bf16.xpose.msra.mxu2 %v1138_v42 }
 0x51e   :  { %v1432_v43 = vpop.eup %1431 }
 0x51f   :  { %v947_v29 = vmul.f32 %v1432_v43, %v1788_v25  ;;  %v930_v53 = vpop.xlane.xlu1 %929  ;;  %v936_v31 = vpop.xlane.xlu0 %935 }
 0x520   :  { %1433 = vrcp.f32 %v930_v53 }
 0x521   :  { %v955_v37 = vpack.c.bf16 %v947_v29, %v947_v29  ;;  %1435 = vrcp.f32 %v936_v31 }
 0x523   :  { %1323 = vmatmul.msk.bf16.vlgmr.msrb.gmra.mxu1 %vm289_vm1, %v955_v37 }
 0x524   :  { %1123 = vmatpush.bf16.xpose.msrb.mxu1 %v1114_v61 }
 0x526   :  { %v1434_v13 = vpop.eup %1433 }
 0x527   :  { %v950_v34 = vmul.f32 %v1434_v13, %v1795_v3  ;;  %608 = vrot.lane.b32.xlu1 %v606_v63, %s1465_s7  ;;  %v1436_v48 = vpop.eup %1435 }
 0x528   :  { %v952_v36 = vmul.f32 %v1436_v48, %v1793_v15 }
 0x529   :  { %v958_v25 = vpack.c.bf16 %v950_v34, %v950_v34 }
 0x52a   :  { %v960_v49 = vpack.c.bf16 %v952_v36, %v952_v36 }
 0x52b   :  { %1326 = vmatmul.msk.bf16.vlgmr.msrb.gmra.mxu2 %vm289_vm1, %v958_v25 }
 0x53b   :  { %1328 = vmatmul.msk.bf16.vlgmr.msra.gmra.mxu2 %vm289_vm1, %v960_v49 }
 0x541   :  { %v502_v54 = vpop.f32.mrf.mxu2 }
 0x542   :  { %v627_v55 = vmin.f32 %v502_v54, 0.0  ;;  %vm626_vm11 = vcmp.gt.f32.partialorder %v502_v54, 0.0 }
 0x544   :  { %v628_v56 = vmul.f32 1.442695, %v627_v55 }
 0x546   :  { %1437 = vpow2.f32 %v628_v56 }
 0x549   :  { %v504_v44 = vpop.f32.mrf.mxu2 }
 0x54c   :  { %v1438_v3 = vpop.eup %1437 }
 0x54d   :  { %v1307_v24 = vadd.f32 -1.0, %v1438_v3  ;;  %v648_v3 = vpop.permute.xlu0 %647 }
 0x54f   :  { %v631_v38 = vsel %vm626_vm11, %v502_v54, %v1307_v24  ;;  %vm676_vm11 = vcmask 1044352  }
 0x550   :  { %v632_v32 = vpack.c.bf16 %v631_v38, %v631_v38 }
 0x551   :  { %v1864_v20 = vpop.f32.mrf.mxu2 }
 0x552   :  { %634 = vrot.lane.b32.xlu1 %v632_v32, %s1466_s8  ;;  %v666_v42 = vmin.f32 %v1864_v20, 0.0  ;;  %vm665_vm3 = vcmp.gt.f32.partialorder %v1864_v20, 0.0 }
 0x554   :  { %v667_v41 = vmul.f32 1.442695, %v666_v42 }
 0x559   :  { %v576_v33 = vpop.f32.mrf.mxu2 }
 0x55e   :  { %v927_v15 = vpop.xlane.xlu2 %926 }
 0x55f   :  { %1439 = vrcp.f32 %v927_v15 }
 0x565   :  { %v1440_v2 = vpop.eup %1439 }
 0x566   :  { %v949_v5 = vmul.f32 %v1440_v2, %v1814_v39  ;;  %v596_v22 = vpop.permute.xlu2 %595 }
 0x567   :  { %599 = vst.msk [vmem:[%s1940_s2] sm:$0xf] %vm598_vm12, %v596_v22 }
 0x568   :  { %v957_v23 = vpack.c.bf16 %v949_v5, %v949_v5 }
 0x56a   :  { %1325 = vmatmul.msk.bf16.vlgmr.msra.gmra.mxu1 %vm289_vm1, %v957_v23 }
 0x56e   :  { %v622_v52 = vpop.permute.xlu2 %621 }
 0x576   :  { %v661_v38 = vpop.permute.xlu2 %660 }
 0x581   :  { %v933_v62 = vpop.xlane.xlu1 %932 }
 0x582   :  { %1441 = vrcp.f32 %v933_v62 }
 0x583   :  { %v1005_v51 = vpop.f32.mrf.mxu2 }
 0x584   :  { %v1163_v28 = vmin.f32 %v1005_v51, 0.0  ;;  %vm1162_vm13 = vcmp.gt.f32.partialorder %v1005_v51, 0.0 }
 0x586   :  { %v1164_v46 = vmul.f32 1.442695, %v1163_v28 }
 0x588   :  { %v1442_v30 = vpop.eup %1441  ;;  %1443 = vpow2.f32 %v1164_v46 }
 0x589   :  { %v951_v35 = vmul.f32 %v1442_v30, %v1831_v9 }
 0x58b   :  { %v959_v1 = vpack.c.bf16 %v951_v35, %v951_v35  ;;  %v1007_v39 = vpop.f32.mrf.mxu2 }
 0x58d   :  { %v981_v47 = vpop.f32.mrf.mxu1  ;;  %1327 = vmatmul.msk.bf16.vlgmr.msrb.gmra.mxu1 %vm289_vm1, %v959_v1 }
 0x58e   :  { %v1444_v12 = vpop.eup %1443  ;;  %v1154_v4 = vmin.f32 %v981_v47, 0.0  ;;  %vm1153_vm0 = vcmp.gt.f32.partialorder %v981_v47, 0.0 }
 0x58f   :  { %v1331_v18 = vadd.f32 -1.0, %v1444_v12 }
 0x590   :  { %v1155_v17 = vmul.f32 1.442695, %v1154_v4 }
 0x591   :  { %v1167_v19 = vsel %vm1162_vm13, %v1005_v51, %v1331_v18 }
 0x592   :  { %v1168_v7 = vpack.c.bf16 %v1167_v19, %v1167_v19  ;;  %1445 = vpow2.f32 %v1155_v17 }
 0x594   :  { %1170 = vrot.lane.b32.xlu0 %v1168_v7, %s1462_s4 }
 0x595   :  { %v983_v50 = vpop.f32.mrf.mxu1 }
 0x598   :  { %v1446_v8 = vpop.eup %1445 }
 0x599   :  { %v1329_v6 = vadd.f32 -1.0, %v1446_v8  ;;  %v609_v9 = vpop.permute.xlu1 %608 }
 0x59a   :  { %612 = vst.msk [vmem:[%s1940_s2] sm:$0xf] %vm611_vm14, %v609_v9 }
 0x59b   :  { %v1158_v10 = vsel %vm1153_vm0, %v981_v47, %v1329_v6  ;;  %625 = vst.msk [vmem:[%s1940_s2] sm:$0xf] %vm624_vm15, %v622_v52 }
 0x59c   :  { %v1159_v57 = vpack.c.bf16 %v1158_v10, %v1158_v10 }
 0x59e   :  { %1330 = vst.msk [vmem:[%s1940_s2 + $0x4] sm:$0xf] %vm585_vm9, %v1159_v57  ;;  %v1053_v40 = vpop.f32.mrf.mxu2 }
 0x59f   :  { %v1187_v59 = vmin.f32 %v1053_v40, 0.0  ;;  %vm1186_vm9 = vcmp.gt.f32.partialorder %v1053_v40, 0.0 }
 0x5a0   :  { %v1029_v60 = vpop.f32.mrf.mxu1 }
 0x5a1   :  { %v1175_v21 = vmin.f32 %v1029_v60, 0.0  ;;  %v1188_v0 = vmul.f32 1.442695, %v1187_v59  ;;  %vm1174_vm1 = vcmp.gt.f32.partialorder %v1029_v60, 0.0 }
 0x5a3   :  { %v1176_v14 = vmul.f32 1.442695, %v1175_v21 }
 0x5a5   :  { %1447 = vpow2.f32 %v1176_v14 }
 0x5a6   :  { %v1055_v16 = vpop.f32.mrf.mxu2  ;;  %1449 = vpow2.f32 %v1188_v0 }
 0x5a8   :  { %v1031_v58 = vpop.f32.mrf.mxu1 }
 0x5ab   :  { %v1448_v27 = vpop.eup %1447 }
 0x5ac   :  { %v1333_v11 = vadd.f32 -1.0, %v1448_v27  ;;  %v1450_v26 = vpop.eup %1449 }
 0x5ad   :  { %v1335_v37 = vadd.f32 -1.0, %v1450_v26 }
 0x5ae   :  { %v1179_v43 = vsel %vm1174_vm1, %v1029_v60, %v1333_v11  ;;  %v1101_v45 = vpop.f32.mrf.mxu2 }
 0x5af   :  { %v1180_v29 = vpack.c.bf16 %v1179_v43, %v1179_v43  ;;  %v1211_v53 = vmin.f32 %v1101_v45, 0.0  ;;  %v1191_v63 = vsel %vm1186_vm9, %v1053_v40, %v1335_v37  ;;  %vm1210_vm2 = vcmp.gt.f32.partialorder %v1101_v45, 0.0 }
 0x5b0   :  { %v1192_v34 = vpack.c.bf16 %v1191_v63, %v1191_v63 }
 0x5b1   :  { %v1212_v61 = vmul.f32 1.442695, %v1211_v53  ;;  %1182 = vrot.lane.b32.xlu0 %v1180_v29, %s1465_s7 }
 0x5b3   :  { %1451 = vpow2.f32 %v1212_v61 }
 0x5b4   :  { %1453 = vpow2.f32 %v667_v41 }
 0x5b6   :  { %v1103_v13 = vpop.f32.mrf.mxu2 }
 0x5b9   :  { %v1452_v25 = vpop.eup %1451  ;;  %1194 = vrot.lane.b32.xlu0 %v1192_v34, %s1463_s5 }
 0x5ba   :  { %v1339_v31 = vadd.f32 -1.0, %v1452_v25  ;;  %v1454_v48 = vpop.eup %1453 }
 0x5bb   :  { %v1310_v54 = vadd.f32 -1.0, %v1454_v48 }
 0x5bc   :  { %v1215_v36 = vsel %vm1210_vm2, %v1101_v45, %v1339_v31 }
 0x5bd   :  { %v1216_v49 = vpack.c.bf16 %v1215_v36, %v1215_v36  ;;  %v670_v56 = vsel %vm665_vm3, %v1864_v20, %v1310_v54 }
 0x5be   :  { %v1149_v55 = vpop.f32.mrf.mxu2  ;;  %v671_v24 = vpack.c.bf16 %v670_v56, %v670_v56 }
 0x5bf   :  { %1218 = vrot.lane.b32.xlu1 %v1216_v49, %s1461_s3  ;;  %v1235_v20 = vmin.f32 %v1149_v55, 0.0  ;;  %vm1234_vm8 = vcmp.gt.f32.partialorder %v1149_v55, 0.0 }
 0x5c1   :  { %v1236_v2 = vmul.f32 1.442695, %v1235_v20 }
 0x5c4   :  { %v635_v44 = vpop.permute.xlu1 %634 }
 0x5c5   :  { %638 = vst.msk [vmem:[%s1940_s2] sm:$0xf] %vm637_vm4, %v635_v44 }
 0x5c6   :  { %651 = vst.msk [vmem:[%s1940_s2] sm:$0xf] %vm650_vm5, %v648_v3  ;;  %v1151_v32 = vpop.f32.mrf.mxu2 }
 0x5c7   :  { %673 = vrot.lane.b32.xlu1 %v671_v24, %s1467_s21  ;;  %664 = vst.msk [vmem:[%s1940_s2] sm:$0xf] %vm663_vm6, %v661_v38 }
 0x5e7   :  { %v1077_v33 = vpop.f32.mrf.mxu1 }
 0x5e8   :  { %v1199_v15 = vmin.f32 %v1077_v33, 0.0  ;;  %vm1198_vm7 = vcmp.gt.f32.partialorder %v1077_v33, 0.0 }
 0x5ea   :  { %v1200_v5 = vmul.f32 1.442695, %v1199_v15 }
 0x5ec   :  { %1455 = vpow2.f32 %v1200_v5 }
 0x5ed   :  { %1457 = vpow2.f32 %v1236_v2 }
 0x5ef   :  { %v1079_v22 = vpop.f32.mrf.mxu1 }
 0x5f2   :  { %v1456_v23 = vpop.eup %1455 }
 0x5f3   :  { %v1337_v62 = vadd.f32 -1.0, %v1456_v23  ;;  %v1458_v51 = vpop.eup %1457 }
 0x5f4   :  { %v1343_v30 = vadd.f32 -1.0, %v1458_v51 }
 0x5f5   :  { %v1203_v28 = vsel %vm1198_vm7, %v1077_v33, %v1337_v62 }
 0x5f6   :  { %v1204_v46 = vpack.c.bf16 %v1203_v28, %v1203_v28  ;;  %v1239_v35 = vsel %vm1234_vm8, %v1149_v55, %v1343_v30 }
 0x5f7   :  { %v1240_v1 = vpack.c.bf16 %v1239_v35, %v1239_v35 }
 0x5f8   :  { %1206 = vrot.lane.b32.xlu2 %v1204_v46, %s1466_s8 }
 0x600   :  { %1242 = vrot.lane.b32.xlu2 %v1240_v1, %s1467_s21 }
 0x606   :  { %v1171_v39 = vpop.permute.xlu0 %1170 }
 0x607   :  { %1332 = vst.msk [vmem:[%s1940_s2 + $0x4] sm:$0xf] %vm598_vm12, %v1171_v39 }
 0x60a   :  { %v1125_v47 = vpop.f32.mrf.mxu1 }
 0x60b   :  { %v1223_v12 = vmin.f32 %v1125_v47, 0.0  ;;  %vm1222_vm10 = vcmp.gt.f32.partialorder %v1125_v47, 0.0 }
 0x60d   :  { %v1224_v4 = vmul.f32 1.442695, %v1223_v12 }
 0x60f   :  { %1459 = vpow2.f32 %v1224_v4 }
 0x612   :  { %v1127_v18 = vpop.f32.mrf.mxu1 }
 0x615   :  { %v1460_v17 = vpop.eup %1459 }
 0x616   :  { %v1341_v19 = vadd.f32 -1.0, %v1460_v17 }
 0x618   :  { %v1227_v7 = vsel %vm1222_vm10, %v1125_v47, %v1341_v19 }
 0x619   :  { %v1228_v50 = vpack.c.bf16 %v1227_v7, %v1227_v7 }
 0x61b   :  { %1230 = vrot.lane.b32.xlu0 %v1228_v50, %s1464_s6 }
 0x623   :  { %v1183_v8 = vpop.permute.xlu0 %1182 }
 0x624   :  { %1334 = vst.msk [vmem:[%s1940_s2 + $0x4] sm:$0xf] %vm611_vm14, %v1183_v8 }
 0x62b   :  { %v1195_v6 = vpop.permute.xlu0 %1194 }
 0x62c   :  { %1336 = vst.msk [vmem:[%s1940_s2 + $0x4] sm:$0xf] %vm624_vm15, %v1195_v6 }
 0x631   :  { %v1219_v9 = vpop.permute.xlu1 %1218 }
 0x639   :  { %v674_v52 = vpop.permute.xlu1 %673 }
 0x63a   :  { %677 = vst.msk [vmem:[%s1940_s2] sm:$0xf] %vm676_vm11, %v674_v52 }
 0x652   :  { %v1207_v10 = vpop.permute.xlu2 %1206 }
 0x653   :  { %1338 = vst.msk [vmem:[%s1940_s2 + $0x4] sm:$0xf] %vm637_vm4, %v1207_v10 }
 0x654   :  { %1340 = vst.msk [vmem:[%s1940_s2 + $0x4] sm:$0xf] %vm650_vm5, %v1219_v9 }
 0x65a   :  { %v1243_v40 = vpop.permute.xlu2 %1242 }
 0x68d   :  { %v1231_v57 = vpop.permute.xlu0 %1230 }
 0x68e   :  { %1342 = vst.msk [vmem:[%s1940_s2 + $0x4] sm:$0xf] %vm663_vm6, %v1231_v57 }
 0x68f   :  { %1344 = vst.msk [vmem:[%s1940_s2 + $0x4] sm:$0xf] %vm676_vm11, %v1243_v40 }

// kernel: gat_module_forward.5
= control target key start
LH: loop header
LB: loop body
LE: loop exit
PB: predicated region body
PF: predicated region fallthrough
CT: control target
= control target key end

     0   :  { %s973_s0 = inlined_call_operand.vmem [shape: f32[2,512], index: 0, kind: input, shape index: {}]   ;;  %s974_s1 = inlined_call_operand.vmem [shape: f32[512,256], index: 1, kind: input, shape index: {}]   ;;  %s975_s2 = inlined_call_operand.vmem [shape: f32[1,256], index: 2, kind: input, shape index: {}]   ;;  %s976_s3 = inlined_call_operand.vmem [shape: f32[256,10], index: 3, kind: input, shape index: {}]   ;;  %s977_s4 = inlined_call_operand.vmem [shape: f32[1,10], index: 4, kind: input, shape index: {}]   ;;  %s978_s5 = inlined_call_operand.hbm [shape: f32[2,10], index: 5, kind: output, shape index: {}]  }
   0x1   :  { %v116_v0 = vld [vmem:[%s974_s1 + $0x2f0] sm:$0xff]  ;;  %v114_v2 = vld [vmem:[%s974_s1 + $0x2e0] sm:$0xff]  ;;  %v117_v62 = vld [vmem:[%s974_s1 + $0x2f8] sm:$0xff] }
   0x2   :  { %v52_v1 = vld [vmem:[%s974_s1 + $0xf0] sm:$0xff]  ;;  %206 = vmatpush.msra.mxu2 %v116_v0  ;;  %v50_v4 = vld [vmem:[%s974_s1 + $0xe0] sm:$0xff]  ;;  %v53_v0 = vld [vmem:[%s974_s1 + $0xf8] sm:$0xff] }
   0x3   :  { %166 = vmatpush.msra.mxu0 %v52_v1  ;;  %v148_v3 = vld [vmem:[%s974_s1 + $0x3f0] sm:$0xff]  ;;  %v146_v7 = vld [vmem:[%s974_s1 + $0x3e0] sm:$0xff]  ;;  %v149_v1 = vld [vmem:[%s974_s1 + $0x3f8] sm:$0xff] }
   0x4   :  { %v84_v5 = vld [vmem:[%s974_s1 + $0x1f0] sm:$0xff]  ;;  %226 = vmatpush.msra.mxu3 %v148_v3  ;;  %207 = vmatpush.msra.mxu2 %v114_v2  ;;  %v82_v9 = vld [vmem:[%s974_s1 + $0x1e0] sm:$0xff]  ;;  %v115_v2 = vld [vmem:[%s974_s1 + $0x2e8] sm:$0xff] }
   0x5   :  { %186 = vmatpush.msra.mxu1 %v84_v5  ;;  %v112_v6 = vld [vmem:[%s974_s1 + $0x2d0] sm:$0xff]  ;;  %167 = vmatpush.msra.mxu0 %v50_v4  ;;  %v110_v11 = vld [vmem:[%s974_s1 + $0x2c0] sm:$0xff]  ;;  %v51_v4 = vld [vmem:[%s974_s1 + $0xe8] sm:$0xff] }
   0x6   :  { %v48_v8 = vld [vmem:[%s974_s1 + $0xd0] sm:$0xff]  ;;  %227 = vmatpush.msra.mxu3 %v146_v7  ;;  %v46_v12 = vld [vmem:[%s974_s1 + $0xc0] sm:$0xff]  ;;  %208 = vmatpush.msra.mxu2 %v112_v6  ;;  %v85_v5 = vld [vmem:[%s974_s1 + $0x1f8] sm:$0xff] }
   0x7   :  { %v144_v10 = vld [vmem:[%s974_s1 + $0x3d0] sm:$0xff]  ;;  %187 = vmatpush.msra.mxu1 %v82_v9  ;;  %168 = vmatpush.msra.mxu0 %v48_v8  ;;  %v142_v14 = vld [vmem:[%s974_s1 + $0x3c0] sm:$0xff]  ;;  %v113_v6 = vld [vmem:[%s974_s1 + $0x2d8] sm:$0xff] }
   0x8   :  { %v80_v13 = vld [vmem:[%s974_s1 + $0x1d0] sm:$0xff]  ;;  %v78_v15 = vld [vmem:[%s974_s1 + $0x1c0] sm:$0xff]  ;;  %228 = vmatpush.msra.mxu3 %v144_v10  ;;  %209 = vmatpush.msra.mxu2 %v110_v11  ;;  %v147_v7 = vld [vmem:[%s974_s1 + $0x3e8] sm:$0xff] }
   0x9   :  { %188 = vmatpush.msra.mxu1 %v80_v13  ;;  %v108_v16 = vld [vmem:[%s974_s1 + $0x2b0] sm:$0xff]  ;;  %169 = vmatpush.msra.mxu0 %v46_v12  ;;  %v106_v20 = vld [vmem:[%s974_s1 + $0x2a0] sm:$0xff]  ;;  %v49_v8 = vld [vmem:[%s974_s1 + $0xd8] sm:$0xff] }
   0xa   :  { %v44_v17 = vld [vmem:[%s974_s1 + $0xb0] sm:$0xff]  ;;  %229 = vmatpush.msra.mxu3 %v142_v14  ;;  %v42_v21 = vld [vmem:[%s974_s1 + $0xa0] sm:$0xff]  ;;  %210 = vmatpush.msra.mxu2 %v108_v16  ;;  %v83_v9 = vld [vmem:[%s974_s1 + $0x1e8] sm:$0xff] }
   0xb   :  { %v140_v18 = vld [vmem:[%s974_s1 + $0x3b0] sm:$0xff]  ;;  %189 = vmatpush.msra.mxu1 %v78_v15  ;;  %170 = vmatpush.msra.mxu0 %v44_v17  ;;  %v138_v22 = vld [vmem:[%s974_s1 + $0x3a0] sm:$0xff]  ;;  %v111_v10 = vld [vmem:[%s974_s1 + $0x2c8] sm:$0xff] }
   0xc   :  { %v76_v19 = vld [vmem:[%s974_s1 + $0x1b0] sm:$0xff]  ;;  %v74_v23 = vld [vmem:[%s974_s1 + $0x1a0] sm:$0xff]  ;;  %230 = vmatpush.msra.mxu3 %v140_v18  ;;  %211 = vmatpush.msra.mxu2 %v106_v20  ;;  %v145_v11 = vld [vmem:[%s974_s1 + $0x3d8] sm:$0xff] }
   0xd   :  { %190 = vmatpush.msra.mxu1 %v76_v19  ;;  %v104_v24 = vld [vmem:[%s974_s1 + $0x290] sm:$0xff]  ;;  %171 = vmatpush.msra.mxu0 %v42_v21  ;;  %v102_v28 = vld [vmem:[%s974_s1 + $0x280] sm:$0xff]  ;;  %v47_v12 = vld [vmem:[%s974_s1 + $0xc8] sm:$0xff] }
   0xe   :  { %v40_v25 = vld [vmem:[%s974_s1 + $0x90] sm:$0xff]  ;;  %231 = vmatpush.msra.mxu3 %v138_v22  ;;  %v38_v29 = vld [vmem:[%s974_s1 + $0x80] sm:$0xff]  ;;  %212 = vmatpush.msra.mxu2 %v104_v24  ;;  %v81_v13 = vld [vmem:[%s974_s1 + $0x1d8] sm:$0xff] }
   0xf   :  { %v136_v26 = vld [vmem:[%s974_s1 + $0x390] sm:$0xff]  ;;  %191 = vmatpush.msra.mxu1 %v74_v23  ;;  %172 = vmatpush.msra.mxu0 %v40_v25  ;;  %v134_v30 = vld [vmem:[%s974_s1 + $0x380] sm:$0xff]  ;;  %v109_v15 = vld [vmem:[%s974_s1 + $0x2b8] sm:$0xff] }
  0x10   :  { %v72_v27 = vld [vmem:[%s974_s1 + $0x190] sm:$0xff]  ;;  %v70_v31 = vld [vmem:[%s974_s1 + $0x180] sm:$0xff]  ;;  %232 = vmatpush.msra.mxu3 %v136_v26  ;;  %213 = vmatpush.msra.mxu2 %v102_v28  ;;  %v143_v16 = vld [vmem:[%s974_s1 + $0x3c8] sm:$0xff] }
  0x11   :  { %192 = vmatpush.msra.mxu1 %v72_v27  ;;  %v100_v32 = vld [vmem:[%s974_s1 + $0x270] sm:$0xff]  ;;  %173 = vmatpush.msra.mxu0 %v38_v29  ;;  %v98_v36 = vld [vmem:[%s974_s1 + $0x260] sm:$0xff]  ;;  %v45_v17 = vld [vmem:[%s974_s1 + $0xb8] sm:$0xff] }
  0x12   :  { %v36_v33 = vld [vmem:[%s974_s1 + $0x70] sm:$0xff]  ;;  %233 = vmatpush.msra.mxu3 %v134_v30  ;;  %v34_v37 = vld [vmem:[%s974_s1 + $0x60] sm:$0xff]  ;;  %214 = vmatpush.msra.mxu2 %v100_v32  ;;  %v79_v18 = vld [vmem:[%s974_s1 + $0x1c8] sm:$0xff] }
  0x13   :  { %v132_v34 = vld [vmem:[%s974_s1 + $0x370] sm:$0xff]  ;;  %193 = vmatpush.msra.mxu1 %v70_v31  ;;  %174 = vmatpush.msra.mxu0 %v36_v33  ;;  %v130_v38 = vld [vmem:[%s974_s1 + $0x360] sm:$0xff]  ;;  %v107_v19 = vld [vmem:[%s974_s1 + $0x2a8] sm:$0xff] }
  0x14   :  { %v68_v35 = vld [vmem:[%s974_s1 + $0x170] sm:$0xff]  ;;  %v66_v39 = vld [vmem:[%s974_s1 + $0x160] sm:$0xff]  ;;  %234 = vmatpush.msra.mxu3 %v132_v34  ;;  %215 = vmatpush.msra.mxu2 %v98_v36  ;;  %v141_v20 = vld [vmem:[%s974_s1 + $0x3b8] sm:$0xff] }
  0x15   :  { %194 = vmatpush.msra.mxu1 %v68_v35  ;;  %v96_v40 = vld [vmem:[%s974_s1 + $0x250] sm:$0xff]  ;;  %175 = vmatpush.msra.mxu0 %v34_v37  ;;  %v94_v44 = vld [vmem:[%s974_s1 + $0x240] sm:$0xff]  ;;  %v43_v21 = vld [vmem:[%s974_s1 + $0xa8] sm:$0xff] }
  0x16   :  { %v32_v41 = vld [vmem:[%s974_s1 + $0x50] sm:$0xff]  ;;  %235 = vmatpush.msra.mxu3 %v130_v38  ;;  %v30_v45 = vld [vmem:[%s974_s1 + $0x40] sm:$0xff]  ;;  %216 = vmatpush.msra.mxu2 %v96_v40  ;;  %v77_v22 = vld [vmem:[%s974_s1 + $0x1b8] sm:$0xff] }
  0x17   :  { %v128_v42 = vld [vmem:[%s974_s1 + $0x350] sm:$0xff]  ;;  %195 = vmatpush.msra.mxu1 %v66_v39  ;;  %176 = vmatpush.msra.mxu0 %v32_v41  ;;  %v126_v46 = vld [vmem:[%s974_s1 + $0x340] sm:$0xff]  ;;  %v105_v23 = vld [vmem:[%s974_s1 + $0x298] sm:$0xff] }
  0x18   :  { %v64_v43 = vld [vmem:[%s974_s1 + $0x150] sm:$0xff]  ;;  %v62_v47 = vld [vmem:[%s974_s1 + $0x140] sm:$0xff]  ;;  %236 = vmatpush.msra.mxu3 %v128_v42  ;;  %217 = vmatpush.msra.mxu2 %v94_v44  ;;  %v139_v24 = vld [vmem:[%s974_s1 + $0x3a8] sm:$0xff] }
  0x19   :  { %196 = vmatpush.msra.mxu1 %v64_v43  ;;  %v92_v48 = vld [vmem:[%s974_s1 + $0x230] sm:$0xff]  ;;  %177 = vmatpush.msra.mxu0 %v30_v45  ;;  %v90_v52 = vld [vmem:[%s974_s1 + $0x220] sm:$0xff]  ;;  %v41_v25 = vld [vmem:[%s974_s1 + $0x98] sm:$0xff] }
  0x1a   :  { %v28_v49 = vld [vmem:[%s974_s1 + $0x30] sm:$0xff]  ;;  %237 = vmatpush.msra.mxu3 %v126_v46  ;;  %v26_v53 = vld [vmem:[%s974_s1 + $0x20] sm:$0xff]  ;;  %218 = vmatpush.msra.mxu2 %v92_v48  ;;  %v75_v26 = vld [vmem:[%s974_s1 + $0x1a8] sm:$0xff] }
  0x1b   :  { %v124_v50 = vld [vmem:[%s974_s1 + $0x330] sm:$0xff]  ;;  %197 = vmatpush.msra.mxu1 %v62_v47  ;;  %178 = vmatpush.msra.mxu0 %v28_v49  ;;  %v122_v54 = vld [vmem:[%s974_s1 + $0x320] sm:$0xff]  ;;  %v103_v27 = vld [vmem:[%s974_s1 + $0x288] sm:$0xff] }
  0x1c   :  { %v60_v51 = vld [vmem:[%s974_s1 + $0x130] sm:$0xff]  ;;  %v58_v55 = vld [vmem:[%s974_s1 + $0x120] sm:$0xff]  ;;  %238 = vmatpush.msra.mxu3 %v124_v50  ;;  %219 = vmatpush.msra.mxu2 %v90_v52  ;;  %v137_v28 = vld [vmem:[%s974_s1 + $0x398] sm:$0xff] }
  0x1d   :  { %198 = vmatpush.msra.mxu1 %v60_v51  ;;  %v88_v56 = vld [vmem:[%s974_s1 + $0x210] sm:$0xff]  ;;  %179 = vmatpush.msra.mxu0 %v26_v53  ;;  %v86_v60 = vld [vmem:[%s974_s1 + $0x200] sm:$0xff]  ;;  %v39_v29 = vld [vmem:[%s974_s1 + $0x88] sm:$0xff] }
  0x1e   :  { %v24_v57 = vld [vmem:[%s974_s1 + $0x10] sm:$0xff]  ;;  %239 = vmatpush.msra.mxu3 %v122_v54  ;;  %v22_v61 = vld [vmem:[%s974_s1] sm:$0xff]  ;;  %220 = vmatpush.msra.mxu2 %v88_v56  ;;  %v73_v30 = vld [vmem:[%s974_s1 + $0x198] sm:$0xff] }
  0x1f   :  { %v120_v58 = vld [vmem:[%s974_s1 + $0x310] sm:$0xff]  ;;  %199 = vmatpush.msra.mxu1 %v58_v55  ;;  %180 = vmatpush.msra.mxu0 %v24_v57  ;;  %v118_v63 = vld [vmem:[%s974_s1 + $0x300] sm:$0xff]  ;;  %v101_v31 = vld [vmem:[%s974_s1 + $0x278] sm:$0xff] }
  0x20   :  { %v56_v59 = vld [vmem:[%s974_s1 + $0x110] sm:$0xff]  ;;  %240 = vmatpush.msra.mxu3 %v120_v58  ;;  %221 = vmatpush.msra.mxu2 %v86_v60  ;;  %v54_v3 = vld [vmem:[%s974_s1 + $0x100] sm:$0xff]  ;;  %v135_v32 = vld [vmem:[%s974_s1 + $0x388] sm:$0xff] }
  0x21   :  { %200 = vmatpush.msra.mxu1 %v56_v59  ;;  %181 = vmatpush.msra.mxu0 %v22_v61  ;;  %v21_v14 = vld [vmem:[%s973_s0] sm:$0xff]  ;;  %v37_v33 = vld [vmem:[%s974_s1 + $0x78] sm:$0xff]  ;;  %v71_v34 = vld [vmem:[%s974_s1 + $0x188] sm:$0xff] }
  0x22   :  { %286 = vmatpush.msrb.mxu2 %v117_v62  ;;  %241 = vmatpush.msra.mxu3 %v118_v63  ;;  %157 = vst [vmem:[#allocation1] ss:$4 sm:$0xff] %v21_v14  ;;  %v99_v35 = vld [vmem:[%s974_s1 + $0x268] sm:$0xff]  ;;  %v133_v36 = vld [vmem:[%s974_s1 + $0x378] sm:$0xff] }
  0x23   :  { %246 = vmatpush.msrb.mxu0 %v53_v0  ;;  %201 = vmatpush.msra.mxu1 %v54_v3  ;;  %v35_v37 = vld [vmem:[%s974_s1 + $0x68] sm:$0xff]  ;;  %v69_v38 = vld [vmem:[%s974_s1 + $0x178] sm:$0xff] }
  0x24   :  { %306 = vmatpush.msrb.mxu3 %v149_v1  ;;  %287 = vmatpush.msrb.mxu2 %v115_v2  ;;  %v97_v39 = vld [vmem:[%s974_s1 + $0x258] sm:$0xff]  ;;  %v131_v40 = vld [vmem:[%s974_s1 + $0x368] sm:$0xff] }
  0x25   :  { %247 = vmatpush.msrb.mxu0 %v51_v4  ;;  %266 = vmatpush.msrb.mxu1 %v85_v5 }
  0x26   :  { %288 = vmatpush.msrb.mxu2 %v113_v6  ;;  %307 = vmatpush.msrb.mxu3 %v147_v7 }
  0x27   :  { %248 = vmatpush.msrb.mxu0 %v49_v8  ;;  %267 = vmatpush.msrb.mxu1 %v83_v9 }
  0x28   :  { %289 = vmatpush.msrb.mxu2 %v111_v10  ;;  %308 = vmatpush.msrb.mxu3 %v145_v11 }
  0x29   :  { %249 = vmatpush.msrb.mxu0 %v47_v12  ;;  %268 = vmatpush.msrb.mxu1 %v81_v13 }
  0x2a   :  { %290 = vmatpush.msrb.mxu2 %v109_v15  ;;  %309 = vmatpush.msrb.mxu3 %v143_v16 }
  0x2b   :  { %250 = vmatpush.msrb.mxu0 %v45_v17  ;;  %269 = vmatpush.msrb.mxu1 %v79_v18 }
  0x2c   :  { %291 = vmatpush.msrb.mxu2 %v107_v19  ;;  %310 = vmatpush.msrb.mxu3 %v141_v20 }
  0x2d   :  { %251 = vmatpush.msrb.mxu0 %v43_v21  ;;  %270 = vmatpush.msrb.mxu1 %v77_v22 }
  0x2e   :  { %292 = vmatpush.msrb.mxu2 %v105_v23  ;;  %311 = vmatpush.msrb.mxu3 %v139_v24 }
  0x2f   :  { %252 = vmatpush.msrb.mxu0 %v41_v25  ;;  %271 = vmatpush.msrb.mxu1 %v75_v26 }
  0x30   :  { %293 = vmatpush.msrb.mxu2 %v103_v27  ;;  %312 = vmatpush.msrb.mxu3 %v137_v28 }
  0x31   :  { %253 = vmatpush.msrb.mxu0 %v39_v29  ;;  %272 = vmatpush.msrb.mxu1 %v73_v30 }
  0x32   :  { %294 = vmatpush.msrb.mxu2 %v101_v31  ;;  %313 = vmatpush.msrb.mxu3 %v135_v32 }
  0x33   :  { %254 = vmatpush.msrb.mxu0 %v37_v33  ;;  %273 = vmatpush.msrb.mxu1 %v71_v34 }
  0x34   :  { %10 = vsyncpa [#allocation3], 0  ;;  %295 = vmatpush.msrb.mxu2 %v99_v35  ;;  %314 = vmatpush.msrb.mxu3 %v133_v36  ;;  %v33_v41 = vld [vmem:[%s974_s1 + $0x58] sm:$0xff]  ;;  %v67_v42 = vld [vmem:[%s974_s1 + $0x168] sm:$0xff]  ;;  %s450_s8 = smov [#allocation2]   ;;  %s413_s11 = sshll.u32 %s978_s5, 4  ;;  %s414_s11 = int_to_ptr.hbm [resolvable:$true] %s413_s11 }
  0x35   :  { %255 = vmatpush.msrb.mxu0 %v35_v37  ;;  %274 = vmatpush.msrb.mxu1 %v69_v38  ;;  %v95_v43 = vld [vmem:[%s974_s1 + $0x248] sm:$0xff]  ;;  %v129_v44 = vld [vmem:[%s974_s1 + $0x358] sm:$0xff]  ;;  %v160_v45 = vld.sshfl [vmem:[#allocation1 + $0x10] sm:$0xff pattern:$0x73625140]  ;;  %s411_s0 = sshll.u32 %s450_s8, 4  ;;  %s412_s0 = int_to_ptr.vmem [resolvable:$true] %s411_s0 }
  0x36   :  { %296 = vmatpush.msrb.mxu2 %v97_v39  ;;  %315 = vmatpush.msrb.mxu3 %v131_v40  ;;  %v31_v46 = vld [vmem:[%s974_s1 + $0x48] sm:$0xff]  ;;  %v65_v47 = vld [vmem:[%s974_s1 + $0x158] sm:$0xff]  ;;  %v158_v50 = vld.sshfl [vmem:[#allocation1] sm:$0xff pattern:$0x73625140]  ;;  %vm404_vm0 = vcmask 74752  }
  0x37   :  { %256 = vmatpush.msrb.mxu0 %v33_v41  ;;  %275 = vmatpush.msrb.mxu1 %v67_v42  ;;  %v93_v48 = vld [vmem:[%s974_s1 + $0x238] sm:$0xff]  ;;  %v127_v49 = vld [vmem:[%s974_s1 + $0x348] sm:$0xff]  ;;  %v342_v6 = vld [vmem:[%s976_s3 + $0x70] sm:$0xff] }
  0x38   :  { %297 = vmatpush.msrb.mxu2 %v95_v43  ;;  %316 = vmatpush.msrb.mxu3 %v129_v44  ;;  %v161_v51 = vld.sshfl [vmem:[#allocation1 + $0x18] sm:$0xff pattern:$0x73625140]  ;;  %v63_v53 = vld [vmem:[%s974_s1 + $0x148] sm:$0xff]  ;;  %v358_v9 = vld [vmem:[%s976_s3 + $0xf0] sm:$0xff] }
  0x39   :  { %222 = vmatmul.f32.vlgmr.msra.gmra.mxu2 %v160_v45  ;;  %257 = vmatpush.msrb.mxu0 %v31_v46  ;;  %v29_v52 = vld [vmem:[%s974_s1 + $0x38] sm:$0xff]  ;;  %v91_v54 = vld [vmem:[%s974_s1 + $0x228] sm:$0xff]  ;;  %v340_v10 = vld [vmem:[%s976_s3 + $0x60] sm:$0xff] }
  0x3a   :  { %276 = vmatpush.msrb.mxu1 %v65_v47  ;;  %298 = vmatpush.msrb.mxu2 %v93_v48  ;;  %v125_v55 = vld [vmem:[%s974_s1 + $0x338] sm:$0xff]  ;;  %v159_v56 = vld.sshfl [vmem:[#allocation1 + $0x8] sm:$0xff pattern:$0x73625140]  ;;  %v356_v13 = vld [vmem:[%s976_s3 + $0xe0] sm:$0xff] }
  0x3b   :  { %317 = vmatpush.msrb.mxu3 %v127_v49  ;;  %182 = vmatmul.f32.vlgmr.msra.gmra.mxu0 %v158_v50  ;;  %v27_v57 = vld [vmem:[%s974_s1 + $0x28] sm:$0xff]  ;;  %v61_v58 = vld [vmem:[%s974_s1 + $0x138] sm:$0xff]  ;;  %v338_v14 = vld [vmem:[%s976_s3 + $0x50] sm:$0xff] }
  0x3c   :  { %242 = vmatmul.f32.vlgmr.msra.gmra.mxu3 %v161_v51  ;;  %258 = vmatpush.msrb.mxu0 %v29_v52  ;;  %v89_v59 = vld [vmem:[%s974_s1 + $0x218] sm:$0xff]  ;;  %v123_v60 = vld [vmem:[%s974_s1 + $0x328] sm:$0xff]  ;;  %v354_v17 = vld [vmem:[%s976_s3 + $0xd0] sm:$0xff] }
  0x3d   :  { %277 = vmatpush.msrb.mxu1 %v63_v53  ;;  %299 = vmatpush.msrb.mxu2 %v91_v54  ;;  %v25_v61 = vld [vmem:[%s974_s1 + $0x18] sm:$0xff]  ;;  %v59_v62 = vld [vmem:[%s974_s1 + $0x128] sm:$0xff]  ;;  %v336_v18 = vld [vmem:[%s976_s3 + $0x40] sm:$0xff] }
  0x3e   :  { %318 = vmatpush.msrb.mxu3 %v125_v55  ;;  %202 = vmatmul.f32.vlgmr.msra.gmra.mxu1 %v159_v56  ;;  %v87_v63 = vld [vmem:[%s974_s1 + $0x208] sm:$0xff]  ;;  %v121_v0 = vld [vmem:[%s974_s1 + $0x318] sm:$0xff]  ;;  %v334_v20 = vld [vmem:[%s976_s3 + $0x30] sm:$0xff] }
  0x3f   :  { %259 = vmatpush.msrb.mxu0 %v27_v57  ;;  %278 = vmatpush.msrb.mxu1 %v61_v58  ;;  %v23_v1 = vld [vmem:[%s974_s1 + $0x8] sm:$0xff]  ;;  %v57_v2 = vld [vmem:[%s974_s1 + $0x118] sm:$0xff]  ;;  %v332_v23 = vld [vmem:[%s976_s3 + $0x20] sm:$0xff] }
  0x40   :  { %300 = vmatpush.msrb.mxu2 %v89_v59  ;;  %319 = vmatpush.msrb.mxu3 %v123_v60  ;;  %v119_v3 = vld [vmem:[%s974_s1 + $0x308] sm:$0xff]  ;;  %v343_v5 = vld [vmem:[%s976_s3 + $0x78] sm:$0xff]  ;;  %v352_v24 = vld [vmem:[%s976_s3 + $0xc0] sm:$0xff] }
  0x41   :  { %260 = vmatpush.msrb.mxu0 %v25_v61  ;;  %279 = vmatpush.msrb.mxu1 %v59_v62  ;;  %v55_v4 = vld [vmem:[%s974_s1 + $0x108] sm:$0xff]  ;;  %v359_v7 = vld [vmem:[%s976_s3 + $0xf8] sm:$0xff]  ;;  %v330_v27 = vld [vmem:[%s976_s3 + $0x10] sm:$0xff] }
  0x42   :  { %301 = vmatpush.msrb.mxu2 %v87_v63  ;;  %320 = vmatpush.msrb.mxu3 %v121_v0  ;;  %v341_v8 = vld [vmem:[%s976_s3 + $0x68] sm:$0xff]  ;;  %v339_v12 = vld [vmem:[%s976_s3 + $0x58] sm:$0xff]  ;;  %v350_v28 = vld [vmem:[%s976_s3 + $0xb0] sm:$0xff] }
  0x43   :  { %302 = vmatmul.f32.vlgmr.msrb.gmra.mxu2 %v160_v45  ;;  %261 = vmatpush.msrb.mxu0 %v23_v1  ;;  %v357_v11 = vld [vmem:[%s976_s3 + $0xe8] sm:$0xff]  ;;  %v355_v15 = vld [vmem:[%s976_s3 + $0xd8] sm:$0xff]  ;;  %v328_v31 = vld [vmem:[%s976_s3] sm:$0xff] }
  0x44   :  { %280 = vmatpush.msrb.mxu1 %v57_v2  ;;  %321 = vmatpush.msrb.mxu3 %v119_v3  ;;  %v337_v16 = vld [vmem:[%s976_s3 + $0x48] sm:$0xff]  ;;  %v335_v19 = vld [vmem:[%s976_s3 + $0x38] sm:$0xff]  ;;  %v348_v32 = vld [vmem:[%s976_s3 + $0xa0] sm:$0xff] }
  0x45   :  { %262 = vmatmul.f32.vlgmr.msrb.gmra.mxu0 %v158_v50  ;;  %322 = vmatmul.f32.vlgmr.msrb.gmra.mxu3 %v161_v51  ;;  %v333_v21 = vld [vmem:[%s976_s3 + $0x28] sm:$0xff]  ;;  %v331_v25 = vld [vmem:[%s976_s3 + $0x18] sm:$0xff]  ;;  %v346_v34 = vld [vmem:[%s976_s3 + $0x90] sm:$0xff] }
  0x46   :  { %281 = vmatpush.msrb.mxu1 %v55_v4  ;;  %364 = vmatpush.msra.mxu0 %v343_v5  ;;  %v353_v22 = vld [vmem:[%s976_s3 + $0xc8] sm:$0xff]  ;;  %v351_v26 = vld [vmem:[%s976_s3 + $0xb8] sm:$0xff]  ;;  %v344_v36 = vld [vmem:[%s976_s3 + $0x80] sm:$0xff] }
  0x47   :  { %282 = vmatmul.f32.vlgmr.msrb.gmra.mxu1 %v159_v56  ;;  %v329_v29 = vld [vmem:[%s976_s3 + $0x8] sm:$0xff]  ;;  %v347_v33 = vld [vmem:[%s976_s3 + $0x98] sm:$0xff]  ;;  %v150_v37 = vld [vmem:[%s975_s2] sm:$0x3] }
  0x48   :  { %365 = vmatpush.msra.mxu0 %v342_v6  ;;  %384 = vmatpush.msra.mxu1 %v359_v7  ;;  %v349_v30 = vld [vmem:[%s976_s3 + $0xa8] sm:$0xff]  ;;  %v152_v38 = vperm.slane %v150_v37, 0  ;;  %v153_v46 = vperm.slane %v150_v37, 1  ;;  %v423_v58 = vld [vmem:[%s977_s4] ss:$0 sm:$0xff] }
  0x49   :  { %v345_v35 = vld [vmem:[%s976_s3 + $0x88] sm:$0xff] }
  0x4a   :  { %366 = vmatpush.msra.mxu0 %v341_v8  ;;  %385 = vmatpush.msra.mxu1 %v358_v9 }
  0x4c   :  { %367 = vmatpush.msra.mxu0 %v340_v10  ;;  %386 = vmatpush.msra.mxu1 %v357_v11 }
  0x4e   :  { %368 = vmatpush.msra.mxu0 %v339_v12  ;;  %387 = vmatpush.msra.mxu1 %v356_v13 }
  0x50   :  { %369 = vmatpush.msra.mxu0 %v338_v14  ;;  %388 = vmatpush.msra.mxu1 %v355_v15 }
  0x52   :  { %370 = vmatpush.msra.mxu0 %v337_v16  ;;  %389 = vmatpush.msra.mxu1 %v354_v17 }
  0x54   :  { %371 = vmatpush.msra.mxu0 %v336_v18  ;;  %390 = vmatpush.msra.mxu1 %v353_v22 }
  0x56   :  { %372 = vmatpush.msra.mxu0 %v335_v19  ;;  %391 = vmatpush.msra.mxu1 %v352_v24 }
  0x58   :  { %373 = vmatpush.msra.mxu0 %v334_v20  ;;  %392 = vmatpush.msra.mxu1 %v351_v26 }
  0x5a   :  { %374 = vmatpush.msra.mxu0 %v333_v21  ;;  %393 = vmatpush.msra.mxu1 %v350_v28 }
  0x5c   :  { %375 = vmatpush.msra.mxu0 %v332_v23  ;;  %394 = vmatpush.msra.mxu1 %v349_v30 }
  0x5e   :  { %376 = vmatpush.msra.mxu0 %v331_v25  ;;  %395 = vmatpush.msra.mxu1 %v348_v32 }
  0x60   :  { %377 = vmatpush.msra.mxu0 %v330_v27  ;;  %396 = vmatpush.msra.mxu1 %v347_v33 }
  0x62   :  { %378 = vmatpush.msra.mxu0 %v329_v29  ;;  %397 = vmatpush.msra.mxu1 %v346_v34 }
  0x64   :  { %379 = vmatpush.msra.mxu0 %v328_v31  ;;  %398 = vmatpush.msra.mxu1 %v345_v35 }
  0x66   :  { %399 = vmatpush.msra.mxu1 %v344_v36 }
  0xb8   :  { %v183_v39 = vpop.f32.mrf.mxu0 }
  0xb9   :  { %v184_v40 = vadd.f32 %v183_v39, %v152_v38 }
  0xbb   :  { %v203_v41 = vpop.f32.mrf.mxu1 }
  0xbc   :  { %v204_v42 = vadd.f32 %v203_v41, %v184_v40  ;;  %v223_v43 = vpop.f32.mrf.mxu2 }
  0xbe   :  { %v224_v44 = vadd.f32 %v223_v43, %v204_v42 }
  0xbf   :  { %v243_v45 = vpop.f32.mrf.mxu3 }
  0xc0   :  { %v244_v47 = vadd.f32 %v243_v45, %v224_v44 }
  0xc2   :  { %v326_v48 = vmax.f32 %v244_v47, 0.0  ;;  %v263_v49 = vpop.f32.mrf.mxu0 }
  0xc3   :  { %v264_v50 = vadd.f32 %v263_v49, %v153_v46 }
  0xc4   :  { %v283_v51 = vpop.f32.mrf.mxu1  ;;  %380 = vmatmul.f32.vlgmr.msra.gmra.mxu0 %v326_v48 }
  0xc5   :  { %v284_v52 = vadd.f32 %v283_v51, %v264_v50 }
  0xc6   :  { %v303_v53 = vpop.f32.mrf.mxu2 }
  0xc7   :  { %v304_v54 = vadd.f32 %v303_v53, %v284_v52 }
  0xc8   :  { %v323_v55 = vpop.f32.mrf.mxu3 }
  0xc9   :  { %v324_v56 = vadd.f32 %v323_v55, %v304_v54 }
  0xcb   :  { %v327_v57 = vmax.f32 %v324_v56, 0.0 }
  0xcd   :  { %400 = vmatmul.f32.vlgmr.msra.gmra.mxu1 %v327_v57 }
 0x141   :  { %v381_v59 = vpop.f32.mrf.mxu0 }
 0x142   :  { %v382_v60 = vadd.f32 %v423_v58, %v381_v59 }
 0x14a   :  { %v401_v61 = vpop.f32.mrf.mxu1 }
 0x14b   :  { %v402_v62 = vadd.f32 %v401_v61, %v382_v60 }
 0x14d   :  { %405 = vst.msk [vmem:[#allocation2] sm:$0x3] %vm404_vm0, %v402_v62 }
 0x14e   :  { %416 = dma.vmem_to_hbm [thread:$0]  %s412_s0, 32, %s414_s11, [#allocation3]  }
 0x14f   :  { %448 = dma.done.wait [#allocation3], 32  }
 0x150   :  { %449 = vsyncadd [#allocation3], 4294967264 }
 0x151   :  { %421 = vsyncpa [#allocation3], 1 }

// kernel: gat_module_forward.4
= control target key start
LH: loop header
LB: loop body
LE: loop exit
PB: predicated region body
PF: predicated region fallthrough
CT: control target
= control target key end

     0   :  { %vm627_vm0 = vcmask 64512   ;;  %s3480_s0 = inlined_call_operand.vmem [shape: bf16[2,8,128], index: 0, kind: input, shape index: {}]   ;;  %s3481_s1 = inlined_call_operand.vmem [shape: bf16[528,128], index: 1, kind: input, shape index: {}]   ;;  %s3482_s2 = inlined_call_operand.vmem [shape: f32[2,8,64], index: 2, kind: output, shape index: {}]  }
   0x1   :  { %v78_v0 = vld [vmem:[%s3480_s0] sm:$0xf]  ;;  %v2551_v2 = vld [vmem:[%s3481_s1 + $0xc8] sm:$0xff]  ;;  %v2560_v4 = vld [vmem:[%s3481_s1 + $0xd0] sm:$0xff] }
   0x2   :  { %284 = vmatpush.bf16.xpose.msra.mxu0 %v78_v0  ;;  %2410 = vmatpush.bf16.xpose.msra.mxu2 %v78_v0  ;;  %v2377_v1 = vld [vmem:[%s3481_s1] sm:$0xff]  ;;  %v2378_v3 = vld [vmem:[%s3481_s1 + $0x8] sm:$0xff]  ;;  %v2379_v5 = vld [vmem:[%s3481_s1 + $0x10] sm:$0xff]  ;;  %v516_v0 = vlaneseq }
   0x3   :  { %v2569_v6 = vld [vmem:[%s3481_s1 + $0xd8] sm:$0xff]  ;;  %v2578_v8 = vld [vmem:[%s3481_s1 + $0xe0] sm:$0xff]  ;;  %v2406_v10 = vld [vmem:[%s3481_s1 + $0xe8] sm:$0xff] }
   0x4   :  { %v2380_v7 = vld [vmem:[%s3481_s1 + $0x18] sm:$0xff]  ;;  %v2381_v9 = vld [vmem:[%s3481_s1 + $0x20] sm:$0xff]  ;;  %v2382_v11 = vld [vmem:[%s3481_s1 + $0x28] sm:$0xff] }
   0x5   :  { %v2407_v12 = vld [vmem:[%s3481_s1 + $0xf0] sm:$0xff]  ;;  %v2408_v14 = vld [vmem:[%s3481_s1 + $0xf8] sm:$0xff]  ;;  %v2409_v16 = vld [vmem:[%s3481_s1 + $0x100] sm:$0xff] }
   0x6   :  { %v2383_v13 = vld [vmem:[%s3481_s1 + $0x30] sm:$0xff]  ;;  %v2384_v15 = vld [vmem:[%s3481_s1 + $0x38] sm:$0xff]  ;;  %v2385_v17 = vld [vmem:[%s3481_s1 + $0x40] sm:$0xff] }
   0x7   :  { %v2386_v22 = vld [vmem:[%s3481_s1 + $0x48] sm:$0xff]  ;;  %v2387_v27 = vld [vmem:[%s3481_s1 + $0x50] sm:$0xff]  ;;  %v2388_v34 = vld [vmem:[%s3481_s1 + $0x58] sm:$0xff] }
   0x8   :  { %v2637_v52 = vld [vmem:[%s3481_s1 + $0x60] sm:$0xff] }
   0x9   :  { %285 = vmatmul.bf16.vlgmr.msra.gmra.mxu0 %v2377_v1  ;;  %410 = vmatmul.bf16.vlgmr.msra.gmra.mxu2 %v2551_v2 }
  0x19   :  { %290 = vmatmul.bf16.gmra.mxu0 %v2378_v3  ;;  %415 = vmatmul.bf16.gmra.mxu2 %v2560_v4  ;;  %v2649_v3 = vld [vmem:[%s3481_s1 + $0x68] sm:$0xff] }
  0x29   :  { %295 = vmatmul.bf16.gmra.mxu0 %v2379_v5  ;;  %420 = vmatmul.bf16.gmra.mxu2 %v2569_v6  ;;  %v517_v5 = vshrl.u32 %v516_v0, 7 }
  0x2b   :  { %2414 = vset.pattern.permute.xlu2 %v517_v5  ;;  %2412 = vset.pattern.permute.xlu0 %v517_v5 }
  0x2c   :  { %2413 = vset.pattern.permute.xlu1 %v517_v5 }
  0x39   :  { %300 = vmatmul.bf16.gmra.mxu0 %v2380_v7  ;;  %425 = vmatmul.bf16.gmra.mxu2 %v2578_v8 }
  0x49   :  { %305 = vmatmul.bf16.gmra.mxu0 %v2381_v9  ;;  %430 = vmatmul.bf16.gmra.mxu2 %v2406_v10 }
  0x59   :  { %310 = vmatmul.bf16.gmra.mxu0 %v2382_v11  ;;  %435 = vmatmul.bf16.gmra.mxu2 %v2407_v12 }
  0x69   :  { %315 = vmatmul.bf16.gmra.mxu0 %v2383_v13  ;;  %440 = vmatmul.bf16.gmra.mxu2 %v2408_v14 }
  0x79   :  { %320 = vmatmul.bf16.gmra.mxu0 %v2384_v15  ;;  %445 = vmatmul.bf16.gmra.mxu2 %v2409_v16  ;;  %v2656_v15 = vld [vmem:[%s3481_s1 + $0x70] sm:$0xff] }
  0x86   :  { %v286_v18 = vpop.f32.mrf.mxu0 }
  0x87   :  { %v451_v32 = vpack.c.bf16 %v286_v18, %v286_v18 }
  0x89   :  { %325 = vmatmul.bf16.gmra.mxu0 %v2385_v17  ;;  %v732_v36 = vunpack.c.l.b16 %v451_v32 }
  0x8c   :  { %v2608_v19 = vpop.f32.mrf.mxu2 }
  0x8e   :  { %v288_v20 = vpop.f32.mrf.mxu0 }
  0x8f   :  { %v452_v33 = vpack.c.bf16 %v288_v20, %v288_v20 }
  0x91   :  { %v733_v37 = vunpack.c.l.b16 %v452_v33  ;;  %v2668_v33 = vld [vmem:[%s3481_s1 + $0x78] sm:$0xff] }
  0x93   :  { %v740_v40 = vpack.c.b16 %v733_v37, %v732_v36 }
  0x94   :  { %v2610_v21 = vpop.f32.mrf.mxu2 }
  0x95   :  { %v748_v9 = vsel %vm627_vm0, %v740_v40, 0 }
  0x96   :  { %v291_v23 = vpop.f32.mrf.mxu0 }
  0x97   :  { %v453_v54 = vpack.c.bf16 %v291_v23, %v291_v23 }
  0x99   :  { %330 = vmatmul.bf16.gmra.mxu0 %v2386_v22  ;;  %v734_v57 = vunpack.c.l.b16 %v453_v54 }
  0x9c   :  { %v2615_v24 = vpop.f32.mrf.mxu2 }
  0x9e   :  { %v293_v25 = vpop.f32.mrf.mxu0 }
  0x9f   :  { %v454_v55 = vpack.c.bf16 %v293_v25, %v293_v25 }
  0xa1   :  { %v735_v58 = vunpack.c.l.b16 %v454_v55 }
  0xa3   :  { %v741_v62 = vpack.c.b16 %v735_v58, %v734_v57  ;;  %v2685_v58 = vld [vmem:[%s3481_s1 + $0x80] sm:$0xff] }
  0xa4   :  { %v2617_v26 = vpop.f32.mrf.mxu2 }
  0xa5   :  { %v751_v63 = vsel %vm627_vm0, %v741_v62, 0 }
  0xa6   :  { %v296_v28 = vpop.f32.mrf.mxu0 }
  0xa7   :  { %v455_v42 = vpack.c.bf16 %v296_v28, %v296_v28 }
  0xa9   :  { %335 = vmatmul.bf16.gmra.mxu0 %v2387_v27  ;;  %v736_v47 = vunpack.c.l.b16 %v455_v42 }
  0xac   :  { %v2622_v29 = vpop.f32.mrf.mxu2 }
  0xae   :  { %v298_v30 = vpop.f32.mrf.mxu0 }
  0xaf   :  { %v456_v43 = vpack.c.bf16 %v298_v30, %v298_v30 }
  0xb1   :  { %v737_v48 = vunpack.c.l.b16 %v456_v43 }
  0xb3   :  { %v742_v56 = vpack.c.b16 %v737_v48, %v736_v47 }
  0xb4   :  { %v2624_v31 = vpop.f32.mrf.mxu2 }
  0xb5   :  { %v754_v59 = vsel %vm627_vm0, %v742_v56, 0 }
  0xb6   :  { %v301_v35 = vpop.f32.mrf.mxu0 }
  0xb7   :  { %v457_v38 = vpack.c.bf16 %v301_v35, %v301_v35 }
  0xb9   :  { %340 = vmatmul.bf16.gmra.mxu0 %v2388_v34  ;;  %v738_v44 = vunpack.c.l.b16 %v457_v38 }
  0xbc   :  { %v2629_v39 = vpop.f32.mrf.mxu2 }
  0xbd   :  { %3509 = vst [vmem:[#allocation2_spill] sm:$0xff] %v2629_v39 }
  0xbe   :  { %v303_v41 = vpop.f32.mrf.mxu0 }
  0xbf   :  { %v458_v45 = vpack.c.bf16 %v303_v41, %v303_v41 }
  0xc1   :  { %v739_v46 = vunpack.c.l.b16 %v458_v45 }
  0xc3   :  { %v743_v49 = vpack.c.b16 %v739_v46, %v738_v44 }
  0xc4   :  { %v2631_v50 = vpop.f32.mrf.mxu2 }
  0xc5   :  { %3510 = vst [vmem:[#allocation3_spill] sm:$0xff] %v2631_v50  ;;  %v757_v51 = vsel %vm627_vm0, %v743_v49, 0 }
  0xc6   :  { %v306_v53 = vpop.f32.mrf.mxu0  ;;  %763 = vmatpush.bf16.xpose.msrb.mxu2 %v757_v51 }
  0xc7   :  { %v459_v28 = vpack.c.bf16 %v306_v53, %v306_v53 }
  0xc9   :  { %345 = vmatmul.bf16.gmra.mxu0 %v2637_v52  ;;  %v780_v37 = vunpack.c.l.b16 %v459_v28 }
  0xcc   :  { %v2641_v60 = vpop.f32.mrf.mxu2 }
  0xce   :  { %v308_v61 = vpop.f32.mrf.mxu0  ;;  %764 = vmatpush.bf16.xpose.msrb.mxu2 %v754_v59 }
  0xcf   :  { %v460_v30 = vpack.c.bf16 %v308_v61, %v308_v61 }
  0xd1   :  { %v781_v38 = vunpack.c.l.b16 %v460_v30 }
  0xd3   :  { %v788_v45 = vpack.c.b16 %v781_v38, %v780_v37 }
  0xd4   :  { %v2644_v1 = vpop.f32.mrf.mxu2 }
  0xd6   :  { %v311_v7 = vpop.f32.mrf.mxu0  ;;  %765 = vmatpush.bf16.xpose.msrb.mxu2 %v751_v63 }
  0xd7   :  { %v461_v61 = vpack.c.bf16 %v311_v7, %v311_v7  ;;  %v796_v7 = vsel %vm627_vm0, %v788_v45, 0 }
  0xd9   :  { %350 = vmatmul.bf16.gmra.mxu0 %v2649_v3  ;;  %v782_v0 = vunpack.c.l.b16 %v461_v61 }
  0xdc   :  { %v436_v10 = vpop.f32.mrf.mxu2 }
  0xdd   :  { %v511_v12 = vpack.c.bf16 %v436_v10, %v436_v10 }
  0xde   :  { %v313_v11 = vpop.f32.mrf.mxu0  ;;  %766 = vmatpush.bf16.xpose.msrb.mxu2 %v748_v9 }
  0xdf   :  { %v2658_v17 = vunpack.c.l.b16 %v511_v12  ;;  %v462_v62 = vpack.c.bf16 %v313_v11, %v313_v11 }
  0xe1   :  { %v783_v5 = vunpack.c.l.b16 %v462_v62 }
  0xe3   :  { %v789_v12 = vpack.c.b16 %v783_v5, %v782_v0 }
  0xe4   :  { %v438_v13 = vpop.f32.mrf.mxu2 }
  0xe5   :  { %v512_v14 = vpack.c.bf16 %v438_v13, %v438_v13  ;;  %v799_v13 = vsel %vm627_vm0, %v789_v12, 0  ;;  %v2750_v12 = vld [vmem:[%s3481_s1 + $0xb0] sm:$0xff] }
  0xe6   :  { %v316_v16 = vpop.f32.mrf.mxu0 }
  0xe7   :  { %v2660_v18 = vunpack.c.l.b16 %v512_v14  ;;  %v463_v47 = vpack.c.bf16 %v316_v16, %v316_v16  ;;  %v2693_v14 = vld [vmem:[%s3481_s1 + $0x88] sm:$0xff] }
  0xe9   :  { %355 = vmatmul.bf16.gmra.mxu0 %v2656_v15  ;;  %v784_v54 = vunpack.c.l.b16 %v463_v47 }
  0xec   :  { %v441_v22 = vpop.f32.mrf.mxu2 }
  0xed   :  { %v513_v25 = vpack.c.bf16 %v441_v22, %v441_v22  ;;  %v2700_v22 = vld [vmem:[%s3481_s1 + $0x90] sm:$0xff] }
  0xee   :  { %v318_v23 = vpop.f32.mrf.mxu0 }
  0xef   :  { %v2670_v35 = vunpack.c.l.b16 %v513_v25  ;;  %v464_v48 = vpack.c.bf16 %v318_v23, %v318_v23 }
  0xf1   :  { %v785_v55 = vunpack.c.l.b16 %v464_v48  ;;  %v2724_v48 = vld [vmem:[%s3481_s1 + $0xa0] sm:$0xff] }
  0xf3   :  { %v790_v63 = vpack.c.b16 %v785_v55, %v784_v54 }
  0xf4   :  { %v443_v27 = vpop.f32.mrf.mxu2 }
  0xf5   :  { %v514_v32 = vpack.c.bf16 %v443_v27, %v443_v27  ;;  %v802_v9 = vsel %vm627_vm0, %v790_v63, 0  ;;  %v2706_v27 = vld [vmem:[%s3481_s1 + $0x98] sm:$0xff] }
  0xf6   :  { %v321_v34 = vpop.f32.mrf.mxu0 }
  0xf7   :  { %v2672_v36 = vunpack.c.l.b16 %v514_v32  ;;  %v465_v41 = vpack.c.bf16 %v321_v34, %v321_v34 }
  0xf9   :  { %360 = vmatmul.bf16.gmra.mxu0 %v2668_v33  ;;  %v786_v49 = vunpack.c.l.b16 %v465_v41 }
  0xfc   :  { %v2677_v42 = vpop.f32.mrf.mxu2 }
  0xfd   :  { %v557_v43 = vperm.slane %v2677_v42, 6  ;;  %v550_v44 = vperm.slane %v2677_v42, 5 }
  0xfe   :  { %v323_v46 = vpop.f32.mrf.mxu0 }
  0xff   :  { %v466_v51 = vpack.c.bf16 %v323_v46, %v323_v46  ;;  %562 = vperm.xlu2 %2414, %v557_v43   ;;  %555 = vperm.xlu0 %2412, %v550_v44  }
 0x101   :  { %v787_v53 = vunpack.c.l.b16 %v466_v51 }
 0x103   :  { %v791_v56 = vpack.c.b16 %v787_v53, %v786_v49 }
 0x105   :  { %v805_v57 = vsel %vm627_vm0, %v791_v56, 0 }
 0x106   :  { %v326_v59 = vpop.f32.mrf.mxu0  ;;  %811 = vmatpush.bf16.xpose.msra.mxu2 %v805_v57 }
 0x107   :  { %v467_v30 = vpack.c.bf16 %v326_v59, %v326_v59  ;;  %v2738_v59 = vld [vmem:[%s3481_s1 + $0xa8] sm:$0xff] }
 0x109   :  { %365 = vmatmul.bf16.gmra.mxu0 %v2685_v58  ;;  %v2709_v37 = vunpack.c.l.b16 %v467_v30 }
 0x10e   :  { %v328_v10 = vpop.f32.mrf.mxu0  ;;  %812 = vmatpush.bf16.xpose.msra.mxu2 %v802_v9 }
 0x10f   :  { %v468_v32 = vpack.c.bf16 %v328_v10, %v328_v10 }
 0x111   :  { %v2711_v38 = vunpack.c.l.b16 %v468_v32  ;;  %v2759_v32 = vld [vmem:[%s3481_s1 + $0xb8] sm:$0xff] }
 0x116   :  { %v331_v16 = vpop.f32.mrf.mxu0  ;;  %813 = vmatpush.bf16.xpose.msra.mxu2 %v799_v13 }
 0x117   :  { %v469_v51 = vpack.c.bf16 %v331_v16, %v331_v16  ;;  %v2752_v16 = vpop.f32.mrf.mxu2 }
 0x119   :  { %370 = vmatmul.bf16.gmra.mxu0 %v2693_v14  ;;  %v2729_v54 = vunpack.c.l.b16 %v469_v51 }
 0x11e   :  { %v333_v11 = vpop.f32.mrf.mxu0  ;;  %814 = vmatpush.bf16.xpose.msra.mxu2 %v796_v7  ;;  %v576_v7 = vrot.slane %v2752_v16, 5 }
 0x11f   :  { %v470_v53 = vpack.c.bf16 %v333_v11, %v333_v11 }
 0x121   :  { %v2731_v55 = vunpack.c.l.b16 %v470_v53 }
 0x126   :  { %v336_v23 = vpop.f32.mrf.mxu0 }
 0x127   :  { %v471_v62 = vpack.c.bf16 %v336_v23, %v336_v23  ;;  %v584_v23 = vperm.slane %v576_v7, 0 }
 0x129   :  { %375 = vmatmul.bf16.gmra.mxu0 %v2700_v22  ;;  %v2741_v0 = vunpack.c.l.b16 %v471_v62 }
 0x12e   :  { %v338_v25 = vpop.f32.mrf.mxu0 }
 0x12f   :  { %v472_v63 = vpack.c.bf16 %v338_v25, %v338_v25 }
 0x131   :  { %v2743_v5 = vunpack.c.l.b16 %v472_v63 }
 0x136   :  { %v341_v28 = vpop.f32.mrf.mxu0 }
 0x137   :  { %v473_v34 = vpack.c.bf16 %v341_v28, %v341_v28 }
 0x139   :  { %380 = vmatmul.bf16.gmra.mxu0 %v2706_v27  ;;  %v2713_v43 = vunpack.c.l.b16 %v473_v34 }
 0x13e   :  { %v343_v41 = vpop.f32.mrf.mxu0 }
 0x13f   :  { %v474_v44 = vpack.c.bf16 %v343_v41, %v343_v41 }
 0x141   :  { %v2717_v46 = vunpack.c.l.b16 %v474_v44 }
 0x146   :  { %v2726_v49 = vpop.f32.mrf.mxu0 }
 0x149   :  { %385 = vmatmul.bf16.gmra.mxu0 %v2724_v48 }
 0x14e   :  { %v348_v56 = vpop.f32.mrf.mxu0 }
 0x156   :  { %v351_v61 = vpop.f32.mrf.mxu0 }
 0x159   :  { %390 = vmatmul.bf16.gmra.mxu0 %v2738_v59 }
 0x15e   :  { %v353_v9 = vpop.f32.mrf.mxu0 }
 0x15f   :  { %v478_v10 = vpack.c.bf16 %v353_v9, %v353_v9 }
 0x161   :  { %v879_v39 = vunpack.c.l.b16 %v478_v10 }
 0x166   :  { %v356_v13 = vpop.f32.mrf.mxu0 }
 0x167   :  { %v479_v62 = vpack.c.bf16 %v356_v13, %v356_v13  ;;  %v475_v13 = vpack.c.bf16 %v2726_v49, %v2726_v49  ;;  %v505_v49 = vpack.c.bf16 %v2622_v29, %v2622_v29 }
 0x169   :  { %395 = vmatmul.bf16.gmra.mxu0 %v2750_v12  ;;  %v880_v20 = vunpack.c.l.b16 %v479_v62 }
 0x16e   :  { %v358_v11 = vpop.f32.mrf.mxu0 }
 0x16f   :  { %v480_v63 = vpack.c.bf16 %v358_v11, %v358_v11 }
 0x171   :  { %v556_v25 = vpop.permute.xlu0 %555  ;;  %v881_v40 = vunpack.c.l.b16 %v480_v63  ;;  %v504_v63 = vpack.c.bf16 %v2617_v26, %v2617_v26  ;;  %v502_v26 = vpack.c.bf16 %v2610_v21, %v2610_v21 }
 0x172   :  { %v600_v28 = vadd.f32 %v584_v23, %v556_v25 }
 0x173   :  { %v886_v47 = vpack.c.b16 %v881_v40, %v880_v20  ;;  %v506_v20 = vpack.c.bf16 %v2624_v31, %v2624_v31  ;;  %v876_v40 = vunpack.c.l.b16 %v475_v13 }
 0x174   :  { %v616_v30 = vmul.f32 0.2, %v600_v28  ;;  %vm608_vm1 = vcmp.ge.f32.partialorder %v600_v28, 0.0 }
 0x176   :  { %v361_v34 = vpop.f32.mrf.mxu0  ;;  %v2761_v41 = vsel %vm608_vm1, %v600_v28, %v616_v30  ;;  %v477_v30 = vpack.c.bf16 %v351_v61, %v351_v61 }
 0x177   :  { %v643_v44 = vsel %vm627_vm0, %v2761_v41, -inf  ;;  %v481_v51 = vpack.c.bf16 %v361_v34, %v361_v34  ;;  %v898_v34 = vsel %vm627_vm0, %v886_v47, 0 }
 0x178   :  { %644 = vmax.xlane.f32.xlu0 %v643_v44  ;;  %v878_v44 = vunpack.c.l.b16 %v477_v30 }
 0x179   :  { %400 = vmatmul.bf16.gmra.mxu0 %v2759_v32  ;;  %v882_v7 = vunpack.c.l.b16 %v481_v51  ;;  %v476_v51 = vpack.c.bf16 %v348_v56, %v348_v56  ;;  %v1027_v56 = vunpack.c.l.b16 %v506_v20 }
 0x17b   :  { %v877_v61 = vunpack.c.l.b16 %v476_v51 }
 0x17d   :  { %v884_v10 = vpack.c.b16 %v877_v61, %v876_v40 }
 0x17e   :  { %v363_v53 = vpop.f32.mrf.mxu0 }
 0x17f   :  { %v482_v23 = vpack.c.bf16 %v363_v53, %v363_v53 }
 0x181   :  { %v883_v25 = vunpack.c.l.b16 %v482_v23  ;;  %v892_v23 = vsel %vm627_vm0, %v884_v10, 0 }
 0x183   :  { %v887_v45 = vpack.c.b16 %v883_v25, %v882_v7  ;;  %v503_v25 = vpack.c.bf16 %v2615_v24, %v2615_v24  ;;  %v501_v24 = vpack.c.bf16 %v2608_v19, %v2608_v19 }
 0x185   :  { %v901_v57 = vsel %vm627_vm0, %v887_v45, 0  ;;  %v885_v45 = vpack.c.b16 %v879_v39, %v878_v44  ;;  %v1026_v39 = vunpack.c.l.b16 %v505_v49  ;;  %v1024_v13 = vunpack.c.l.b16 %v503_v25 }
 0x186   :  { %907 = vmatpush.bf16.xpose.msra.mxu1 %v901_v57  ;;  %v366_v28 = vpop.f32.mrf.mxu0  ;;  %v1022_v61 = vunpack.c.l.b16 %v501_v24 }
 0x187   :  { %v483_v50 = vpack.c.bf16 %v366_v28, %v366_v28  ;;  %v895_v9 = vsel %vm627_vm0, %v885_v45, 0  ;;  %v1031_v7 = vpack.c.b16 %v1027_v56, %v1026_v39  ;;  %v1025_v28 = vunpack.c.l.b16 %v504_v63 }
 0x188   :  { %v1023_v45 = vunpack.c.l.b16 %v502_v26 }
 0x189   :  { %v2770_v53 = vunpack.c.l.b16 %v483_v50  ;;  %v1045_v30 = vsel %vm627_vm0, %v1031_v7, 0  ;;  %v1030_v51 = vpack.c.b16 %v1025_v28, %v1024_v13 }
 0x18b   :  { %v1042_v20 = vsel %vm627_vm0, %v1030_v51, 0 }
 0x18e   :  { %908 = vmatpush.bf16.xpose.msra.mxu1 %v898_v34  ;;  %v368_v11 = vpop.f32.mrf.mxu0 }
 0x18f   :  { %v484_v62 = vpack.c.bf16 %v368_v11, %v368_v11 }
 0x191   :  { %v2772_v57 = vunpack.c.l.b16 %v484_v62 }
 0x196   :  { %909 = vmatpush.bf16.xpose.msra.mxu1 %v895_v9  ;;  %v371_v50 = vpop.f32.mrf.mxu0  ;;  %v1029_v9 = vpack.c.b16 %v1023_v45, %v1022_v61 }
 0x197   :  { %v485_v31 = vpack.c.bf16 %v371_v50, %v371_v50 }
 0x198   :  { %v1039_v56 = vsel %vm627_vm0, %v1029_v9, 0 }
 0x199   :  { %v2787_v44 = vunpack.c.l.b16 %v485_v31 }
 0x19e   :  { %910 = vmatpush.bf16.xpose.msra.mxu1 %v892_v23  ;;  %v373_v29 = vpop.f32.mrf.mxu0 }
 0x19f   :  { %v486_v34 = vpack.c.bf16 %v373_v29, %v373_v29 }
 0x1a1   :  { %v2789_v11 = vunpack.c.l.b16 %v486_v34 }
 0x1a6   :  { %1051 = vmatpush.bf16.xpose.msrb.mxu1 %v1045_v30  ;;  %v376_v40 = vpop.f32.mrf.mxu0 }
 0x1a7   :  { %v487_v49 = vpack.c.bf16 %v376_v40, %v376_v40 }
 0x1a9   :  { %v2799_v10 = vunpack.c.l.b16 %v487_v49 }
 0x1ae   :  { %1052 = vmatpush.bf16.xpose.msrb.mxu1 %v1042_v20  ;;  %v378_v50 = vpop.f32.mrf.mxu0 }
 0x1af   :  { %v488_v21 = vpack.c.bf16 %v378_v50, %v378_v50 }
 0x1b1   :  { %v2801_v39 = vunpack.c.l.b16 %v488_v21 }
 0x1b6   :  { %1053 = vmatpush.bf16.xpose.msrb.mxu1 %v1039_v56  ;;  %v381_v63 = vpop.f32.mrf.mxu0 }
 0x1b7   :  { %v489_v7 = vpack.c.bf16 %v381_v63, %v381_v63 }
 0x1b9   :  { %v2805_v23 = vunpack.c.l.b16 %v489_v7 }
 0x1be   :  { %v383_v31 = vpop.f32.mrf.mxu0 }
 0x1bf   :  { %v490_v25 = vpack.c.bf16 %v383_v31, %v383_v31 }
 0x1c1   :  { %v2807_v28 = vunpack.c.l.b16 %v490_v25 }
 0x1c6   :  { %v386_v29 = vpop.f32.mrf.mxu0 }
 0x1c7   :  { %v491_v20 = vpack.c.bf16 %v386_v29, %v386_v29 }
 0x1c9   :  { %v972_v49 = vunpack.c.l.b16 %v491_v20 }
 0x1ce   :  { %v388_v34 = vpop.f32.mrf.mxu0 }
 0x1cf   :  { %v492_v40 = vpack.c.bf16 %v388_v34, %v388_v34 }
 0x1d1   :  { %v973_v56 = vunpack.c.l.b16 %v492_v40 }
 0x1d3   :  { %v980_v63 = vpack.c.b16 %v973_v56, %v972_v49 }
 0x1d6   :  { %v391_v13 = vpop.f32.mrf.mxu0 }
 0x1d7   :  { %v493_v20 = vpack.c.bf16 %v391_v13, %v391_v13 }
 0x1d9   :  { %v974_v49 = vunpack.c.l.b16 %v493_v20 }
 0x1de   :  { %v393_v26 = vpop.f32.mrf.mxu0 }
 0x1df   :  { %v494_v40 = vpack.c.bf16 %v393_v26, %v393_v26 }
 0x1e1   :  { %v975_v56 = vunpack.c.l.b16 %v494_v40  ;;  %v574_v40 = vrot.slane %v2752_v16, 3 }
 0x1e6   :  { %v396_v51 = vpop.f32.mrf.mxu0 }
 0x1e7   :  { %v495_v47 = vpack.c.bf16 %v396_v51, %v396_v51  ;;  %v536_v51 = vperm.slane %v2677_v42, 3 }
 0x1e9   :  { %v976_v29 = vunpack.c.l.b16 %v495_v47  ;;  %v988_v47 = vsel %vm627_vm0, %v980_v63, 0  ;;  %v564_v63 = vperm.slane %v2677_v42, 7 }
 0x1eb   :  { %v645_v24 = vpop.xlane.xlu0 %644 }
 0x1ec   :  { %v657_v45 = vsub.f32 %v2761_v41, %v645_v24 }
 0x1ee   :  { %v670_v61 = vmul.f32 1.442695, %v657_v45  ;;  %v398_v9 = vpop.f32.mrf.mxu0 }
 0x1ef   :  { %v496_v62 = vpack.c.bf16 %v398_v9, %v398_v9  ;;  %v981_v9 = vpack.c.b16 %v975_v56, %v974_v49 }
 0x1f0   :  { %2415 = vpow2.f32 %v670_v61 }
 0x1f1   :  { %v977_v34 = vunpack.c.l.b16 %v496_v62  ;;  %v577_v62 = vrot.slane %v2752_v16, 6 }
 0x1f3   :  { %v982_v61 = vpack.c.b16 %v977_v34, %v976_v29  ;;  %v585_v13 = vperm.slane %v577_v62, 0  ;;  %v2824_v29 = vld [vmem:[%s3480_s0 + $0x4] sm:$0xf] }
 0x1f6   :  { %v2416_v50 = vpop.eup %2415  ;;  %v401_v21 = vpop.f32.mrf.mxu0 }
 0x1f7   :  { %v691_v7 = vsel %vm627_vm0, %v2416_v50, 0.0  ;;  %v497_v31 = vpack.c.bf16 %v401_v21, %v401_v21 }
 0x1f8   :  { %692 = vadd.xlane.f32.xlu1 %v691_v7  ;;  %v994_v7 = vsel %vm627_vm0, %v982_v61, 0  ;;  %v582_v61 = vperm.slane %v574_v40, 0 }
 0x1f9   :  { %v978_v19 = vunpack.c.l.b16 %v497_v31 }
 0x1fe   :  { %v403_v25 = vpop.f32.mrf.mxu0 }
 0x1ff   :  { %v498_v30 = vpack.c.bf16 %v403_v25, %v403_v25 }
 0x201   :  { %v979_v41 = vunpack.c.l.b16 %v498_v30  ;;  %v991_v30 = vsel %vm627_vm0, %v981_v9, 0 }
 0x203   :  { %v983_v24 = vpack.c.b16 %v979_v41, %v978_v19  ;;  %v563_v19 = vpop.permute.xlu2 %562  ;;  %v529_v41 = vperm.slane %v2677_v42, 2 }
 0x204   :  { %v601_v26 = vadd.f32 %v585_v13, %v563_v19 }
 0x205   :  { %v997_v45 = vsel %vm627_vm0, %v983_v24, 0 }
 0x206   :  { %1003 = vmatpush.bf16.xpose.msra.mxu3 %v997_v45  ;;  %v617_v21 = vmul.f32 0.2, %v601_v26  ;;  %vm609_vm2 = vcmp.ge.f32.partialorder %v601_v26, 0.0 }
 0x208   :  { %v625_v31 = vsel %vm609_vm2, %v601_v26, %v617_v21 }
 0x209   :  { %v646_v25 = vsel %vm627_vm0, %v625_v31, -inf }
 0x20e   :  { %1004 = vmatpush.bf16.xpose.msra.mxu3 %v994_v7 }
 0x211   :  { %541 = vperm.xlu1 %2413, %v536_v51  }
 0x216   :  { %1005 = vmatpush.bf16.xpose.msra.mxu3 %v991_v30 }
 0x21e   :  { %1006 = vmatpush.bf16.xpose.msra.mxu3 %v988_v47 }
 0x226   :  { %2411 = vmatpush.bf16.xpose.msrb.mxu3 %v2824_v29 }
 0x23b   :  { %647 = vmax.xlane.f32.xlu1 %v646_v25  ;;  %v2401_v25 = vld [vmem:[%s3481_s1 + $0xc0] sm:$0xff] }
 0x23c   :  { %405 = vmatmul.bf16.gmra.mxu0 %v2401_v25 }
 0x254   :  { %534 = vperm.xlu1 %2413, %v529_v41  }
 0x25c   :  { %569 = vperm.xlu1 %2413, %v564_v63  }
 0x26b   :  { %v693_v34 = vpop.xlane.xlu1 %692 }
 0x26c   :  { %2417 = vrcp.f32 %v693_v34 }
 0x272   :  { %v2418_v24 = vpop.eup %2417 }
 0x273   :  { %v713_v45 = vmul.f32 %v2418_v24, %v2416_v50 }
 0x275   :  { %v721_v20 = vpack.c.bf16 %v713_v45, %v713_v45 }
 0x277   :  { %2348 = vmatmul.msk.bf16.vlgmr.msra.gmra.mxu3 %vm627_vm0, %v721_v20 }
 0x283   :  { %v542_v49 = vpop.permute.xlu1 %541 }
 0x284   :  { %v598_v56 = vadd.f32 %v582_v61, %v542_v49 }
 0x286   :  { %v614_v7 = vmul.f32 0.2, %v598_v56  ;;  %vm606_vm3 = vcmp.ge.f32.partialorder %v598_v56, 0.0 }
 0x287   :  { %1315 = vmatmul.bf16.vlgmr.msrb.gmra.mxu3 %v2637_v52  ;;  %v573_v52 = vrot.slane %v2752_v16, 2 }
 0x288   :  { %v622_v51 = vsel %vm606_vm3, %v598_v56, %v614_v7  ;;  %v515_v7 = vperm.slane %v2677_v42, 0  ;;  %vm1156_vm3 = vcmask 523264  }
 0x289   :  { %v637_v9 = vsel %vm627_vm0, %v622_v51, -inf  ;;  %v581_v13 = vperm.slane %v573_v52, 0 }
 0x28a   :  { %638 = vmax.xlane.f32.xlu2 %v637_v9 }
 0x297   :  { %1320 = vmatmul.bf16.gmra.mxu3 %v2649_v3 }
 0x2a7   :  { %1325 = vmatmul.bf16.gmra.mxu3 %v2656_v15 }
 0x2ae   :  { %v648_v50 = vpop.xlane.xlu1 %647 }
 0x2af   :  { %v658_v30 = vsub.f32 %v625_v31, %v648_v50  ;;  %v522_v31 = vperm.slane %v2677_v42, 1 }
 0x2b1   :  { %v672_v47 = vmul.f32 1.442695, %v658_v30 }
 0x2b3   :  { %2419 = vpow2.f32 %v672_v47 }
 0x2b7   :  { %1330 = vmatmul.bf16.gmra.mxu3 %v2668_v33 }
 0x2b9   :  { %v2835_v62 = vpop.eup %2419 }
 0x2ba   :  { %v694_v19 = vsel %vm627_vm0, %v2835_v62, 0.0 }
 0x2bb   :  { %695 = vadd.xlane.f32.xlu0 %v694_v19 }
 0x2c6   :  { %v535_v26 = vpop.permute.xlu1 %534 }
 0x2c7   :  { %v597_v21 = vadd.f32 %v581_v13, %v535_v26  ;;  %1335 = vmatmul.bf16.gmra.mxu3 %v2685_v58 }
 0x2c9   :  { %v613_v3 = vmul.f32 0.2, %v597_v21  ;;  %vm605_vm4 = vcmp.ge.f32.partialorder %v597_v21, 0.0 }
 0x2cb   :  { %v2841_v15 = vsel %vm605_vm4, %v597_v21, %v613_v3 }
 0x2cc   :  { %v634_v33 = vsel %vm627_vm0, %v2841_v15, -inf }
 0x2cd   :  { %635 = vmax.xlane.f32.xlu1 %v634_v33 }
 0x2cf   :  { %527 = vperm.xlu0 %2412, %v522_v31  }
 0x2d7   :  { %1340 = vmatmul.bf16.gmra.mxu3 %v2693_v14 }
 0x2e7   :  { %1345 = vmatmul.bf16.gmra.mxu3 %v2700_v22 }
 0x2f7   :  { %1350 = vmatmul.bf16.gmra.mxu3 %v2706_v27 }
 0x2fa   :  { %v2852_v58 = vpop.f32.mrf.mxu3 }
 0x2fb   :  { %3511 = vst [vmem:[#allocation4_spill] sm:$0xff] %v2852_v58 }
 0x2fd   :  { %v639_v41 = vpop.xlane.xlu2 %638 }
 0x2fe   :  { %v655_v63 = vsub.f32 %v622_v51, %v639_v41 }
 0x300   :  { %v666_v34 = vmul.f32 1.442695, %v655_v63 }
 0x302   :  { %2421 = vpow2.f32 %v666_v34  ;;  %v1010_v24 = vpop.f32.mrf.mxu3 }
 0x307   :  { %1355 = vmatmul.bf16.gmra.mxu3 %v2724_v48 }
 0x308   :  { %v2855_v45 = vpop.eup %2421 }
 0x309   :  { %v685_v14 = vsel %vm627_vm0, %v2855_v45, 0.0 }
 0x30a   :  { %686 = vadd.xlane.f32.xlu2 %v685_v14  ;;  %v1316_v20 = vpop.f32.mrf.mxu3 }
 0x30b   :  { %v1445_v40 = vpack.c.bf16 %v1316_v20, %v1316_v20 }
 0x30d   :  { %v2859_v27 = vunpack.c.l.b16 %v1445_v40 }
 0x312   :  { %v1318_v22 = vpop.f32.mrf.mxu3 }
 0x313   :  { %v1446_v61 = vpack.c.bf16 %v1318_v22, %v1318_v22 }
 0x315   :  { %v2861_v49 = vunpack.c.l.b16 %v1446_v61 }
 0x317   :  { %1360 = vmatmul.bf16.gmra.mxu3 %v2738_v59  ;;  %v543_v59 = vperm.slane %v2677_v42, 4  ;;  %v572_v42 = vrot.slane %v2752_v16, 1 }
 0x319   :  { %v580_v40 = vperm.slane %v572_v42, 0 }
 0x31a   :  { %v1321_v48 = vpop.f32.mrf.mxu3 }
 0x31b   :  { %v1447_v51 = vpack.c.bf16 %v1321_v48, %v1321_v48 }
 0x31d   :  { %v2867_v30 = vunpack.c.l.b16 %v1447_v51 }
 0x322   :  { %520 = vperm.xlu2 %2414, %v515_v7   ;;  %v1323_v9 = vpop.f32.mrf.mxu3 }
 0x323   :  { %v1448_v50 = vpack.c.bf16 %v1323_v9, %v1323_v9 }
 0x325   :  { %v2869_v47 = vunpack.c.l.b16 %v1448_v50 }
 0x327   :  { %1365 = vmatmul.bf16.gmra.mxu3 %v2750_v12 }
 0x32a   :  { %548 = vperm.xlu2 %2414, %v543_v59   ;;  %v1326_v52 = vpop.f32.mrf.mxu3 }
 0x32b   :  { %v1449_v13 = vpack.c.bf16 %v1326_v52, %v1326_v52 }
 0x32d   :  { %v2875_v3 = vunpack.c.l.b16 %v1449_v13 }
 0x32e   :  { %v2882_v41 = vpop.xlane.xlu0 %695 }
 0x332   :  { %v1328_v26 = vpop.f32.mrf.mxu3 }
 0x333   :  { %v1450_v21 = vpack.c.bf16 %v1328_v26, %v1328_v26 }
 0x335   :  { %v2877_v33 = vunpack.c.l.b16 %v1450_v21 }
 0x337   :  { %1370 = vmatmul.bf16.gmra.mxu3 %v2759_v32 }
 0x33a   :  { %v1331_v12 = vpop.f32.mrf.mxu3 }
 0x33b   :  { %v1451_v63 = vpack.c.bf16 %v1331_v12, %v1331_v12 }
 0x33d   :  { %v2885_v20 = vunpack.c.l.b16 %v1451_v63 }
 0x341   :  { %v528_v14 = vpop.permute.xlu0 %527 }
 0x342   :  { %v1333_v34 = vpop.f32.mrf.mxu3  ;;  %v596_v61 = vadd.f32 %v580_v40, %v528_v14 }
 0x343   :  { %v1452_v24 = vpack.c.bf16 %v1333_v34, %v1333_v34  ;;  %v406_v34 = vpop.f32.mrf.mxu0 }
 0x344   :  { %v612_v7 = vmul.f32 0.2, %v596_v61  ;;  %vm604_vm5 = vcmp.ge.f32.partialorder %v596_v61, 0.0 }
 0x345   :  { %v2887_v22 = vunpack.c.l.b16 %v1452_v24 }
 0x346   :  { %v2891_v51 = vsel %vm604_vm5, %v596_v61, %v612_v7  ;;  %v499_v61 = vpack.c.bf16 %v406_v34, %v406_v34 }
 0x347   :  { %1375 = vmatmul.bf16.gmra.mxu3 %v2401_v25  ;;  %v631_v59 = vsel %vm627_vm0, %v2891_v51, -inf }
 0x348   :  { %v1020_v7 = vunpack.c.l.b16 %v499_v61 }
 0x34a   :  { %v1336_v48 = vpop.f32.mrf.mxu3 }
 0x34b   :  { %v1453_v9 = vpack.c.bf16 %v1336_v48, %v1336_v48 }
 0x34d   :  { %v2895_v13 = vunpack.c.l.b16 %v1453_v9 }
 0x34f   :  { %3512 = vst [vmem:[#allocation5_spill] sm:$0xff] %v2895_v13 }
 0x352   :  { %v1338_v50 = vpop.f32.mrf.mxu3 }
 0x353   :  { %v1454_v52 = vpack.c.bf16 %v1338_v50, %v1338_v50  ;;  %632 = vmax.xlane.f32.xlu2 %v631_v59 }
 0x355   :  { %v2897_v26 = vunpack.c.l.b16 %v1454_v52 }
 0x357   :  { %3513 = vst [vmem:[#allocation6_spill] sm:$0xff] %v2897_v26  ;;  %1380 = vmatmul.bf16.gmra.mxu3 %v2551_v2  ;;  %v408_v2 = vpop.f32.mrf.mxu0 }
 0x358   :  { %v500_v9 = vpack.c.bf16 %v408_v2, %v408_v2 }
 0x35a   :  { %v1341_v21 = vpop.f32.mrf.mxu3  ;;  %v1021_v50 = vunpack.c.l.b16 %v500_v9 }
 0x35b   :  { %v1455_v12 = vpack.c.bf16 %v1341_v21, %v1341_v21 }
 0x35c   :  { %v1028_v59 = vpack.c.b16 %v1021_v50, %v1020_v7  ;;  %v579_v50 = vperm.slane %v2752_v16, 0 }
 0x35d   :  { %v2902_v24 = vunpack.c.l.b16 %v1455_v12 }
 0x35f   :  { %3514 = vst [vmem:[#allocation7_spill] sm:$0xff] %v2902_v24 }
 0x362   :  { %v1343_v63 = vpop.f32.mrf.mxu3 }
 0x363   :  { %v1456_v42 = vpack.c.bf16 %v1343_v63, %v1343_v63  ;;  %v1036_v63 = vsel %vm627_vm0, %v1028_v59, 0 }
 0x364   :  { %1054 = vmatpush.bf16.xpose.msrb.mxu1 %v1036_v63 }
 0x365   :  { %v2904_v14 = vunpack.c.l.b16 %v1456_v42 }
 0x367   :  { %3515 = vst [vmem:[#allocation8_spill] sm:$0xff] %v2904_v14  ;;  %1385 = vmatmul.bf16.gmra.mxu3 %v2560_v4 }
 0x36a   :  { %v1346_v48 = vpop.f32.mrf.mxu3 }
 0x36b   :  { %v1457_v52 = vpack.c.bf16 %v1346_v48, %v1346_v48 }
 0x36d   :  { %v2910_v42 = vunpack.c.l.b16 %v1457_v52 }
 0x372   :  { %v1348_v21 = vpop.f32.mrf.mxu3 }
 0x373   :  { %v1458_v12 = vpack.c.bf16 %v1348_v21, %v1348_v21 }
 0x375   :  { %v2912_v25 = vunpack.c.l.b16 %v1458_v12 }
 0x377   :  { %1390 = vmatmul.bf16.gmra.mxu3 %v2569_v6 }
 0x37a   :  { %v1351_v34 = vpop.f32.mrf.mxu3 }
 0x37b   :  { %v1459_v2 = vpack.c.bf16 %v1351_v34, %v1351_v34 }
 0x37d   :  { %v687_v61 = vpop.xlane.xlu2 %686  ;;  %v2918_v59 = vunpack.c.l.b16 %v1459_v2  ;;  %v578_v2 = vrot.slane %v2752_v16, 7 }
 0x37e   :  { %2423 = vrcp.f32 %v687_v61 }
 0x37f   :  { %2425 = vrcp.f32 %v2882_v41 }
 0x382   :  { %v1353_v7 = vpop.f32.mrf.mxu3 }
 0x383   :  { %v1460_v48 = vpack.c.bf16 %v1353_v7, %v1353_v7  ;;  %v575_v7 = vrot.slane %v2752_v16, 4 }
 0x384   :  { %v2424_v9 = vpop.eup %2423 }
 0x385   :  { %v2920_v52 = vunpack.c.l.b16 %v1460_v48  ;;  %v521_v21 = vpop.permute.xlu2 %520  ;;  %v711_v63 = vmul.f32 %v2424_v9, %v2855_v45  ;;  %v570_v9 = vpop.permute.xlu1 %569 }
 0x386   :  { %v595_v6 = vadd.f32 %v579_v50, %v521_v21  ;;  %v586_v21 = vperm.slane %v578_v2, 0  ;;  %v2426_v4 = vpop.eup %2425 }
 0x387   :  { %1395 = vmatmul.bf16.gmra.mxu3 %v2578_v8  ;;  %v719_v61 = vpack.c.bf16 %v711_v63, %v711_v63  ;;  %v583_v8 = vperm.slane %v575_v7, 0 }
 0x388   :  { %v611_v34 = vmul.f32 0.2, %v595_v6  ;;  %vm603_vm6 = vcmp.ge.f32.partialorder %v595_v6, 0.0 }
 0x389   :  { %2346 = vmatmul.msk.bf16.vlgmr.msra.gmra.mxu1 %vm627_vm0, %v719_v61  ;;  %v602_v61 = vadd.f32 %v586_v21, %v570_v9 }
 0x38a   :  { %v1356_v48 = vpop.f32.mrf.mxu3  ;;  %v2930_v40 = vsel %vm603_vm6, %v595_v6, %v611_v34  ;;  %1254 = vmatpush.bf16.xpose.msra.mxu1 %v2824_v29  ;;  %v714_v6 = vmul.f32 %v2426_v4, %v2835_v62  ;;  %vm1229_vm6 = vcmask 1041409  }
 0x38b   :  { %v628_v45 = vsel %vm627_vm0, %v2930_v40, -inf  ;;  %v1461_v16 = vpack.c.bf16 %v1356_v48, %v1356_v48  ;;  %vm610_vm8 = vcmp.ge.f32.partialorder %v602_v61, 0.0  ;;  %v2511_v48 = vld [vmem:[%s3481_s1 + $0xe8] sm:$0xff] }
 0x38c   :  { %629 = vmax.xlane.f32.xlu0 %v628_v45  ;;  %v618_v45 = vmul.f32 0.2, %v602_v61 }
 0x38d   :  { %v549_v50 = vpop.permute.xlu2 %548  ;;  %v2940_v7 = vunpack.c.l.b16 %v1461_v16 }
 0x38e   :  { %v599_v63 = vadd.f32 %v583_v8, %v549_v50  ;;  %v2949_v4 = vsel %vm610_vm8, %v602_v61, %v618_v45  ;;  %v2512_v61 = vld [vmem:[%s3481_s1 + $0xf0] sm:$0xff]  ;;  %vm1231_vm8 = vcmask 1042434  }
 0x38f   :  { %3516 = vst [vmem:[#allocation9_spill] sm:$0xff] %v2940_v7  ;;  %v649_v9 = vsel %vm627_vm0, %v2949_v4, -inf }
 0x390   :  { %v615_v12 = vmul.f32 0.2, %v599_v63  ;;  %vm607_vm7 = vcmp.ge.f32.partialorder %v599_v63, 0.0 }
 0x392   :  { %v1358_v41 = vpop.f32.mrf.mxu3  ;;  %v2935_v56 = vsel %vm607_vm7, %v599_v63, %v615_v12  ;;  %v722_v12 = vpack.c.bf16 %v714_v6, %v714_v6 }
 0x393   :  { %v1462_v29 = vpack.c.bf16 %v1358_v41, %v1358_v41  ;;  %v640_v34 = vsel %vm627_vm0, %v2935_v56, -inf }
 0x394   :  { %641 = vmax.xlane.f32.xlu0 %v640_v34 }
 0x395   :  { %v2942_v2 = vunpack.c.l.b16 %v1462_v29  ;;  %v2513_v29 = vld [vmem:[%s3481_s1] sm:$0xff] }
 0x397   :  { %3517 = vst [vmem:[#allocation10_spill] sm:$0xff] %v2942_v2  ;;  %1400 = vmatmul.bf16.gmra.mxu3 %v2511_v48 }
 0x399   :  { %2349 = vmatmul.msk.bf16.vlgmr.msrb.gmra.mxu1 %vm627_vm0, %v722_v12 }
 0x39a   :  { %v1361_v8 = vpop.f32.mrf.mxu3 }
 0x39b   :  { %v1463_v50 = vpack.c.bf16 %v1361_v8, %v1361_v8 }
 0x39c   :  { %650 = vmax.xlane.f32.xlu0 %v649_v9 }
 0x39d   :  { %v2954_v16 = vunpack.c.l.b16 %v1463_v50 }
 0x3a2   :  { %v1363_v21 = vpop.f32.mrf.mxu3 }
 0x3a3   :  { %v1464_v63 = vpack.c.bf16 %v1363_v21, %v1363_v21  ;;  %v2514_v21 = vld [vmem:[%s3481_s1 + $0xf8] sm:$0xff] }
 0x3a5   :  { %v2956_v41 = vunpack.c.l.b16 %v1464_v63  ;;  %v2515_v63 = vld [vmem:[%s3481_s1 + $0x8] sm:$0xff] }
 0x3a7   :  { %1405 = vmatmul.bf16.gmra.mxu3 %v2512_v61 }
 0x3a9   :  { %1255 = vmatmul.bf16.vlgmr.msra.gmra.mxu1 %v2513_v29 }
 0x3aa   :  { %v1366_v34 = vpop.f32.mrf.mxu3 }
 0x3ab   :  { %v1465_v45 = vpack.c.bf16 %v1366_v34, %v1366_v34 }
 0x3ad   :  { %v2966_v8 = vunpack.c.l.b16 %v1465_v45 }
 0x3b2   :  { %v1368_v48 = vpop.f32.mrf.mxu3 }
 0x3b3   :  { %v1466_v12 = vpack.c.bf16 %v1368_v48, %v1368_v48 }
 0x3b5   :  { %v2968_v9 = vunpack.c.l.b16 %v1466_v12 }
 0x3b7   :  { %1410 = vmatmul.bf16.gmra.mxu3 %v2514_v21  ;;  %v2516_v21 = vld [vmem:[%s3481_s1 + $0x100] sm:$0xff] }
 0x3b9   :  { %1260 = vmatmul.bf16.gmra.mxu1 %v2515_v63  ;;  %v2517_v63 = vld [vmem:[%s3481_s1 + $0x10] sm:$0xff] }
 0x3ba   :  { %v1371_v61 = vpop.f32.mrf.mxu3 }
 0x3bb   :  { %v1467_v29 = vpack.c.bf16 %v1371_v61, %v1371_v61 }
 0x3bd   :  { %v2978_v48 = vunpack.c.l.b16 %v1467_v29 }
 0x3c2   :  { %v1373_v34 = vpop.f32.mrf.mxu3 }
 0x3c3   :  { %v1468_v45 = vpack.c.bf16 %v1373_v34, %v1373_v34 }
 0x3c5   :  { %v2980_v12 = vunpack.c.l.b16 %v1468_v45 }
 0x3c7   :  { %1415 = vmatmul.bf16.gmra.mxu3 %v2516_v21  ;;  %v2518_v21 = vld [vmem:[%s3481_s1 + $0x18] sm:$0xff] }
 0x3c9   :  { %1265 = vmatmul.bf16.gmra.mxu1 %v2517_v63 }
 0x3ca   :  { %v1376_v61 = vpop.f32.mrf.mxu3 }
 0x3cb   :  { %v1469_v6 = vpack.c.bf16 %v1376_v61, %v1376_v61 }
 0x3cd   :  { %v2990_v50 = vunpack.c.l.b16 %v1469_v6 }
 0x3cf   :  { %3518 = vst [vmem:[#allocation11_spill] sm:$0xff] %v2990_v50 }
 0x3d2   :  { %v1378_v34 = vpop.f32.mrf.mxu3 }
 0x3d3   :  { %v1470_v29 = vpack.c.bf16 %v1378_v34, %v1378_v34  ;;  %v2519_v34 = vld [vmem:[%s3481_s1 + $0x20] sm:$0xff] }
 0x3d5   :  { %v2992_v45 = vunpack.c.l.b16 %v1470_v29 }
 0x3d7   :  { %3519 = vst [vmem:[#allocation12_spill] sm:$0xff] %v2992_v45 }
 0x3d9   :  { %1270 = vmatmul.bf16.gmra.mxu1 %v2518_v21 }
 0x3da   :  { %v1381_v19 = vpop.f32.mrf.mxu3 }
 0x3db   :  { %v1471_v31 = vpack.c.bf16 %v1381_v19, %v1381_v19 }
 0x3dd   :  { %v2999_v58 = vunpack.c.l.b16 %v1471_v31 }
 0x3df   :  { %3520 = vst [vmem:[#allocation13_spill] sm:$0xff] %v2999_v58 }
 0x3e2   :  { %v1383_v32 = vpop.f32.mrf.mxu3 }
 0x3e3   :  { %v1472_v63 = vpack.c.bf16 %v1383_v32, %v1383_v32  ;;  %v2520_v32 = vld [vmem:[%s3481_s1 + $0x28] sm:$0xff] }
 0x3e5   :  { %v3001_v61 = vunpack.c.l.b16 %v1472_v63 }
 0x3e7   :  { %3521 = vst [vmem:[#allocation14_spill] sm:$0xff] %v3001_v61 }
 0x3e9   :  { %1275 = vmatmul.bf16.gmra.mxu1 %v2519_v34 }
 0x3ea   :  { %v1386_v29 = vpop.f32.mrf.mxu3 }
 0x3eb   :  { %v1473_v62 = vpack.c.bf16 %v1386_v29, %v1386_v29 }
 0x3ed   :  { %v3008_v45 = vunpack.c.l.b16 %v1473_v62 }
 0x3ef   :  { %3522 = vst [vmem:[#allocation15_spill] sm:$0xff] %v3008_v45 }
 0x3f2   :  { %v1388_v50 = vpop.f32.mrf.mxu3 }
 0x3f3   :  { %v1474_v21 = vpack.c.bf16 %v1388_v50, %v1388_v50 }
 0x3f5   :  { %v3010_v19 = vunpack.c.l.b16 %v1474_v21 }
 0x3f7   :  { %3523 = vst [vmem:[#allocation16_spill] sm:$0xff] %v3010_v19  ;;  %v2522_v19 = vld [vmem:[%s3481_s1 + $0x38] sm:$0xff] }
 0x3f9   :  { %1280 = vmatmul.bf16.gmra.mxu1 %v2520_v32  ;;  %v2521_v32 = vld [vmem:[%s3481_s1 + $0x30] sm:$0xff] }
 0x3fa   :  { %v1391_v63 = vpop.f32.mrf.mxu3 }
 0x3fb   :  { %v1475_v58 = vpack.c.bf16 %v1391_v63, %v1391_v63 }
 0x3fd   :  { %v3018_v62 = vunpack.c.l.b16 %v1475_v58 }
 0x3ff   :  { %v630_v6 = vpop.xlane.xlu0 %629  ;;  %3524 = vst [vmem:[#allocation17_spill] sm:$0xff] %v3018_v62 }
 0x400   :  { %v652_v34 = vsub.f32 %v2930_v40, %v630_v6 }
 0x402   :  { %v660_v29 = vmul.f32 1.442695, %v652_v34  ;;  %v1393_v61 = vpop.f32.mrf.mxu3 }
 0x403   :  { %v1476_v50 = vpack.c.bf16 %v1393_v61, %v1393_v61 }
 0x404   :  { %2427 = vpow2.f32 %v660_v29 }
 0x405   :  { %v3020_v21 = vunpack.c.l.b16 %v1476_v50 }
 0x406   :  { %v3022_v13 = vpop.f32.mrf.mxu1 }
 0x407   :  { %3525 = vst [vmem:[#allocation18_spill] sm:$0xff] %v3020_v21  ;;  %vm1111_vm5 = vcmp.gt.f32.partialorder %v3022_v13, 0.0 }
 0x409   :  { %1285 = vmatmul.bf16.gmra.mxu1 %v2521_v32  ;;  %v2523_v32 = vld [vmem:[%s3481_s1 + $0x40] sm:$0xff] }
 0x40a   :  { %v3029_v40 = vpop.eup %2427  ;;  %v1396_v6 = vpop.f32.mrf.mxu3 }
 0x40b   :  { %v676_v61 = vsel %vm627_vm0, %v3029_v40, 0.0  ;;  %v1477_v63 = vpack.c.bf16 %v1396_v6, %v1396_v6 }
 0x40c   :  { %677 = vadd.xlane.f32.xlu2 %v676_v61 }
 0x40d   :  { %v3033_v50 = vunpack.c.l.b16 %v1477_v63 }
 0x40e   :  { %v914_v58 = vpop.f32.mrf.mxu1 }
 0x40f   :  { %3526 = vst [vmem:[#allocation19_spill] sm:$0xff] %v3033_v50 }
 0x412   :  { %v1398_v34 = vpop.f32.mrf.mxu3 }
 0x413   :  { %v1478_v29 = vpack.c.bf16 %v1398_v34, %v1398_v34 }
 0x415   :  { %v3035_v45 = vunpack.c.l.b16 %v1478_v29 }
 0x416   :  { %v3037_v31 = vpop.f32.mrf.mxu1 }
 0x417   :  { %3527 = vst [vmem:[#allocation20_spill] sm:$0xff] %v3035_v45 }
 0x418   :  { %3528 = vst [vmem:[#allocation21_spill] sm:$0xff] %v3037_v31 }
 0x419   :  { %1290 = vmatmul.bf16.gmra.mxu1 %v2522_v19 }
 0x41a   :  { %v1401_v62 = vpop.f32.mrf.mxu3 }
 0x41b   :  { %v1479_v58 = vpack.c.bf16 %v1401_v62, %v1401_v62 }
 0x41d   :  { %v3044_v34 = vunpack.c.l.b16 %v1479_v58  ;;  %v2524_v58 = vld [vmem:[%s3481_s1 + $0x48] sm:$0xff] }
 0x41e   :  { %v1058_v61 = vpop.f32.mrf.mxu1 }
 0x41f   :  { %3529 = vst [vmem:[#allocation22_spill] sm:$0xff] %v3044_v34 }
 0x422   :  { %v1403_v6 = vpop.f32.mrf.mxu3 }
 0x423   :  { %v1480_v21 = vpack.c.bf16 %v1403_v6, %v1403_v6 }
 0x425   :  { %v3046_v63 = vunpack.c.l.b16 %v1480_v21  ;;  %v633_v21 = vpop.xlane.xlu2 %632 }
 0x427   :  { %3530 = vst [vmem:[#allocation23_spill] sm:$0xff] %v3046_v63 }
 0x429   :  { %1295 = vmatmul.bf16.gmra.mxu1 %v2523_v32 }
 0x42a   :  { %v1406_v31 = vpop.f32.mrf.mxu3 }
 0x42b   :  { %v1481_v50 = vpack.c.bf16 %v1406_v31, %v1406_v31 }
 0x42d   :  { %v3053_v61 = vunpack.c.l.b16 %v1481_v50  ;;  %v2525_v50 = vld [vmem:[%s3481_s1 + $0x50] sm:$0xff] }
 0x42f   :  { %3531 = vst [vmem:[#allocation24_spill] sm:$0xff] %v3053_v61  ;;  %v653_v61 = vsub.f32 %v2891_v51, %v633_v21 }
 0x432   :  { %v1408_v19 = vpop.f32.mrf.mxu3 }
 0x433   :  { %v1482_v45 = vpack.c.bf16 %v1408_v19, %v1408_v19 }
 0x435   :  { %v3055_v62 = vunpack.c.l.b16 %v1482_v45 }
 0x437   :  { %3532 = vst [vmem:[#allocation25_spill] sm:$0xff] %v3055_v62 }
 0x439   :  { %1300 = vmatmul.bf16.gmra.mxu1 %v2524_v58 }
 0x43a   :  { %v1411_v6 = vpop.f32.mrf.mxu3 }
 0x43b   :  { %v1483_v29 = vpack.c.bf16 %v1411_v6, %v1411_v6 }
 0x43d   :  { %v3062_v63 = vunpack.c.l.b16 %v1483_v29 }
 0x43f   :  { %3533 = vst [vmem:[#allocation26_spill] sm:$0xff] %v3062_v63 }
 0x442   :  { %v1413_v34 = vpop.f32.mrf.mxu3 }
 0x443   :  { %v1484_v32 = vpack.c.bf16 %v1413_v34, %v1413_v34 }
 0x445   :  { %v3064_v31 = vunpack.c.l.b16 %v1484_v32  ;;  %v2526_v32 = vld [vmem:[%s3481_s1 + $0x58] sm:$0xff] }
 0x447   :  { %3534 = vst [vmem:[#allocation27_spill] sm:$0xff] %v3064_v31 }
 0x449   :  { %1305 = vmatmul.bf16.gmra.mxu1 %v2525_v50 }
 0x44a   :  { %v3071_v19 = vpop.f32.mrf.mxu3 }
 0x44b   :  { %v1506_v58 = vperm.slane %v3071_v19, 3  ;;  %v1492_v6 = vperm.slane %v3071_v19, 1  ;;  %v1485_v34 = vperm.slane %v3071_v19, 0  ;;  %v1499_v29 = vperm.slane %v3071_v19, 2 }
 0x44c   :  { %v1520_v50 = vperm.slane %v3071_v19, 5  ;;  %v1513_v45 = vperm.slane %v3071_v19, 4 }
 0x44d   :  { %1511 = vperm.xlu1 %2413, %v1506_v58   ;;  %1497 = vperm.xlu0 %2412, %v1492_v6   ;;  %v662_v58 = vmul.f32 1.442695, %v653_v61  ;;  %v1534_v61 = vperm.slane %v3071_v19, 7 }
 0x44e   :  { %1490 = vperm.xlu2 %2414, %v1485_v34  }
 0x44f   :  { %2429 = vpow2.f32 %v662_v58 }
 0x455   :  { %1504 = vperm.xlu1 %2413, %v1499_v29   ;;  %v3083_v6 = vpop.eup %2429  ;;  %v636_v29 = vpop.xlane.xlu1 %635 }
 0x456   :  { %v679_v34 = vsel %vm627_vm0, %v3083_v6, 0.0 }
 0x459   :  { %1310 = vmatmul.bf16.gmra.mxu1 %v2526_v32  ;;  %v654_v32 = vsub.f32 %v2841_v15, %v636_v29  ;;  %v3113_v29 = vpop.f32.mrf.mxu1 }
 0x45d   :  { %1525 = vperm.xlu1 %2413, %v1520_v50   ;;  %v664_v50 = vmul.f32 1.442695, %v654_v32 }
 0x465   :  { %1518 = vperm.xlu1 %2413, %v1513_v45   ;;  %v3535_v45 = vpack.c.b16 %v2717_v46, %v2713_v43  ;;  %v3538_v43 = vpack.c.b16 %v2711_v38, %v2709_v37 }
 0x467   :  { %v853_v58 = vsel %vm627_vm0, %v3535_v45, 0  ;;  %v844_v46 = vsel %vm627_vm0, %v3538_v43, 0 }
 0x477   :  { %680 = vadd.xlane.f32.xlu0 %v679_v34  ;;  %v3111_v34 = vpop.xlane.xlu0 %641 }
 0x47f   :  { %v678_v62 = vpop.xlane.xlu2 %677 }
 0x480   :  { %2431 = vrcp.f32 %v678_v62 }
 0x481   :  { %2433 = vpow2.f32 %v664_v50 }
 0x486   :  { %v2432_v26 = vpop.eup %2431 }
 0x487   :  { %v708_v63 = vmul.f32 %v2432_v26, %v3029_v40  ;;  %v3090_v21 = vpop.eup %2433  ;;  %v3536_v26 = vpack.c.b16 %v2743_v5, %v2741_v0  ;;  %v651_v0 = vpop.xlane.xlu0 %650 }
 0x488   :  { %v682_v15 = vsel %vm627_vm0, %v3090_v21, 0.0  ;;  %v3115_v5 = vpop.f32.mrf.mxu3 }
 0x489   :  { %v716_v51 = vpack.c.bf16 %v708_v63, %v708_v63  ;;  %v850_v40 = vsel %vm627_vm0, %v3536_v26, 0  ;;  %v3537_v63 = vpack.c.b16 %v2731_v55, %v2729_v54  ;;  %v1544_v32 = vrot.slane %v3115_v5, 3 }
 0x48a   :  { %v1542_v54 = vrot.slane %v3115_v5, 1  ;;  %v1549_v37 = vperm.slane %v3115_v5, 0 }
 0x48b   :  { %2343 = vmatmul.msk.bf16.vlgmr.msrb.gmra.mxu2 %vm627_vm0, %v716_v51  ;;  %1539 = vperm.xlu0 %2412, %v1534_v61   ;;  %v847_v62 = vsel %vm627_vm0, %v3537_v63, 0  ;;  %v1552_v50 = vperm.slane %v1544_v32, 0  ;;  %v3119_v61 = vpop.f32.mrf.mxu1 }
 0x48c   :  { %859 = vmatpush.bf16.xpose.msrb.mxu2 %v853_v58  ;;  %v1550_v51 = vperm.slane %v1542_v54, 0 }
 0x48f   :  { %683 = vadd.xlane.f32.xlu1 %v682_v15 }
 0x494   :  { %860 = vmatpush.bf16.xpose.msrb.mxu2 %v850_v40  ;;  %v1543_v40 = vrot.slane %v3115_v5, 2 }
 0x49c   :  { %861 = vmatpush.bf16.xpose.msrb.mxu2 %v847_v62 }
 0x4a4   :  { %862 = vmatpush.bf16.xpose.msrb.mxu2 %v844_v46 }
 0x4a8   :  { %v1491_v55 = vpop.permute.xlu2 %1490 }
 0x4a9   :  { %v1565_v26 = vadd.f32 %v1549_v37, %v1491_v55  ;;  %v1551_v55 = vperm.slane %v1543_v40, 0  ;;  %v3131_v37 = vpop.f32.mrf.mxu1 }
 0x4ab   :  { %v1581_v31 = vmul.f32 0.2, %v1565_v26  ;;  %vm1573_vm11 = vcmp.ge.f32.partialorder %v1565_v26, 0.0 }
 0x4b1   :  { %v3144_v7 = vpop.f32.mrf.mxu1 }
 0x4bf   :  { %v1512_v38 = vpop.permute.xlu1 %1511  ;;  %v1498_v45 = vpop.permute.xlu0 %1497 }
 0x4c0   :  { %v1568_v58 = vadd.f32 %v1552_v50, %v1512_v38  ;;  %v1566_v15 = vadd.f32 %v1550_v51, %v1498_v45  ;;  %v3133_v45 = vsel %vm1573_vm11, %v1565_v26, %v1581_v31  ;;  %v1545_v26 = vrot.slane %v3115_v5, 4 }
 0x4c1   :  { %v1597_v40 = vsel %vm627_vm0, %v3133_v45, -inf }
 0x4c2   :  { %v1584_v63 = vmul.f32 0.2, %v1568_v58  ;;  %v1582_v62 = vmul.f32 0.2, %v1566_v15  ;;  %vm1576_vm9 = vcmp.ge.f32.partialorder %v1568_v58, 0.0  ;;  %vm1574_vm10 = vcmp.ge.f32.partialorder %v1566_v15, 0.0 }
 0x4c4   :  { %v3123_v43 = vsel %vm1576_vm9, %v1568_v58, %v1584_v63  ;;  %v3125_v46 = vsel %vm1574_vm10, %v1566_v15, %v1582_v62  ;;  %v1546_v58 = vrot.slane %v3115_v5, 5  ;;  %v659_v15 = vsub.f32 %v2949_v4, %v651_v0 }
 0x4c5   :  { %v1606_v32 = vsel %vm627_vm0, %v3123_v43, -inf  ;;  %v1600_v54 = vsel %vm627_vm0, %v3125_v46, -inf  ;;  %vm1233_vm9 = vcmask 1043459  }
 0x4c6   :  { %1607 = vmax.xlane.f32.xlu0 %v1606_v32  ;;  %1601 = vmax.xlane.f32.xlu2 %v1600_v54  ;;  %v1554_v32 = vperm.slane %v1546_v58, 0 }
 0x4c7   :  { %v1505_v50 = vpop.permute.xlu1 %1504 }
 0x4c8   :  { %v1567_v51 = vadd.f32 %v1551_v55, %v1505_v50  ;;  %v674_v55 = vmul.f32 1.442695, %v659_v15 }
 0x4ca   :  { %v1583_v38 = vmul.f32 0.2, %v1567_v51  ;;  %vm1575_vm12 = vcmp.ge.f32.partialorder %v1567_v51, 0.0  ;;  %2435 = vpow2.f32 %v674_v55  ;;  %v1266_v55 = vpop.f32.mrf.mxu1 }
 0x4cc   :  { %v3137_v63 = vsel %vm1575_vm12, %v1567_v51, %v1583_v38  ;;  %v1553_v51 = vperm.slane %v1545_v26, 0 }
 0x4cd   :  { %v1603_v62 = vsel %vm627_vm0, %v3137_v63, -inf }
 0x4ce   :  { %1604 = vmax.xlane.f32.xlu1 %v1603_v62  ;;  %1598 = vmax.xlane.f32.xlu2 %v1597_v40 }
 0x4cf   :  { %v1526_v54 = vpop.permute.xlu1 %1525 }
 0x4d0   :  { %v1570_v50 = vadd.f32 %v1554_v32, %v1526_v54  ;;  %v3150_v58 = vpop.eup %2435 }
 0x4d1   :  { %v697_v54 = vsel %vm627_vm0, %v3150_v58, 0.0 }
 0x4d2   :  { %v1586_v31 = vmul.f32 0.2, %v1570_v50  ;;  %vm1578_vm13 = vcmp.ge.f32.partialorder %v1570_v50, 0.0 }
 0x4d4   :  { %v3146_v4 = vsel %vm1578_vm13, %v1570_v50, %v1586_v31  ;;  %v1527_v50 = vperm.slane %v3071_v19, 6  ;;  %v1268_v31 = vpop.f32.mrf.mxu1  ;;  %vm1235_vm13 = vcmask 1044484  }
 0x4d5   :  { %v1612_v0 = vsel %vm627_vm0, %v3146_v4, -inf }
 0x4d6   :  { %1613 = vmax.xlane.f32.xlu1 %v1612_v0 }
 0x4d7   :  { %v1519_v38 = vpop.permute.xlu1 %1518 }
 0x4d8   :  { %v1569_v62 = vadd.f32 %v1553_v51, %v1519_v38 }
 0x4da   :  { %v1585_v15 = vmul.f32 0.2, %v1569_v62  ;;  %vm1577_vm14 = vcmp.ge.f32.partialorder %v1569_v62, 0.0 }
 0x4dc   :  { %v3152_v40 = vsel %vm1577_vm14, %v1569_v62, %v1585_v15  ;;  %v1271_v51 = vpop.f32.mrf.mxu1  ;;  %v3539_v15 = vpack.c.b16 %v2807_v28, %v2805_v23  ;;  %vm1237_vm14 = vcmask 1045509  }
 0x4dd   :  { %v1609_v32 = vsel %vm627_vm0, %v3152_v40, -inf }
 0x4de   :  { %1610 = vmax.xlane.f32.xlu0 %v1609_v32  ;;  %698 = vadd.xlane.f32.xlu1 %v697_v54  ;;  %v949_v2 = vsel %vm627_vm0, %v3539_v15, 0  ;;  %v1548_v32 = vrot.slane %v3115_v5, 7 }
 0x4e0   :  { %v1556_v54 = vperm.slane %v1548_v32, 0 }
 0x4e4   :  { %v1273_v19 = vpop.f32.mrf.mxu1 }
 0x4e6   :  { %1532 = vperm.xlu2 %2414, %v1527_v50   ;;  %v656_v50 = vsub.f32 %v2935_v56, %v3111_v34  ;;  %v1425_v34 = vpack.c.bf16 %v1266_v55, %v1266_v55  ;;  %v1423_v55 = vpack.c.bf16 %v3131_v37, %v3131_v37  ;;  %v3543_v37 = vpack.c.b16 %v2672_v36, %v2670_v35 }
 0x4e7   :  { %v1421_v35 = vpack.c.bf16 %v3113_v29, %v3113_v29  ;;  %v1422_v36 = vpack.c.bf16 %v3119_v61, %v3119_v61 }
 0x4e8   :  { %v668_v28 = vmul.f32 1.442695, %v656_v50 }
 0x4e9   :  { %v1701_v29 = vunpack.c.l.b16 %v1421_v35 }
 0x4ea   :  { %v681_v26 = vpop.xlane.xlu0 %680 }
 0x4eb   :  { %2437 = vrcp.f32 %v681_v26 }
 0x4f1   :  { %v2438_v0 = vpop.eup %2437 }
 0x4f2   :  { %v709_v38 = vmul.f32 %v2438_v0, %v3083_v6  ;;  %v3540_v6 = vpack.c.b16 %v2801_v39, %v2799_v10  ;;  %v3541_v10 = vpack.c.b16 %v2789_v11, %v2787_v44  ;;  %v1424_v44 = vpack.c.bf16 %v3144_v7, %v3144_v7 }
 0x4f3   :  { %v1093_v7 = vsel %vm627_vm0, %v3543_v37, 0 }
 0x4f4   :  { %v717_v62 = vpack.c.bf16 %v709_v38, %v709_v38  ;;  %v946_v0 = vsel %vm627_vm0, %v3540_v6, 0  ;;  %v1427_v38 = vpack.c.bf16 %v1271_v51, %v1271_v51  ;;  %v943_v39 = vsel %vm627_vm0, %v3541_v10, 0 }
 0x4f6   :  { %2344 = vmatmul.msk.bf16.vlgmr.msra.gmra.mxu2 %vm627_vm0, %v717_v62  ;;  %v1428_v62 = vpack.c.bf16 %v1273_v19, %v1273_v19  ;;  %v1705_v19 = vunpack.c.l.b16 %v1425_v34 }
 0x4f7   :  { %955 = vmatpush.bf16.xpose.msra.mxu2 %v949_v2  ;;  %v1707_v2 = vunpack.c.l.b16 %v1427_v38 }
 0x4f8   :  { %v1708_v32 = vunpack.c.l.b16 %v1428_v62 }
 0x4fa   :  { %v1712_v51 = vpack.c.b16 %v1708_v32, %v1707_v2  ;;  %v1704_v32 = vunpack.c.l.b16 %v1424_v44 }
 0x4fc   :  { %v1726_v6 = vsel %vm627_vm0, %v1712_v51, 0 }
 0x4fd   :  { %v1540_v26 = vpop.permute.xlu0 %1539  ;;  %1732 = vmatpush.bf16.xpose.msrb.mxu1 %v1726_v6  ;;  %v1702_v6 = vunpack.c.l.b16 %v1422_v36 }
 0x4fe   :  { %v1572_v24 = vadd.f32 %v1556_v54, %v1540_v26  ;;  %v1426_v54 = vpack.c.bf16 %v1268_v31, %v1268_v31 }
 0x4ff   :  { %956 = vmatpush.bf16.xpose.msra.mxu2 %v946_v0  ;;  %v1276_v0 = vpop.f32.mrf.mxu1 }
 0x500   :  { %v1588_v23 = vmul.f32 0.2, %v1572_v24  ;;  %vm1580_vm15 = vcmp.ge.f32.partialorder %v1572_v24, 0.0  ;;  %v1706_v50 = vunpack.c.l.b16 %v1426_v54  ;;  %v1429_v2 = vpack.c.bf16 %v1276_v0, %v1276_v0 }
 0x502   :  { %v684_v15 = vpop.xlane.xlu1 %683  ;;  %v3172_v14 = vsel %vm1580_vm15, %v1572_v24, %v1588_v23  ;;  %v1711_v31 = vpack.c.b16 %v1706_v50, %v1705_v19 }
 0x503   :  { %2439 = vrcp.f32 %v684_v15  ;;  %v1618_v56 = vsel %vm627_vm0, %v3172_v14, -inf  ;;  %v1703_v15 = vunpack.c.l.b16 %v1423_v55  ;;  %v3545_v55 = vld [vmem:[#allocation3_spill] sm:$0xff] }
 0x504   :  { %1619 = vmax.xlane.f32.xlu1 %v1618_v56  ;;  %2441 = vpow2.f32 %v668_v28  ;;  %v1723_v56 = vsel %vm627_vm0, %v1711_v31, 0  ;;  %v3546_v31 = vld [vmem:[#allocation2_spill] sm:$0xff] }
 0x505   :  { %1733 = vmatpush.bf16.xpose.msrb.mxu1 %v1723_v56  ;;  %v1710_v10 = vpack.c.b16 %v1704_v32, %v1703_v15 }
 0x507   :  { %957 = vmatpush.bf16.xpose.msra.mxu2 %v943_v39  ;;  %v1278_v34 = vpop.f32.mrf.mxu1  ;;  %v509_v39 = vpack.c.bf16 %v2641_v60, %v2641_v60  ;;  %v1720_v61 = vsel %vm627_vm0, %v1710_v10, 0  ;;  %v508_v60 = vpack.c.bf16 %v3545_v55, %v3545_v55 }
 0x508   :  { %v1430_v54 = vpack.c.bf16 %v1278_v34, %v1278_v34 }
 0x509   :  { %v2440_v24 = vpop.eup %2439  ;;  %v1070_v0 = vunpack.c.l.b16 %v509_v39 }
 0x50a   :  { %v710_v26 = vmul.f32 %v2440_v24, %v3090_v21  ;;  %v3182_v38 = vpop.eup %2441  ;;  %v3542_v21 = vpack.c.b16 %v2772_v57, %v2770_v53  ;;  %v510_v53 = vpack.c.bf16 %v2644_v1, %v2644_v1  ;;  %v3204_v57 = vunpack.c.l.b16 %v1429_v2 }
 0x50b   :  { %v688_v28 = vsel %vm627_vm0, %v3182_v38, 0.0  ;;  %v3212_v51 = vunpack.c.l.b16 %v1430_v54  ;;  %v3544_v1 = vpack.c.b16 %v2660_v18, %v2658_v17  ;;  %v507_v17 = vpack.c.bf16 %v3546_v31, %v3546_v31 }
 0x50c   :  { %v718_v11 = vpack.c.bf16 %v710_v26, %v710_v26  ;;  %v940_v23 = vsel %vm627_vm0, %v3542_v21, 0  ;;  %v1071_v50 = vunpack.c.l.b16 %v510_v53  ;;  %v1069_v18 = vunpack.c.l.b16 %v508_v60 }
 0x50d   :  { %v1090_v24 = vsel %vm627_vm0, %v3544_v1, 0  ;;  %1734 = vmatpush.bf16.xpose.msrb.mxu1 %v1720_v61  ;;  %v1068_v37 = vunpack.c.l.b16 %v507_v17  ;;  %v1547_v17 = vrot.slane %v3115_v5, 6 }
 0x50e   :  { %v3188_v62 = vpop.f32.mrf.mxu2  ;;  %2345 = vmatmul.msk.bf16.vlgmr.msrb.gmra.mxu2 %vm627_vm0, %v718_v11  ;;  %v1077_v44 = vpack.c.b16 %v1071_v50, %v1070_v0  ;;  %v1709_v11 = vpack.c.b16 %v1702_v6, %v1701_v29 }
 0x50f   :  { %958 = vmatpush.bf16.xpose.msra.mxu2 %v940_v23  ;;  %689 = vadd.xlane.f32.xlu2 %v688_v28  ;;  %v1281_v23 = vpop.f32.mrf.mxu1  ;;  %vm1108_vm2 = vcmp.gt.f32.partialorder %v3188_v62, 0.0 }
 0x510   :  { %v1087_v21 = vsel %vm627_vm0, %v1077_v44, 0  ;;  %v1717_v28 = vsel %vm627_vm0, %v1709_v11, 0  ;;  %v1431_v2 = vpack.c.bf16 %v1281_v23, %v1281_v23 }
 0x512   :  { %v3228_v56 = vunpack.c.l.b16 %v1431_v2 }
 0x515   :  { %1735 = vmatpush.bf16.xpose.msrb.mxu1 %v1717_v28 }
 0x516   :  { %v770_v19 = vpop.f32.mrf.mxu2 }
 0x517   :  { %1099 = vmatpush.bf16.xpose.msrb.mxu2 %v1093_v7  ;;  %v1076_v7 = vpack.c.b16 %v1069_v18, %v1068_v37  ;;  %v1283_v32 = vpop.f32.mrf.mxu1 }
 0x518   :  { %v1432_v34 = vpack.c.bf16 %v1283_v32, %v1283_v32 }
 0x519   :  { %v1084_v15 = vsel %vm627_vm0, %v1076_v7, 0 }
 0x51a   :  { %v3230_v53 = vunpack.c.l.b16 %v1432_v34 }
 0x51f   :  { %1100 = vmatpush.bf16.xpose.msrb.mxu2 %v1090_v24  ;;  %v1286_v35 = vpop.f32.mrf.mxu1 }
 0x520   :  { %v1433_v36 = vpack.c.bf16 %v1286_v35, %v1286_v35 }
 0x522   :  { %v3236_v24 = vunpack.c.l.b16 %v1433_v36 }
 0x527   :  { %1101 = vmatpush.bf16.xpose.msrb.mxu2 %v1087_v21  ;;  %v1288_v1 = vpop.f32.mrf.mxu1 }
 0x528   :  { %v1434_v29 = vpack.c.bf16 %v1288_v1, %v1288_v1 }
 0x52a   :  { %v3238_v0 = vunpack.c.l.b16 %v1434_v29 }
 0x52f   :  { %1102 = vmatpush.bf16.xpose.msrb.mxu2 %v1084_v15 }
 0x539   :  { %v1608_v10 = vpop.xlane.xlu0 %1607  ;;  %v1602_v39 = vpop.xlane.xlu2 %1601 }
 0x53a   :  { %v1624_v19 = vsub.f32 %v3123_v43, %v1608_v10  ;;  %v1622_v50 = vsub.f32 %v3125_v46, %v1602_v39  ;;  %v3243_v43 = vpop.f32.mrf.mxu1 }
 0x53c   :  { %v1635_v6 = vmul.f32 1.442695, %v1624_v19  ;;  %v1631_v61 = vmul.f32 1.442695, %v1622_v50 }
 0x53e   :  { %2443 = vpow2.f32 %v1635_v6 }
 0x53f   :  { %2445 = vpow2.f32 %v1631_v61 }
 0x541   :  { %v1605_v60 = vpop.xlane.xlu1 %1604  ;;  %v1599_v44 = vpop.xlane.xlu2 %1598 }
 0x542   :  { %v1621_v11 = vsub.f32 %v3133_v45, %v1599_v44  ;;  %v1623_v21 = vsub.f32 %v3137_v63, %v1605_v60  ;;  %v1555_v45 = vperm.slane %v1547_v17, 0  ;;  %v3256_v32 = vpop.f32.mrf.mxu1 }
 0x544   :  { %v3245_v46 = vpop.eup %2443  ;;  %v1629_v31 = vmul.f32 1.442695, %v1621_v11  ;;  %v1633_v37 = vmul.f32 1.442695, %v1623_v21 }
 0x545   :  { %v3248_v18 = vpop.eup %2445  ;;  %v1654_v23 = vsel %vm627_vm0, %v3245_v46, 0.0 }
 0x546   :  { %1655 = vadd.xlane.f32.xlu2 %v1654_v23  ;;  %v1648_v28 = vsel %vm627_vm0, %v3248_v18, 0.0  ;;  %2447 = vpow2.f32 %v1629_v31 }
 0x547   :  { %1649 = vadd.xlane.f32.xlu0 %v1648_v28  ;;  %2449 = vpow2.f32 %v1633_v37 }
 0x549   :  { %v1614_v7 = vpop.xlane.xlu1 %1613  ;;  %v1533_v2 = vpop.permute.xlu2 %1532 }
 0x54a   :  { %v1626_v15 = vsub.f32 %v3146_v4, %v1614_v7  ;;  %v1571_v5 = vadd.f32 %v1555_v45, %v1533_v2  ;;  %v1296_v50 = vpop.f32.mrf.mxu1  ;;  %v1116_v45 = vmin.f32 %v3188_v62, 0.0 }
 0x54b   :  { %v1437_v44 = vpack.c.bf16 %v1296_v50, %v1296_v50  ;;  %v1119_v50 = vmin.f32 %v3022_v13, 0.0 }
 0x54c   :  { %v1639_v34 = vmul.f32 1.442695, %v1626_v15  ;;  %v1587_v63 = vmul.f32 0.2, %v1571_v5  ;;  %vm1579_vm1 = vcmp.ge.f32.partialorder %v1571_v5, 0.0  ;;  %v3258_v35 = vpop.eup %2447 }
 0x54d   :  { %v1645_v36 = vsel %vm627_vm0, %v3258_v35, 0.0  ;;  %v3267_v1 = vpop.eup %2449  ;;  %v3275_v31 = vunpack.c.l.b16 %v1437_v44  ;;  %v1124_v7 = vmul.f32 1.442695, %v1116_v45 }
 0x54e   :  { %2451 = vpow2.f32 %v1639_v34  ;;  %v3262_v10 = vsel %vm1579_vm1, %v1571_v5, %v1587_v63  ;;  %v1651_v60 = vsel %vm627_vm0, %v3267_v1, 0.0  ;;  %vm1239_vm1 = vcmask 1046534  }
 0x54f   :  { %1646 = vadd.xlane.f32.xlu0 %v1645_v36  ;;  %v1615_v39 = vsel %vm627_vm0, %v3262_v10, -inf }
 0x550   :  { %1616 = vmax.xlane.f32.xlu1 %v1615_v39 }
 0x551   :  { %v1611_v4 = vpop.xlane.xlu0 %1610  ;;  %v699_v15 = vpop.xlane.xlu1 %698 }
 0x552   :  { %v1625_v19 = vsub.f32 %v3152_v40, %v1611_v4  ;;  %v1298_v11 = vpop.f32.mrf.mxu1 }
 0x553   :  { %v1438_v40 = vpack.c.bf16 %v1298_v11, %v1298_v11 }
 0x554   :  { %v3269_v29 = vpop.eup %2451  ;;  %v1637_v6 = vmul.f32 1.442695, %v1625_v19 }
 0x555   :  { %v1660_v61 = vsel %vm627_vm0, %v3269_v29, 0.0  ;;  %v3281_v23 = vunpack.c.l.b16 %v1438_v40 }
 0x556   :  { %2453 = vpow2.f32 %v1637_v6 }
 0x557   :  { %1661 = vadd.xlane.f32.xlu0 %v1660_v61  ;;  %2455 = vpow2.f32 %v1124_v7 }
 0x558   :  { %1652 = vadd.xlane.f32.xlu1 %v1651_v60 }
 0x55a   :  { %v3286_v37 = vpop.f32.mrf.mxu1 }
 0x55c   :  { %v3277_v17 = vpop.eup %2453 }
 0x55d   :  { %3547 = vst [vmem:[#allocation3_spill] sm:$0xff] %v3277_v17  ;;  %v1657_v21 = vsel %vm627_vm0, %v3277_v17, 0.0  ;;  %v2456_v5 = vpop.eup %2455 }
 0x55e   :  { %1658 = vadd.xlane.f32.xlu2 %v1657_v21  ;;  %v2351_v63 = vadd.f32 -1.0, %v2456_v5  ;;  %v1130_v21 = vmul.f32 1.442695, %v1119_v50 }
 0x560   :  { %v1148_v36 = vsel %vm1108_vm2, %v3188_v62, %v2351_v63  ;;  %v1435_v62 = vpack.c.bf16 %v3243_v43, %v3243_v43  ;;  %vm1241_vm2 = vcmask 1047559  }
 0x561   :  { %v1157_v6 = vsel %vm1156_vm3, %v1148_v36, 0.0 }
 0x562   :  { %v3288_v2 = vpop.f32.mrf.mxu1  ;;  %v1158_v40 = vrot.slane %v1157_v6, 4  ;;  %v1755_v50 = vunpack.c.l.b16 %v1435_v62 }
 0x564   :  { %v1159_v45 = vadd.f32 %v1158_v40, %v1157_v6 }
 0x56a   :  { %v1306_v34 = vpop.f32.mrf.mxu1 }
 0x572   :  { %v1308_v44 = vpop.f32.mrf.mxu1 }
 0x577   :  { %v1620_v39 = vpop.xlane.xlu1 %1619 }
 0x578   :  { %v1628_v4 = vsub.f32 %v3172_v14, %v1620_v39  ;;  %v1436_v14 = vpack.c.bf16 %v3256_v32, %v3256_v32 }
 0x579   :  { %v816_v19 = vpop.f32.mrf.mxu2 }
 0x57a   :  { %v1643_v61 = vmul.f32 1.442695, %v1628_v4  ;;  %v1117_v60 = vmin.f32 %v816_v19, 0.0  ;;  %v1311_v36 = vpop.f32.mrf.mxu1  ;;  %vm1109_vm4 = vcmp.gt.f32.partialorder %v816_v19, 0.0 }
 0x57b   :  { %v1443_v26 = vpack.c.bf16 %v1311_v36, %v1311_v36  ;;  %v1442_v36 = vpack.c.bf16 %v1308_v44, %v1308_v44  ;;  %v1439_v44 = vpack.c.bf16 %v3286_v37, %v3286_v37 }
 0x57c   :  { %2457 = vpow2.f32 %v1643_v61  ;;  %v1126_v11 = vmul.f32 1.442695, %v1117_v60  ;;  %v1756_v61 = vunpack.c.l.b16 %v1436_v14  ;;  %v1160_v60 = vrot.slane %v1159_v45, 2 }
 0x57d   :  { %v1803_v17 = vunpack.c.l.b16 %v1443_v26 }
 0x57e   :  { %2459 = vpow2.f32 %v1126_v11  ;;  %v1760_v6 = vpack.c.b16 %v1756_v61, %v1755_v50 }
 0x57f   :  { %2461 = vpow2.f32 %v1130_v21  ;;  %v1161_v21 = vadd.f32 %v1160_v60, %v1159_v45 }
 0x581   :  { %v818_v7 = vpop.f32.mrf.mxu2 }
 0x582   :  { %v3299_v5 = vpop.eup %2457  ;;  %v690_v63 = vpop.xlane.xlu2 %689 }
 0x583   :  { %3548 = vst [vmem:[#allocation2_spill] sm:$0xff] %v3299_v5  ;;  %2463 = vrcp.f32 %v690_v63  ;;  %v1666_v39 = vsel %vm627_vm0, %v3299_v5, 0.0  ;;  %v1313_v54 = vpop.f32.mrf.mxu1  ;;  %v1441_v5 = vpack.c.bf16 %v1306_v34, %v1306_v34 }
 0x584   :  { %v2460_v4 = vpop.eup %2459  ;;  %1667 = vadd.xlane.f32.xlu1 %v1666_v39  ;;  %v1444_v62 = vpack.c.bf16 %v1313_v54, %v1313_v54  ;;  %2465 = vrcp.f32 %v699_v15 }
 0x585   :  { %v2352_v43 = vadd.f32 -1.0, %v2460_v4  ;;  %v2462_v32 = vpop.eup %2461  ;;  %v1774_v4 = vsel %vm627_vm0, %v1760_v6, 0 }
 0x586   :  { %v2354_v14 = vadd.f32 -1.0, %v2462_v32  ;;  %v1804_v50 = vunpack.c.l.b16 %v1444_v62 }
 0x587   :  { %v1149_v11 = vsel %vm1109_vm4, %v816_v19, %v2352_v43  ;;  %v1162_v19 = vrot.slane %v1161_v21, 1 }
 0x588   :  { %v1164_v40 = vsel %vm1156_vm3, %v1149_v11, 0.0  ;;  %v1151_v54 = vsel %vm1111_vm5, %v3022_v13, %v2354_v14  ;;  %v1802_v11 = vunpack.c.l.b16 %v1442_v36  ;;  %v1440_v13 = vpack.c.bf16 %v3288_v2, %v3288_v2 }
 0x589   :  { %v2464_v7 = vpop.eup %2463  ;;  %v1165_v28 = vrot.slane %v1164_v40, 4  ;;  %v1163_v34 = vadd.f32 %v1162_v19, %v1161_v21  ;;  %v1178_v6 = vsel %vm1156_vm3, %v1151_v54, 0.0  ;;  %v3550_v36 = vpack.c.b16 %v3230_v53, %v3228_v56 }
 0x58a   :  { %v712_v63 = vmul.f32 %v2464_v7, %v3182_v38  ;;  %v1801_v38 = vunpack.c.l.b16 %v1441_v5  ;;  %v3549_v5 = vpack.c.b16 %v3238_v0, %v3236_v24  ;;  %v1179_v62 = vrot.slane %v1178_v6, 4 }
 0x58b   :  { %v1166_v55 = vadd.f32 %v1165_v28, %v1164_v40  ;;  %v1808_v28 = vpack.c.b16 %v1804_v50, %v1803_v17  ;;  %v1213_v21 = vmul.f32 0.125, %v1163_v34  ;;  %v1800_v19 = vunpack.c.l.b16 %v1440_v13 }
 0x58c   :  { %v720_v39 = vpack.c.bf16 %v712_v63, %v712_v63  ;;  %v1807_v40 = vpack.c.b16 %v1802_v11, %v1801_v38  ;;  %v1771_v7 = vsel %vm627_vm0, %v3549_v5, 0  ;;  %v3552_v53 = vpack.c.b16 %v2887_v22, %v2885_v20 }
 0x58d   :  { %v1167_v43 = vrot.slane %v1166_v55, 2  ;;  %v1822_v26 = vsel %vm627_vm0, %v1808_v28, 0  ;;  %v1768_v28 = vsel %vm627_vm0, %v3550_v36, 0  ;;  %v3554_v20 = vpack.c.b16 %v2877_v33, %v2875_v3 }
 0x58e   :  { %2347 = vmatmul.msk.bf16.vlgmr.msra.gmra.mxu2 %vm627_vm0, %v720_v39  ;;  %1828 = vmatpush.bf16.xpose.msra.mxu1 %v1822_v26  ;;  %v1819_v39 = vsel %vm627_vm0, %v1807_v40, 0 }
 0x58f   :  { %v1168_v45 = vadd.f32 %v1167_v43, %v1166_v55  ;;  %1780 = vmatpush.bf16.xpose.msra.mxu2 %v1774_v4  ;;  %v2466_v55 = vpop.eup %2465  ;;  %v1799_v4 = vunpack.c.l.b16 %v1439_v44  ;;  %v1180_v43 = vadd.f32 %v1179_v62, %v1178_v6  ;;  %v1867_v22 = vsel %vm627_vm0, %v3554_v20, 0 }
 0x590   :  { %v715_v37 = vmul.f32 %v2466_v55, %v3150_v58  ;;  %v3553_v55 = vpack.c.b16 %v3281_v23, %v3275_v31  ;;  %v3555_v23 = vpack.c.b16 %v2869_v47, %v2867_v30  ;;  %v3556_v62 = vpack.c.b16 %v2861_v49, %v2859_v27 }
 0x591   :  { %v1169_v61 = vrot.slane %v1168_v45, 1  ;;  %v864_v60 = vpop.f32.mrf.mxu2  ;;  %v1806_v0 = vpack.c.b16 %v1800_v19, %v1799_v4  ;;  %v1181_v38 = vrot.slane %v1180_v43, 2 }
 0x592   :  { %v1118_v32 = vmin.f32 %v864_v60, 0.0  ;;  %v723_v24 = vpack.c.bf16 %v715_v37, %v715_v37  ;;  %vm1110_vm7 = vcmp.gt.f32.partialorder %v864_v60, 0.0  ;;  %v1813_v44 = vsel %vm627_vm0, %v3553_v55, 0 }
 0x593   :  { %v1170_v15 = vadd.f32 %v1169_v61, %v1168_v45  ;;  %v1816_v34 = vsel %vm627_vm0, %v1806_v0, 0  ;;  %v1182_v11 = vadd.f32 %v1181_v38, %v1180_v43 }
 0x594   :  { %v1128_v17 = vmul.f32 1.442695, %v1118_v32 }
 0x595   :  { %v1214_v63 = vmul.f32 0.125, %v1170_v15  ;;  %v1183_v6 = vrot.slane %v1182_v11, 1  ;;  %v3551_v15 = vpack.c.b16 %v3212_v51, %v3204_v57 }
 0x596   :  { %2467 = vpow2.f32 %v1128_v17  ;;  %1829 = vmatpush.bf16.xpose.msra.mxu1 %v1819_v39 }
 0x597   :  { %v1230_v14 = vsel %vm1229_vm6, %v1214_v63, %v1213_v21  ;;  %1781 = vmatpush.bf16.xpose.msra.mxu2 %v1771_v7  ;;  %v1765_v40 = vsel %vm627_vm0, %v3551_v15, 0  ;;  %v1184_v17 = vadd.f32 %v1183_v6, %v1182_v11  ;;  %v1864_v21 = vsel %vm627_vm0, %v3555_v23, 0  ;;  %v3562_v11 = vld [vmem:[#allocation8_spill] sm:$0xff]  ;;  %v3566_v6 = vld [vmem:[#allocation9_spill] sm:$0xff]  ;;  %v3568_v15 = vld [vmem:[#allocation27_spill] sm:$0xff] }
 0x598   :  { %v3578_v23 = vld [vmem:[#allocation24_spill] sm:$0xff] }
 0x599   :  { %v866_v2 = vpop.f32.mrf.mxu2  ;;  %v1216_v51 = vmul.f32 0.125, %v1184_v17 }
 0x59a   :  { %v3557_v2 = vpack.c.b16 %v2980_v12, %v2978_v48  ;;  %v3559_v12 = vpack.c.b16 %v2968_v9, %v2966_v8  ;;  %v3561_v8 = vpack.c.b16 %v2956_v41, %v2954_v16 }
 0x59c   :  { %v2468_v50 = vpop.eup %2467  ;;  %v1966_v27 = vsel %vm627_vm0, %v3557_v2, 0  ;;  %v1960_v9 = vsel %vm627_vm0, %v3561_v8, 0  ;;  %v3587_v2 = vld [vmem:[#allocation14_spill] sm:$0xff]  ;;  %v3597_v8 = vld [vmem:[#allocation11_spill] sm:$0xff] }
 0x59d   :  { %v2353_v45 = vadd.f32 -1.0, %v2468_v50 }
 0x59e   :  { %2350 = vmatmul.msk.bf16.vlgmr.msrb.gmra.mxu2 %vm627_vm0, %v723_v24  ;;  %1830 = vmatpush.bf16.xpose.msra.mxu1 %v1816_v34 }
 0x59f   :  { %v1150_v54 = vsel %vm1110_vm7, %v864_v60, %v2353_v45  ;;  %1782 = vmatpush.bf16.xpose.msra.mxu2 %v1768_v28  ;;  %v1870_v60 = vsel %vm627_vm0, %v3552_v53, 0  ;;  %v1963_v45 = vsel %vm627_vm0, %v3559_v12, 0  ;;  %v3593_v12 = vld [vmem:[#allocation4_spill] sm:$0xff] }
 0x5a0   :  { %v1171_v58 = vsel %vm1156_vm3, %v1150_v54, 0.0  ;;  %vm1113_vm10 = vcmp.gt.f32.partialorder %v3593_v12, 0.0 }
 0x5a1   :  { %v1172_v61 = vrot.slane %v1171_v58, 4 }
 0x5a3   :  { %v1173_v26 = vadd.f32 %v1172_v61, %v1171_v58 }
 0x5a5   :  { %v1174_v32 = vrot.slane %v1173_v26, 2 }
 0x5a6   :  { %1831 = vmatpush.bf16.xpose.msra.mxu1 %v1813_v44  ;;  %v3571_v44 = vld [vmem:[#allocation6_spill] sm:$0xff] }
 0x5a7   :  { %v1175_v56 = vadd.f32 %v1174_v32, %v1173_v26  ;;  %1783 = vmatpush.bf16.xpose.msra.mxu2 %v1765_v40  ;;  %v3563_v26 = vld [vmem:[#allocation7_spill] sm:$0xff]  ;;  %v3565_v32 = vld [vmem:[#allocation10_spill] sm:$0xff] }
 0x5a8   :  { %v3567_v16 = vpack.c.b16 %v3565_v32, %v3566_v6 }
 0x5a9   :  { %v1176_v13 = vrot.slane %v1175_v56, 1 }
 0x5aa   :  { %v1957_v41 = vsel %vm627_vm0, %v3567_v16, 0 }
 0x5ab   :  { %v1177_v5 = vadd.f32 %v1176_v13, %v1175_v56  ;;  %v3572_v13 = vld [vmem:[#allocation5_spill] sm:$0xff] }
 0x5ac   :  { %v3573_v17 = vpack.c.b16 %v3571_v44, %v3572_v13 }
 0x5ad   :  { %v1215_v57 = vmul.f32 0.125, %v1177_v5 }
 0x5ae   :  { %v1909_v5 = vsel %vm627_vm0, %v3573_v17, 0 }
 0x5af   :  { %1876 = vmatpush.bf16.xpose.msrb.mxu2 %v1870_v60  ;;  %v1232_v7 = vsel %vm1231_vm8, %v1215_v57, %v1230_v14  ;;  %v1861_v14 = vsel %vm627_vm0, %v3556_v62, 0  ;;  %v3574_v57 = vld [vmem:[#allocation18_spill] sm:$0xff] }
 0x5b0   :  { %v3347_v31 = vsel %vm1233_vm9, %v1216_v51, %v1232_v7  ;;  %v3575_v51 = vld [vmem:[#allocation17_spill] sm:$0xff] }
 0x5b1   :  { %v3576_v7 = vpack.c.b16 %v3574_v57, %v3575_v51 }
 0x5b3   :  { %v2014_v20 = vsel %vm627_vm0, %v3576_v7, 0 }
 0x5b7   :  { %1877 = vmatpush.bf16.xpose.msrb.mxu2 %v1867_v22  ;;  %v3577_v22 = vld [vmem:[#allocation25_spill] sm:$0xff] }
 0x5b9   :  { %v1656_v19 = vpop.xlane.xlu2 %1655 }
 0x5ba   :  { %v1650_v63 = vpop.xlane.xlu0 %1649 }
 0x5bb   :  { %2469 = vrcp.f32 %v1650_v63  ;;  %v3580_v63 = vld [vmem:[#allocation3_spill] sm:$0xff] }
 0x5bf   :  { %1878 = vmatpush.bf16.xpose.msrb.mxu2 %v1864_v21  ;;  %v3579_v21 = vpack.c.b16 %v3577_v22, %v3578_v23 }
 0x5c1   :  { %v2470_v3 = vpop.eup %2469 }
 0x5c2   :  { %v1678_v33 = vmul.f32 %v2470_v3, %v3248_v18  ;;  %v1647_v39 = vpop.xlane.xlu0 %1646  ;;  %v3581_v3 = vld [vmem:[#allocation16_spill] sm:$0xff] }
 0x5c3   :  { %2471 = vrcp.f32 %v1647_v39  ;;  %v1617_v37 = vpop.xlane.xlu1 %1616 }
 0x5c4   :  { %v1686_v4 = vpack.c.bf16 %v1678_v33, %v1678_v33  ;;  %v1627_v30 = vsub.f32 %v3262_v10, %v1617_v37  ;;  %2473 = vrcp.f32 %v1656_v19  ;;  %v3558_v10 = vpack.c.b16 %v2920_v52, %v2918_v59  ;;  %v3582_v33 = vld [vmem:[#allocation15_spill] sm:$0xff]  ;;  %v3585_v19 = vld [vmem:[#allocation22_spill] sm:$0xff] }
 0x5c5   :  { %v3560_v59 = vpack.c.b16 %v2912_v25, %v2910_v42  ;;  %v3564_v25 = vpack.c.b16 %v3562_v11, %v3563_v26  ;;  %v3583_v39 = vpack.c.b16 %v3581_v3, %v3582_v33 }
 0x5c6   :  { %v1641_v47 = vmul.f32 1.442695, %v1627_v30  ;;  %2361 = vmatmul.msk.bf16.vlgmr.msra.gmra.mxu2 %vm627_vm0, %v1686_v4  ;;  %v1918_v48 = vsel %vm627_vm0, %v3558_v10, 0  ;;  %v3584_v4 = vld [vmem:[#allocation23_spill] sm:$0xff] }
 0x5c7   :  { %1879 = vmatpush.bf16.xpose.msrb.mxu2 %v1861_v14  ;;  %v1915_v52 = vsel %vm627_vm0, %v3560_v59, 0  ;;  %v1912_v42 = vsel %vm627_vm0, %v3564_v25, 0  ;;  %v2011_v37 = vsel %vm627_vm0, %v3583_v39, 0  ;;  %v3586_v30 = vpack.c.b16 %v3584_v4, %v3585_v19 }
 0x5c8   :  { %2475 = vpow2.f32 %v1641_v47 }
 0x5c9   :  { %v2472_v49 = vpop.eup %2471  ;;  %v2056_v47 = vsel %vm627_vm0, %v3586_v30, 0 }
 0x5ca   :  { %v1677_v18 = vmul.f32 %v2472_v49, %v3258_v35  ;;  %v2474_v24 = vpop.eup %2473  ;;  %v1662_v28 = vpop.xlane.xlu0 %1661 }
 0x5cb   :  { %v1653_v50 = vpop.xlane.xlu1 %1652  ;;  %v1680_v38 = vmul.f32 %v2474_v24, %v3245_v46 }
 0x5cc   :  { %v1685_v43 = vpack.c.bf16 %v1677_v18, %v1677_v18  ;;  %2477 = vrcp.f32 %v1653_v50  ;;  %v3591_v50 = vld [vmem:[#allocation19_spill] sm:$0xff] }
 0x5cd   :  { %v1688_v36 = vpack.c.bf16 %v1680_v38, %v1680_v38  ;;  %2479 = vrcp.f32 %v1662_v28 }
 0x5ce   :  { %v3365_v0 = vpop.eup %2475  ;;  %2360 = vmatmul.msk.bf16.vlgmr.msrb.gmra.mxu1 %vm627_vm0, %v1685_v43  ;;  %v3590_v43 = vld [vmem:[#allocation20_spill] sm:$0xff] }
 0x5cf   :  { %1972 = vmatpush.bf16.xpose.msra.mxu2 %v1966_v27  ;;  %1924 = vmatpush.bf16.xpose.msrb.mxu1 %v1918_v48  ;;  %v1663_v35 = vsel %vm627_vm0, %v3365_v0, 0.0  ;;  %v3588_v27 = vld [vmem:[#allocation13_spill] sm:$0xff]  ;;  %v3592_v24 = vpack.c.b16 %v3590_v43, %v3591_v50 }
 0x5d0   :  { %1664 = vadd.xlane.f32.xlu0 %v1663_v35  ;;  %v3589_v49 = vpack.c.b16 %v3587_v2, %v3588_v27  ;;  %v3594_v35 = vld [vmem:[#allocation21_spill] sm:$0xff] }
 0x5d1   :  { %v1659_v34 = vpop.xlane.xlu2 %1658  ;;  %v2053_v10 = vsel %vm627_vm0, %v3592_v24, 0  ;;  %v1122_v38 = vmin.f32 %v3594_v35, 0.0  ;;  %vm1114_vm11 = vcmp.gt.f32.partialorder %v3594_v35, 0.0 }
 0x5d2   :  { %v2478_v54 = vpop.eup %2477  ;;  %2481 = vrcp.f32 %v1659_v34  ;;  %v2008_v18 = vsel %vm627_vm0, %v3589_v49, 0 }
 0x5d3   :  { %v1679_v46 = vmul.f32 %v2478_v54, %v3267_v1  ;;  %v2480_v61 = vpop.eup %2479  ;;  %v3569_v1 = vld [vmem:[#allocation26_spill] sm:$0xff] }
 0x5d4   :  { %v3570_v40 = vpack.c.b16 %v3568_v15, %v3569_v1  ;;  %v1682_v53 = vmul.f32 %v2480_v61, %v3269_v29  ;;  %v2059_v29 = vsel %vm627_vm0, %v3579_v21, 0  ;;  %v3595_v54 = vld [vmem:[#allocation2_spill] sm:$0xff] }
 0x5d5   :  { %v1687_v58 = vpack.c.bf16 %v1679_v46, %v1679_v46 }
 0x5d6   :  { %2363 = vmatmul.msk.bf16.vlgmr.msrb.gmra.mxu2 %vm627_vm0, %v1688_v36  ;;  %v2062_v56 = vsel %vm627_vm0, %v3570_v40, 0  ;;  %v1690_v60 = vpack.c.bf16 %v1682_v53, %v1682_v53 }
 0x5d7   :  { %1973 = vmatpush.bf16.xpose.msra.mxu2 %v1963_v45  ;;  %1925 = vmatpush.bf16.xpose.msrb.mxu1 %v1915_v52  ;;  %v1121_v45 = vmin.f32 %v3593_v12, 0.0  ;;  %v3596_v52 = vld [vmem:[#allocation12_spill] sm:$0xff] }
 0x5d8   :  { %v2482_v55 = vpop.eup %2481 }
 0x5d9   :  { %v1681_v62 = vmul.f32 %v2482_v55, %v3580_v63  ;;  %v1134_v28 = vmul.f32 1.442695, %v1121_v45 }
 0x5db   :  { %v1689_v14 = vpack.c.bf16 %v1681_v62, %v1681_v62 }
 0x5de   :  { %2362 = vmatmul.msk.bf16.vlgmr.msra.gmra.mxu1 %vm627_vm0, %v1687_v58  ;;  %v1136_v58 = vmul.f32 1.442695, %v1122_v38 }
 0x5df   :  { %1974 = vmatpush.bf16.xpose.msra.mxu2 %v1960_v9  ;;  %1926 = vmatpush.bf16.xpose.msrb.mxu1 %v1912_v42  ;;  %v3598_v9 = vpack.c.b16 %v3596_v52, %v3597_v8 }
 0x5e1   :  { %v2005_v46 = vsel %vm627_vm0, %v3598_v9, 0 }
 0x5e7   :  { %1975 = vmatpush.bf16.xpose.msra.mxu2 %v1957_v41  ;;  %1927 = vmatpush.bf16.xpose.msrb.mxu1 %v1909_v5 }
 0x5ee   :  { %2365 = vmatmul.msk.bf16.vlgmr.msra.gmra.mxu2 %vm627_vm0, %v1690_v60  ;;  %2364 = vmatmul.msk.bf16.vlgmr.msrb.gmra.mxu1 %vm627_vm0, %v1689_v14 }
 0x5ef   :  { %2068 = vmatpush.bf16.xpose.msrb.mxu2 %v2062_v56  ;;  %2020 = vmatpush.bf16.xpose.msra.mxu1 %v2014_v20 }
 0x5f7   :  { %2069 = vmatpush.bf16.xpose.msrb.mxu2 %v2059_v29  ;;  %2021 = vmatpush.bf16.xpose.msra.mxu1 %v2011_v37  ;;  %v1668_v48 = vpop.xlane.xlu1 %1667 }
 0x5f8   :  { %2483 = vrcp.f32 %v1668_v48 }
 0x5f9   :  { %2485 = vpow2.f32 %v1134_v28 }
 0x5fa   :  { %2487 = vpow2.f32 %v1136_v58 }
 0x5fe   :  { %v2484_v36 = vpop.eup %2483 }
 0x5ff   :  { %2070 = vmatpush.bf16.xpose.msrb.mxu2 %v2056_v47  ;;  %2022 = vmatpush.bf16.xpose.msra.mxu1 %v2008_v18  ;;  %v1684_v59 = vmul.f32 %v2484_v36, %v3595_v54  ;;  %v2486_v61 = vpop.eup %2485 }
 0x600   :  { %v2488_v11 = vpop.eup %2487  ;;  %v2356_v26 = vadd.f32 -1.0, %v2486_v61 }
 0x601   :  { %v1692_v34 = vpack.c.bf16 %v1684_v59, %v1684_v59  ;;  %v2357_v25 = vadd.f32 -1.0, %v2488_v11 }
 0x602   :  { %v1153_v42 = vsel %vm1113_vm10, %v3593_v12, %v2356_v26 }
 0x603   :  { %v1154_v32 = vsel %vm1114_vm11, %v3594_v35, %v2357_v25  ;;  %v1192_v41 = vsel %vm1156_vm3, %v1153_v42, 0.0 }
 0x604   :  { %v1199_v15 = vsel %vm1156_vm3, %v1154_v32, 0.0  ;;  %v1193_v40 = vrot.slane %v1192_v41, 4 }
 0x605   :  { %v1200_v56 = vrot.slane %v1199_v15, 4 }
 0x606   :  { %v1194_v60 = vadd.f32 %v1193_v40, %v1192_v41 }
 0x607   :  { %2071 = vmatpush.bf16.xpose.msrb.mxu2 %v2053_v10  ;;  %2023 = vmatpush.bf16.xpose.msra.mxu1 %v2005_v46  ;;  %v1201_v55 = vadd.f32 %v1200_v56, %v1199_v15 }
 0x608   :  { %v1195_v17 = vrot.slane %v1194_v60, 2 }
 0x609   :  { %v1202_v5 = vrot.slane %v1201_v55, 2 }
 0x60a   :  { %v1196_v22 = vadd.f32 %v1195_v17, %v1194_v60 }
 0x60b   :  { %v1203_v21 = vadd.f32 %v1202_v5, %v1201_v55 }
 0x60c   :  { %v1197_v14 = vrot.slane %v1196_v22, 1 }
 0x60d   :  { %v1204_v3 = vrot.slane %v1203_v21, 1 }
 0x60e   :  { %2367 = vmatmul.msk.bf16.vlgmr.msrb.gmra.mxu2 %vm627_vm0, %v1692_v34  ;;  %v1198_v4 = vadd.f32 %v1197_v14, %v1196_v22 }
 0x60f   :  { %v1205_v19 = vadd.f32 %v1204_v3, %v1203_v21 }
 0x610   :  { %v1218_v49 = vmul.f32 0.125, %v1198_v4 }
 0x611   :  { %v960_v6 = vpop.f32.mrf.mxu2  ;;  %v1219_v18 = vmul.f32 0.125, %v1205_v19 }
 0x612   :  { %v1120_v16 = vmin.f32 %v960_v6, 0.0  ;;  %vm1112_vm12 = vcmp.gt.f32.partialorder %v960_v6, 0.0 }
 0x614   :  { %v1132_v1 = vmul.f32 1.442695, %v1120_v16 }
 0x616   :  { %2489 = vpow2.f32 %v1132_v1 }
 0x619   :  { %v962_v53 = vpop.f32.mrf.mxu2 }
 0x61c   :  { %v2490_v44 = vpop.eup %2489 }
 0x61d   :  { %v2355_v13 = vadd.f32 -1.0, %v2490_v44 }
 0x61f   :  { %v1152_v57 = vsel %vm1112_vm12, %v960_v6, %v2355_v13 }
 0x620   :  { %v1185_v51 = vsel %vm1156_vm3, %v1152_v57, 0.0 }
 0x621   :  { %v1186_v7 = vrot.slane %v1185_v51, 4  ;;  %v1104_v20 = vpop.f32.mrf.mxu2 }
 0x622   :  { %v1123_v23 = vmin.f32 %v1104_v20, 0.0  ;;  %vm1115_vm15 = vcmp.gt.f32.partialorder %v1104_v20, 0.0 }
 0x623   :  { %v1187_v29 = vadd.f32 %v1186_v7, %v1185_v51 }
 0x624   :  { %v1138_v63 = vmul.f32 1.442695, %v1123_v23 }
 0x625   :  { %v1188_v62 = vrot.slane %v1187_v29, 2 }
 0x626   :  { %2491 = vpow2.f32 %v1138_v63 }
 0x627   :  { %v1189_v33 = vadd.f32 %v1188_v62, %v1187_v29 }
 0x629   :  { %v1190_v39 = vrot.slane %v1189_v33, 1  ;;  %v1106_v37 = vpop.f32.mrf.mxu2 }
 0x62b   :  { %v1191_v30 = vadd.f32 %v1190_v39, %v1189_v33 }
 0x62c   :  { %v2492_v47 = vpop.eup %2491 }
 0x62d   :  { %v1217_v2 = vmul.f32 0.125, %v1191_v30  ;;  %v2358_v27 = vadd.f32 -1.0, %v2492_v47 }
 0x62f   :  { %v1236_v43 = vsel %vm1235_vm13, %v1217_v2, %v3347_v31  ;;  %v1155_v50 = vsel %vm1115_vm15, %v1104_v20, %v2358_v27 }
 0x630   :  { %v1238_v24 = vsel %vm1237_vm14, %v1218_v49, %v1236_v43  ;;  %v1206_v10 = vsel %vm1156_vm3, %v1155_v50, 0.0 }
 0x631   :  { %v1207_v48 = vrot.slane %v1206_v10, 4  ;;  %v1240_v12 = vsel %vm1239_vm1, %v1219_v18, %v1238_v24 }
 0x633   :  { %v1208_v45 = vadd.f32 %v1207_v48, %v1206_v10 }
 0x635   :  { %v1209_v35 = vrot.slane %v1208_v45, 2 }
 0x637   :  { %v1210_v38 = vadd.f32 %v1209_v35, %v1208_v45 }
 0x639   :  { %v1211_v36 = vrot.slane %v1210_v38, 1 }
 0x63b   :  { %v1212_v28 = vadd.f32 %v1211_v36, %v1210_v38 }
 0x63d   :  { %v1220_v54 = vmul.f32 0.125, %v1212_v28 }
 0x63f   :  { %v1242_v59 = vsel %vm1241_vm2, %v1220_v54, %v1240_v12 }
 0x640   :  { %1244 = vst.msk [vmem:[%s3482_s2] sm:$0xff] %vm1156_vm3, %v1242_v59 }
 0x643   :  { %v1665_v31 = vpop.xlane.xlu0 %1664 }
 0x644   :  { %2493 = vrcp.f32 %v1665_v31 }
 0x649   :  { %v1785_v52 = vpop.f32.mrf.mxu2 }
 0x64a   :  { %v2494_v8 = vpop.eup %2493  ;;  %v2086_v9 = vmin.f32 %v1785_v52, 0.0  ;;  %vm2078_vm4 = vcmp.gt.f32.partialorder %v1785_v52, 0.0 }
 0x64b   :  { %v1683_v46 = vmul.f32 %v2494_v8, %v3365_v0  ;;  %v1737_v58 = vpop.f32.mrf.mxu1 }
 0x64c   :  { %v2095_v34 = vmul.f32 1.442695, %v2086_v9  ;;  %v2085_v61 = vmin.f32 %v1737_v58, 0.0  ;;  %vm2077_vm5 = vcmp.gt.f32.partialorder %v1737_v58, 0.0 }
 0x64d   :  { %v1691_v11 = vpack.c.bf16 %v1683_v46, %v1683_v46 }
 0x64e   :  { %2495 = vpow2.f32 %v2095_v34  ;;  %v2093_v26 = vmul.f32 1.442695, %v2085_v61 }
 0x64f   :  { %2366 = vmatmul.msk.bf16.vlgmr.msra.gmra.mxu1 %vm627_vm0, %v1691_v11 }
 0x650   :  { %2497 = vpow2.f32 %v2093_v26 }
 0x651   :  { %v1787_v25 = vpop.f32.mrf.mxu2 }
 0x653   :  { %v1739_v42 = vpop.f32.mrf.mxu1 }
 0x654   :  { %v2496_v32 = vpop.eup %2495 }
 0x655   :  { %v2369_v6 = vadd.f32 -1.0, %v2496_v32 }
 0x656   :  { %v2498_v16 = vpop.eup %2497 }
 0x657   :  { %v2118_v41 = vsel %vm2078_vm4, %v1785_v52, %v2369_v6  ;;  %v2368_v15 = vadd.f32 -1.0, %v2498_v16 }
 0x658   :  { %v2132_v1 = vsel %vm1156_vm3, %v2118_v41, 0.0 }
 0x659   :  { %v2133_v0 = vrot.slane %v2132_v1, 4  ;;  %v2117_v40 = vsel %vm2077_vm5, %v1737_v58, %v2368_v15  ;;  %v1881_v56 = vpop.f32.mrf.mxu2 }
 0x65a   :  { %v2125_v53 = vsel %vm1156_vm3, %v2117_v40, 0.0  ;;  %v2088_v60 = vmin.f32 %v1881_v56, 0.0  ;;  %vm2080_vm0 = vcmp.gt.f32.partialorder %v1881_v56, 0.0 }
 0x65b   :  { %v2134_v55 = vadd.f32 %v2133_v0, %v2132_v1  ;;  %v2126_v44 = vrot.slane %v2125_v53, 4  ;;  %v1833_v13 = vpop.f32.mrf.mxu1 }
 0x65c   :  { %v2099_v17 = vmul.f32 1.442695, %v2088_v60  ;;  %v2087_v5 = vmin.f32 %v1833_v13, 0.0  ;;  %vm2079_vm7 = vcmp.gt.f32.partialorder %v1833_v13, 0.0 }
 0x65d   :  { %v2135_v57 = vrot.slane %v2134_v55, 2  ;;  %v2127_v51 = vadd.f32 %v2126_v44, %v2125_v53 }
 0x65e   :  { %2499 = vpow2.f32 %v2099_v17  ;;  %v2097_v7 = vmul.f32 1.442695, %v2087_v5 }
 0x65f   :  { %v2136_v20 = vadd.f32 %v2135_v57, %v2134_v55  ;;  %v2128_v22 = vrot.slane %v2127_v51, 2 }
 0x660   :  { %2501 = vpow2.f32 %v2097_v7 }
 0x661   :  { %v2137_v23 = vrot.slane %v2136_v20, 1  ;;  %v2129_v21 = vadd.f32 %v2128_v22, %v2127_v51  ;;  %v1883_v29 = vpop.f32.mrf.mxu2 }
 0x663   :  { %v2138_v63 = vadd.f32 %v2137_v23, %v2136_v20  ;;  %v2130_v62 = vrot.slane %v2129_v21, 1  ;;  %v1835_v14 = vpop.f32.mrf.mxu1 }
 0x664   :  { %v2500_v3 = vpop.eup %2499 }
 0x665   :  { %v2131_v33 = vadd.f32 %v2130_v62, %v2129_v21  ;;  %v2371_v39 = vadd.f32 -1.0, %v2500_v3  ;;  %v2182_v4 = vmul.f32 0.125, %v2138_v63 }
 0x666   :  { %v2502_v37 = vpop.eup %2501 }
 0x667   :  { %v2181_v19 = vmul.f32 0.125, %v2131_v33  ;;  %v2120_v30 = vsel %vm2080_vm0, %v1881_v56, %v2371_v39  ;;  %v2370_v47 = vadd.f32 -1.0, %v2502_v37 }
 0x668   :  { %v2146_v2 = vsel %vm1156_vm3, %v2120_v30, 0.0 }
 0x669   :  { %v2197_v27 = vsel %vm1229_vm6, %v2182_v4, %v2181_v19  ;;  %v2147_v49 = vrot.slane %v2146_v2, 4  ;;  %v2119_v18 = vsel %vm2079_vm7, %v1833_v13, %v2370_v47 }
 0x66a   :  { %v2139_v50 = vsel %vm1156_vm3, %v2119_v18, 0.0 }
 0x66b   :  { %v2148_v10 = vadd.f32 %v2147_v49, %v2146_v2  ;;  %v2140_v48 = vrot.slane %v2139_v50, 4  ;;  %v1929_v12 = vpop.f32.mrf.mxu1 }
 0x66c   :  { %v2089_v35 = vmin.f32 %v1929_v12, 0.0  ;;  %vm2081_vm10 = vcmp.gt.f32.partialorder %v1929_v12, 0.0 }
 0x66d   :  { %v2149_v38 = vrot.slane %v2148_v10, 2  ;;  %v2141_v36 = vadd.f32 %v2140_v48, %v2139_v50 }
 0x66e   :  { %v2101_v28 = vmul.f32 1.442695, %v2089_v35 }
 0x66f   :  { %v2150_v54 = vadd.f32 %v2149_v38, %v2148_v10  ;;  %v2142_v59 = vrot.slane %v2141_v36, 2 }
 0x671   :  { %v1977_v43 = vpop.f32.mrf.mxu2  ;;  %v2151_v31 = vrot.slane %v2150_v54, 1  ;;  %v2143_v52 = vadd.f32 %v2142_v59, %v2141_v36 }
 0x672   :  { %v2090_v24 = vmin.f32 %v1977_v43, 0.0  ;;  %vm2082_vm6 = vcmp.gt.f32.partialorder %v1977_v43, 0.0 }
 0x673   :  { %v2144_v9 = vrot.slane %v2143_v52, 1  ;;  %v1931_v46 = vpop.f32.mrf.mxu1  ;;  %v2152_v34 = vadd.f32 %v2151_v31, %v2150_v54 }
 0x674   :  { %v2103_v45 = vmul.f32 1.442695, %v2090_v24 }
 0x675   :  { %v2145_v61 = vadd.f32 %v2144_v9, %v2143_v52  ;;  %v2184_v6 = vmul.f32 0.125, %v2152_v34 }
 0x676   :  { %2503 = vpow2.f32 %v2103_v45 }
 0x677   :  { %2505 = vpow2.f32 %v2101_v28  ;;  %v2183_v25 = vmul.f32 0.125, %v2145_v61 }
 0x679   :  { %v1979_v8 = vpop.f32.mrf.mxu2  ;;  %v2198_v41 = vsel %vm1231_vm8, %v2183_v25, %v2197_v27 }
 0x67a   :  { %v2199_v40 = vsel %vm1233_vm9, %v2184_v6, %v2198_v41 }
 0x67c   :  { %v2504_v58 = vpop.eup %2503 }
 0x67d   :  { %v2373_v11 = vadd.f32 -1.0, %v2504_v58  ;;  %v2506_v26 = vpop.eup %2505 }
 0x67e   :  { %v2372_v32 = vadd.f32 -1.0, %v2506_v26 }
 0x67f   :  { %v2122_v42 = vsel %vm2082_vm6, %v1977_v43, %v2373_v11 }
 0x680   :  { %v2160_v16 = vsel %vm1156_vm3, %v2122_v42, 0.0  ;;  %v2121_v1 = vsel %vm2081_vm10, %v1929_v12, %v2372_v32 }
 0x681   :  { %v2161_v15 = vrot.slane %v2160_v16, 4  ;;  %v2153_v0 = vsel %vm1156_vm3, %v2121_v1, 0.0 }
 0x682   :  { %v2154_v53 = vrot.slane %v2153_v0, 4 }
 0x683   :  { %v2162_v56 = vadd.f32 %v2161_v15, %v2160_v16 }
 0x684   :  { %v2155_v55 = vadd.f32 %v2154_v53, %v2153_v0 }
 0x685   :  { %v2163_v60 = vrot.slane %v2162_v56, 2 }
 0x686   :  { %v2156_v13 = vrot.slane %v2155_v55, 2 }
 0x687   :  { %v2164_v44 = vadd.f32 %v2163_v60, %v2162_v56 }
 0x688   :  { %v2157_v5 = vadd.f32 %v2156_v13, %v2155_v55 }
 0x689   :  { %v2165_v17 = vrot.slane %v2164_v44, 1 }
 0x68a   :  { %v2158_v57 = vrot.slane %v2157_v5, 1 }
 0x68b   :  { %v2166_v51 = vadd.f32 %v2165_v17, %v2164_v44 }
 0x68c   :  { %v2159_v7 = vadd.f32 %v2158_v57, %v2157_v5 }
 0x68d   :  { %v2186_v23 = vmul.f32 0.125, %v2166_v51 }
 0x68e   :  { %v2185_v22 = vmul.f32 0.125, %v2159_v7 }
 0x690   :  { %v2200_v21 = vsel %vm1235_vm13, %v2185_v22, %v2199_v40 }
 0x691   :  { %v2073_v20 = vpop.f32.mrf.mxu2  ;;  %v2201_v29 = vsel %vm1237_vm14, %v2186_v23, %v2200_v21 }
 0x692   :  { %v2092_v62 = vmin.f32 %v2073_v20, 0.0  ;;  %vm2084_vm8 = vcmp.gt.f32.partialorder %v2073_v20, 0.0 }
 0x694   :  { %v2107_v14 = vmul.f32 1.442695, %v2092_v62 }
 0x696   :  { %2507 = vpow2.f32 %v2107_v14 }
 0x699   :  { %v2075_v63 = vpop.f32.mrf.mxu2 }
 0x69c   :  { %v2508_v3 = vpop.eup %2507 }
 0x69d   :  { %v2375_v33 = vadd.f32 -1.0, %v2508_v3 }
 0x69f   :  { %v2124_v39 = vsel %vm2084_vm8, %v2073_v20, %v2375_v33 }
 0x6a0   :  { %v2174_v19 = vsel %vm1156_vm3, %v2124_v39, 0.0 }
 0x6a1   :  { %v2175_v47 = vrot.slane %v2174_v19, 4 }
 0x6a3   :  { %v2176_v27 = vadd.f32 %v2175_v47, %v2174_v19 }
 0x6a5   :  { %v2177_v43 = vrot.slane %v2176_v27, 2 }
 0x6a7   :  { %v2178_v48 = vadd.f32 %v2177_v43, %v2176_v27 }
 0x6a9   :  { %v2179_v35 = vrot.slane %v2178_v48, 1 }
 0x6ab   :  { %v2180_v28 = vadd.f32 %v2179_v35, %v2178_v48 }
 0x6ad   :  { %v2188_v31 = vmul.f32 0.125, %v2180_v28 }
 0x6cc   :  { %v2025_v37 = vpop.f32.mrf.mxu1 }
 0x6cd   :  { %v2091_v4 = vmin.f32 %v2025_v37, 0.0  ;;  %vm2083_vm9 = vcmp.gt.f32.partialorder %v2025_v37, 0.0 }
 0x6cf   :  { %v2105_v30 = vmul.f32 1.442695, %v2091_v4 }
 0x6d1   :  { %2509 = vpow2.f32 %v2105_v30 }
 0x6d4   :  { %v2027_v2 = vpop.f32.mrf.mxu1 }
 0x6d7   :  { %v2510_v49 = vpop.eup %2509 }
 0x6d8   :  { %v2374_v18 = vadd.f32 -1.0, %v2510_v49 }
 0x6da   :  { %v2123_v50 = vsel %vm2083_vm9, %v2025_v37, %v2374_v18 }
 0x6db   :  { %v2167_v24 = vsel %vm1156_vm3, %v2123_v50, 0.0 }
 0x6dc   :  { %v2168_v10 = vrot.slane %v2167_v24, 4 }
 0x6de   :  { %v2169_v12 = vadd.f32 %v2168_v10, %v2167_v24 }
 0x6e0   :  { %v2170_v45 = vrot.slane %v2169_v12, 2 }
 0x6e2   :  { %v2171_v38 = vadd.f32 %v2170_v45, %v2169_v12 }
 0x6e4   :  { %v2172_v36 = vrot.slane %v2171_v38, 1 }
 0x6e6   :  { %v2173_v54 = vadd.f32 %v2172_v36, %v2171_v38 }
 0x6e8   :  { %v2187_v59 = vmul.f32 0.125, %v2173_v54 }
 0x6ea   :  { %v2202_v52 = vsel %vm1239_vm1, %v2187_v59, %v2201_v29 }
 0x6eb   :  { %v2203_v8 = vsel %vm1241_vm2, %v2188_v31, %v2202_v52 }
 0x6ec   :  { %2376 = vst.msk [vmem:[%s3482_s2 + $0x8] sm:$0xff] %vm1156_vm3, %v2203_v8 }

</bundles_post_ra>
